<compile_context>
chip_gen: v7x
topology: tpu7x:2x2x1
jax: 0.10.0
libtpu: 0.0.40
codegen_flags: <defaults>
</compile_context>

<pallas_src>
import numpy as np
import jax
import jax.numpy as jnp
from jax.experimental import pallas as pl
from jax.experimental.pallas import tpu as pltpu


TILE_B = 8  # images per grid step (clamped to the batch size)


# ----------------------------- fused forward kernel -----------------------------

def _lenet_kernel(x_ref, g1_ref, b1_ref, sw1_ref, sh1_ref,
                  g2_ref, b2_ref, sw2_ref, sh2_ref,
                  g3_ref, b3_ref, wf1_ref, bf1_ref, wf2_ref, bf2_ref,
                  o_ref):
    f32 = jnp.float32

    def band_conv_relu(act, g_ref, bias, h_out):
        # act: (H_in, W_in*Cin); g_ref: (KH, W_in*Cin, W_out*Cout)
        acc = jnp.dot(act[0:h_out, :], g_ref[0], preferred_element_type=f32)
        for kh in range(1, g_ref.shape[0]):
            acc = acc + jnp.dot(act[kh:kh + h_out, :], g_ref[kh],
                                preferred_element_type=f32)
        return jnp.maximum(acc + bias, 0.0)

    def maxpool2x2(act, sw_ref, sh_ref):
        # W (lane-group) pooling: two 0/1 selection GEMMs + elementwise max.
        a = jnp.dot(act, sw_ref[0], preferred_element_type=f32)
        b = jnp.dot(act, sw_ref[1], preferred_element_type=f32)
        m = jnp.maximum(a, b)
        # H (row) pooling: two 0/1 selection GEMMs on the left + elementwise max.
        c = jnp.dot(sh_ref[0], m, preferred_element_type=f32)
        d = jnp.dot(sh_ref[1], m, preferred_element_type=f32)
        return jnp.maximum(c, d)

    b1 = b1_ref[...]
    b2 = b2_ref[...]
    b3 = b3_ref[...]
    wf1 = wf1_ref[...]
    bf1 = bf1_ref[...]
    wf2 = wf2_ref[...]
    bf2 = bf2_ref[...]

    for b in range(x_ref.shape[0]):                  # unrolled over the batch tile
        x = x_ref[b]                                 # (32, 32) 'same'-padded image
        h1 = band_conv_relu(x, g1_ref, b1, 28)       # (28, 28*6)
        p1 = maxpool2x2(h1, sw1_ref, sh1_ref)        # (14, 14*6)
        h2 = band_conv_relu(p1, g2_ref, b2, 10)      # (10, 10*16)
        p2 = maxpool2x2(h2, sw2_ref, sh2_ref)        # (5,  5*16)
        h3 = band_conv_relu(p2, g3_ref, b3, 1)       # (1, 120)   == feature.view(B,-1)
        f1 = jnp.maximum(jnp.dot(h3, wf1, preferred_element_type=f32) + bf1, 0.0)
        z = jnp.dot(f1, wf2, preferred_element_type=f32) + bf2       # (1, 10)
        z = z - jnp.max(z, axis=-1, keepdims=True)
        e = jnp.exp(z)
        inv = pl.reciprocal(jnp.sum(e, axis=-1, keepdims=True), approx=False)
        o_ref[b] = e * inv                           # softmax row


# -------------------------- weight layout preparation ---------------------------

def _band_matrices(w_hwio, w_in, w_out):
    """G[kh, w*Cin+ci, wo*Cout+co] = w_hwio[kh, w-wo, ci, co] (0 outside [0, KW))."""
    KH, KW, Cin, Cout = w_hwio.shape
    i = np.arange(w_in * Cin)
    j = np.arange(w_out * Cout)
    wi, ci = i[:, None] // Cin, i[:, None] % Cin
    wo, co = j[None, :] // Cout, j[None, :] % Cout
    kw = wi - wo
    valid = (kw >= 0) & (kw < KW)
    flat = (np.clip(kw, 0, KW - 1) * Cin + ci) * Cout + co   # into (KW, Cin, Cout) flat
    mask = jnp.asarray(valid, w_hwio.dtype)
    flat = jnp.asarray(flat)
    return jnp.stack([w_hwio[kh].reshape(-1)[flat] * mask for kh in range(KH)], axis=0)


def _pool_selectors(h, w, c):
    """0/1 selection matrices for a fused 2x2 max-pool on (H, W*C) activations."""
    swa = np.zeros((w * c, (w // 2) * c), np.float32)   # picks W-groups 2k
    swb = np.zeros_like(swa)                            # picks W-groups 2k+1
    for k in range(w // 2):
        for cc in range(c):
            swa[(2 * k) * c + cc, k * c + cc] = 1.0
            swb[(2 * k + 1) * c + cc, k * c + cc] = 1.0
    sha = np.zeros((h // 2, h), np.float32)             # picks rows 2i
    shb = np.zeros_like(sha)                            # picks rows 2i+1
    for i in range(h // 2):
        sha[i, 2 * i] = 1.0
        shb[i, 2 * i + 1] = 1.0
    return (jnp.asarray(np.stack([swa, swb]), jnp.float32),
            jnp.asarray(np.stack([sha, shb]), jnp.float32))


def _prepare_operands(params):
    """Pack LeNet weights into the VMEM-resident operands of the fused kernel."""
    g1 = _band_matrices(params["w1"], 32, 28)          # (5, 32, 168)
    g2 = _band_matrices(params["w2"], 14, 10)          # (5, 84, 160)
    g3 = _band_matrices(params["w3"], 5, 1)            # (5, 80, 120)
    b1r = jnp.tile(params["b1"], 28).reshape(1, 28 * 6)
    b2r = jnp.tile(params["b2"], 10).reshape(1, 10 * 16)
    b3r = params["b3"].reshape(1, 120)
    sw1, sh1 = _pool_selectors(28, 28, 6)              # (2,168,84), (2,14,28)
    sw2, sh2 = _pool_selectors(10, 10, 16)             # (2,160,80), (2,5,10)
    wf1 = params["wf1"]
    bf1 = params["bf1"].reshape(1, 84)
    wf2 = params["wf2"]
    bf2 = params["bf2"].reshape(1, 10)
    return (g1, b1r, sw1, sh1, g2, b2r, sw2, sh2, g3, b3r, wf1, bf1, wf2, bf2)


# ------------------------------------ forward -----------------------------------

def _const_map(ndim):
    def index_map(i):
        return (0,) * ndim
    return index_map


@jax.jit
def lenet_forward(params, x_nchw):
    B = x_nchw.shape[0]
    tb = min(TILE_B, B)
    bpad = ((B + tb - 1) // tb) * tb

    # NCHW (B,1,28,28) -> (B,28,28); pad 2 on each side ('same' 5x5 conv1) and pad
    # the batch up to a multiple of the tile (pure data movement, done in glue).
    x = x_nchw.astype(jnp.float32).reshape(B, 28, 28)
    x = jnp.pad(x, ((0, bpad - B), (2, 2), (2, 2)))

    ops = _prepare_operands(params)

    in_specs = [pl.BlockSpec((tb, 32, 32), lambda i: (i, 0, 0))]
    in_specs += [pl.BlockSpec(op.shape, _const_map(op.ndim)) for op in ops]

    out = pl.pallas_call(
        _lenet_kernel,
        out_shape=jax.ShapeDtypeStruct((bpad, 1, 10), jnp.float32),
        grid=(bpad // tb,),
        in_specs=in_specs,
        out_specs=pl.BlockSpec((tb, 1, 10), lambda i: (i, 0, 0)),
        compiler_params=pltpu.CompilerParams(
            dimension_semantics=("parallel",),
            vmem_limit_bytes=32 * 1024 * 1024),
    )(x, *ops)
    return out.reshape(bpad, 10)[:B]


# ---------------------------------- parameters ----------------------------------

def init_lenet_params(key):
    """Deterministic PyTorch-style uniform(-1/sqrt(fan_in), 1/sqrt(fan_in)) init."""
    ks = jax.random.split(key, 10)

    def u(k, shape, fan_in):
        bound = 1.0 / float(fan_in) ** 0.5
        return jax.random.uniform(k, shape, jnp.float32, -bound, bound)

    return {
        # conv weights: HWIO (KH, KW, Cin, Cout)
        "w1": u(ks[0], (5, 5, 1, 6), 5 * 5 * 1),
        "b1": u(ks[1], (6,), 5 * 5 * 1),
        "w2": u(ks[2], (5, 5, 6, 16), 5 * 5 * 6),
        "b2": u(ks[3], (16,), 5 * 5 * 6),
        "w3": u(ks[4], (5, 5, 16, 120), 5 * 5 * 16),
        "b3": u(ks[5], (120,), 5 * 5 * 16),
        # fc weights: (in, out)
        "wf1": u(ks[6], (120, 84), 120),
        "bf1": u(ks[7], (84,), 120),
        "wf2": u(ks[8], (84, 10), 84),
        "bf2": u(ks[9], (10,), 84),
    }


if __name__ == "__main__":
    key = jax.random.PRNGKey(0)
    pkey, xkey = jax.random.split(key)
    params = init_lenet_params(pkey)
    # LeNet's fc stack requires 28x28 inputs (conv tower -> 120x1x1 feature).
    x = jax.random.normal(xkey, (2, 1, 28, 28), jnp.float32)  # NCHW, like PyTorch
    out = jax.block_until_ready(lenet_forward(params, x))
    assert out.shape == (2, 10)
    assert bool(jnp.all(jnp.isfinite(out)))
    assert bool(jnp.allclose(jnp.sum(out, axis=-1), 1.0, atol=1e-5))  # softmax rows
    print("KERNEL_OK")
</pallas_src>

<mosaic_0001>
module attributes {stable_mosaic.version = 11 : i64} {
  func.func private @main(%arg0: i32) attributes {dimension_semantics = [#tpu.dimension_semantics<core_parallel>], iteration_bounds = array<i64: 2>, tpu.core_type = #tpu.core_type<sc_scalar_subcore>, window_params = []} {
    return
  }
}

module attributes {stable_mosaic.version = 11 : i64} {
  func.func private @main(%arg0: i32) attributes {dimension_semantics = [#tpu.dimension_semantics<core_parallel>], iteration_bounds = array<i64: 2>, tpu.core_type = #tpu.core_type<sc_scalar_subcore>, window_params = []} {
    return
  }
}

module attributes {stable_mosaic.version = 11 : i64} {
  func.func @_lenet_kernel(%arg0: i32, %arg1: memref<2x32x32xf32, #tpu.memory_space<vmem>>, %arg2: memref<5x32x168xf32, #tpu.memory_space<vmem>>, %arg3: memref<1x168xf32, #tpu.memory_space<vmem>>, %arg4: memref<2x168x84xf32, #tpu.memory_space<vmem>>, %arg5: memref<2x14x28xf32, #tpu.memory_space<vmem>>, %arg6: memref<5x84x160xf32, #tpu.memory_space<vmem>>, %arg7: memref<1x160xf32, #tpu.memory_space<vmem>>, %arg8: memref<2x160x80xf32, #tpu.memory_space<vmem>>, %arg9: memref<2x5x10xf32, #tpu.memory_space<vmem>>, %arg10: memref<5x80x120xf32, #tpu.memory_space<vmem>>, %arg11: memref<1x120xf32, #tpu.memory_space<vmem>>, %arg12: memref<120x84xf32, #tpu.memory_space<vmem>>, %arg13: memref<1x84xf32, #tpu.memory_space<vmem>>, %arg14: memref<84x10xf32, #tpu.memory_space<vmem>>, %arg15: memref<1x10xf32, #tpu.memory_space<vmem>>, %arg16: memref<2x1x10xf32, #tpu.memory_space<vmem>>) attributes {dimension_semantics = [#tpu.dimension_semantics<parallel>], iteration_bounds = array<i64: 1>, scalar_prefetch = 0 : i64, scratch_operands = 0 : i64, tpu.core_type = #tpu.core_type<tc>, window_params = [{transform_indices = @transform_0, window_bounds = array<i64: 2, 32, 32>}, {pipeline_mode = #tpu.pipeline_mode<synchronous>, transform_indices = @transform_1, window_bounds = array<i64: 5, 32, 168>}, {pipeline_mode = #tpu.pipeline_mode<synchronous>, transform_indices = @transform_2, window_bounds = array<i64: 1, 168>}, {pipeline_mode = #tpu.pipeline_mode<synchronous>, transform_indices = @transform_3, window_bounds = array<i64: 2, 168, 84>}, {pipeline_mode = #tpu.pipeline_mode<synchronous>, transform_indices = @transform_4, window_bounds = array<i64: 2, 14, 28>}, {pipeline_mode = #tpu.pipeline_mode<synchronous>, transform_indices = @transform_5, window_bounds = array<i64: 5, 84, 160>}, {pipeline_mode = #tpu.pipeline_mode<synchronous>, transform_indices = @transform_6, window_bounds = array<i64: 1, 160>}, {pipeline_mode = #tpu.pipeline_mode<synchronous>, transform_indices = @transform_7, window_bounds = array<i64: 2, 160, 80>}, {pipeline_mode = #tpu.pipeline_mode<synchronous>, transform_indices = @transform_8, window_bounds = array<i64: 2, 5, 10>}, {pipeline_mode = #tpu.pipeline_mode<synchronous>, transform_indices = @transform_9, window_bounds = array<i64: 5, 80, 120>}, {pipeline_mode = #tpu.pipeline_mode<synchronous>, transform_indices = @transform_10, window_bounds = array<i64: 1, 120>}, {pipeline_mode = #tpu.pipeline_mode<synchronous>, transform_indices = @transform_11, window_bounds = array<i64: 120, 84>}, {pipeline_mode = #tpu.pipeline_mode<synchronous>, transform_indices = @transform_12, window_bounds = array<i64: 1, 84>}, {pipeline_mode = #tpu.pipeline_mode<synchronous>, transform_indices = @transform_13, window_bounds = array<i64: 84, 10>}, {pipeline_mode = #tpu.pipeline_mode<synchronous>, transform_indices = @transform_14, window_bounds = array<i64: 1, 10>}, {transform_indices = @transform_15, window_bounds = array<i64: 2, 1, 10>}]} {
    %c0 = arith.constant 0 : index
    %c0_0 = arith.constant 0 : index
    %0 = vector.load %arg3[%c0, %c0_0] : memref<1x168xf32, #tpu.memory_space<vmem>>, vector<1x168xf32>
    %c0_1 = arith.constant 0 : index
    %c0_2 = arith.constant 0 : index
    %1 = vector.load %arg7[%c0_1, %c0_2] : memref<1x160xf32, #tpu.memory_space<vmem>>, vector<1x160xf32>
    %c0_3 = arith.constant 0 : index
    %c0_4 = arith.constant 0 : index
    %2 = vector.load %arg11[%c0_3, %c0_4] : memref<1x120xf32, #tpu.memory_space<vmem>>, vector<1x120xf32>
    %c0_5 = arith.constant 0 : index
    %c0_6 = arith.constant 0 : index
    %3 = vector.load %arg12[%c0_5, %c0_6] : memref<120x84xf32, #tpu.memory_space<vmem>>, vector<120x84xf32>
    %c0_7 = arith.constant 0 : index
    %c0_8 = arith.constant 0 : index
    %4 = vector.load %arg13[%c0_7, %c0_8] : memref<1x84xf32, #tpu.memory_space<vmem>>, vector<1x84xf32>
    %c0_9 = arith.constant 0 : index
    %c0_10 = arith.constant 0 : index
    %5 = vector.load %arg14[%c0_9, %c0_10] : memref<84x10xf32, #tpu.memory_space<vmem>>, vector<84x10xf32>
    %c0_11 = arith.constant 0 : index
    %c0_12 = arith.constant 0 : index
    %6 = vector.load %arg15[%c0_11, %c0_12] : memref<1x10xf32, #tpu.memory_space<vmem>>, vector<1x10xf32>
    %c0_13 = arith.constant 0 : index
    %c0_14 = arith.constant 0 : index
    %c0_15 = arith.constant 0 : index
    %7 = vector.load %arg1[%c0_13, %c0_14, %c0_15] : memref<2x32x32xf32, #tpu.memory_space<vmem>>, vector<1x32x32xf32>
    %8 = vector.shape_cast %7 : vector<1x32x32xf32> to vector<32x32xf32>
    %9 = vector.extract_strided_slice %8 {offsets = [0, 0], sizes = [28, 32], strides = [1, 1]} : vector<32x32xf32> to vector<28x32xf32>
    %c0_16 = arith.constant 0 : index
    %c0_17 = arith.constant 0 : index
    %c0_18 = arith.constant 0 : index
    %10 = vector.load %arg2[%c0_16, %c0_17, %c0_18] : memref<5x32x168xf32, #tpu.memory_space<vmem>>, vector<1x32x168xf32>
    %11 = vector.shape_cast %10 : vector<1x32x168xf32> to vector<32x168xf32>
    %cst = arith.constant dense<0.000000e+00> : vector<28x168xf32>
    %12 = tpu.matmul %9, %11, %cst {dimension_numbers = #tpu.dot_dimension_numbers<[1], [0], [0], [1], [0, 0, 1, 1], [], []>} : vector<28x32xf32>, vector<32x168xf32>, vector<28x168xf32> -> vector<28x168xf32>
    %13 = vector.extract_strided_slice %8 {offsets = [1, 0], sizes = [28, 32], strides = [1, 1]} : vector<32x32xf32> to vector<28x32xf32>
    %c1 = arith.constant 1 : index
    %c0_19 = arith.constant 0 : index
    %c0_20 = arith.constant 0 : index
    %14 = vector.load %arg2[%c1, %c0_19, %c0_20] : memref<5x32x168xf32, #tpu.memory_space<vmem>>, vector<1x32x168xf32>
    %15 = vector.shape_cast %14 : vector<1x32x168xf32> to vector<32x168xf32>
    %cst_21 = arith.constant dense<0.000000e+00> : vector<28x168xf32>
    %16 = tpu.matmul %13, %15, %cst_21 {dimension_numbers = #tpu.dot_dimension_numbers<[1], [0], [0], [1], [0, 0, 1, 1], [], []>} : vector<28x32xf32>, vector<32x168xf32>, vector<28x168xf32> -> vector<28x168xf32>
    %17 = arith.addf %12, %16 : vector<28x168xf32>
    %18 = vector.extract_strided_slice %8 {offsets = [2, 0], sizes = [28, 32], strides = [1, 1]} : vector<32x32xf32> to vector<28x32xf32>
    %c2 = arith.constant 2 : index
    %c0_22 = arith.constant 0 : index
    %c0_23 = arith.constant 0 : index
    %19 = vector.load %arg2[%c2, %c0_22, %c0_23] : memref<5x32x168xf32, #tpu.memory_space<vmem>>, vector<1x32x168xf32>
    %20 = vector.shape_cast %19 : vector<1x32x168xf32> to vector<32x168xf32>
    %cst_24 = arith.constant dense<0.000000e+00> : vector<28x168xf32>
    %21 = tpu.matmul %18, %20, %cst_24 {dimension_numbers = #tpu.dot_dimension_numbers<[1], [0], [0], [1], [0, 0, 1, 1], [], []>} : vector<28x32xf32>, vector<32x168xf32>, vector<28x168xf32> -> vector<28x168xf32>
    %22 = arith.addf %17, %21 : vector<28x168xf32>
    %23 = vector.extract_strided_slice %8 {offsets = [3, 0], sizes = [28, 32], strides = [1, 1]} : vector<32x32xf32> to vector<28x32xf32>
    %c3 = arith.constant 3 : index
    %c0_25 = arith.constant 0 : index
    %c0_26 = arith.constant 0 : index
    %24 = vector.load %arg2[%c3, %c0_25, %c0_26] : memref<5x32x168xf32, #tpu.memory_space<vmem>>, vector<1x32x168xf32>
    %25 = vector.shape_cast %24 : vector<1x32x168xf32> to vector<32x168xf32>
    %cst_27 = arith.constant dense<0.000000e+00> : vector<28x168xf32>
    %26 = tpu.matmul %23, %25, %cst_27 {dimension_numbers = #tpu.dot_dimension_numbers<[1], [0], [0], [1], [0, 0, 1, 1], [], []>} : vector<28x32xf32>, vector<32x168xf32>, vector<28x168xf32> -> vector<28x168xf32>
    %27 = arith.addf %22, %26 : vector<28x168xf32>
    %28 = vector.extract_strided_slice %8 {offsets = [4, 0], sizes = [28, 32], strides = [1, 1]} : vector<32x32xf32> to vector<28x32xf32>
    %c4 = arith.constant 4 : index
    %c0_28 = arith.constant 0 : index
    %c0_29 = arith.constant 0 : index
    %29 = vector.load %arg2[%c4, %c0_28, %c0_29] : memref<5x32x168xf32, #tpu.memory_space<vmem>>, vector<1x32x168xf32>
    %30 = vector.shape_cast %29 : vector<1x32x168xf32> to vector<32x168xf32>
    %cst_30 = arith.constant dense<0.000000e+00> : vector<28x168xf32>
    %31 = tpu.matmul %28, %30, %cst_30 {dimension_numbers = #tpu.dot_dimension_numbers<[1], [0], [0], [1], [0, 0, 1, 1], [], []>} : vector<28x32xf32>, vector<32x168xf32>, vector<28x168xf32> -> vector<28x168xf32>
    %32 = arith.addf %27, %31 : vector<28x168xf32>
    %33 = vector.broadcast %0 : vector<1x168xf32> to vector<28x168xf32>
    %34 = arith.addf %32, %33 : vector<28x168xf32>
    %cst_31 = arith.constant 0.000000e+00 : f32
    %35 = vector.broadcast %cst_31 : f32 to vector<28x168xf32>
    %36 = arith.maximumf %34, %35 : vector<28x168xf32>
    %c0_32 = arith.constant 0 : index
    %c0_33 = arith.constant 0 : index
    %c0_34 = arith.constant 0 : index
    %37 = vector.load %arg4[%c0_32, %c0_33, %c0_34] : memref<2x168x84xf32, #tpu.memory_space<vmem>>, vector<1x168x84xf32>
    %38 = vector.shape_cast %37 : vector<1x168x84xf32> to vector<168x84xf32>
    %cst_35 = arith.constant dense<0.000000e+00> : vector<28x84xf32>
    %39 = tpu.matmul %36, %38, %cst_35 {dimension_numbers = #tpu.dot_dimension_numbers<[1], [0], [0], [1], [0, 0, 1, 1], [], []>} : vector<28x168xf32>, vector<168x84xf32>, vector<28x84xf32> -> vector<28x84xf32>
    %c1_36 = arith.constant 1 : index
    %c0_37 = arith.constant 0 : index
    %c0_38 = arith.constant 0 : index
    %40 = vector.load %arg4[%c1_36, %c0_37, %c0_38] : memref<2x168x84xf32, #tpu.memory_space<vmem>>, vector<1x168x84xf32>
    %41 = vector.shape_cast %40 : vector<1x168x84xf32> to vector<168x84xf32>
    %cst_39 = arith.constant dense<0.000000e+00> : vector<28x84xf32>
    %42 = tpu.matmul %36, %41, %cst_39 {dimension_numbers = #tpu.dot_dimension_numbers<[1], [0], [0], [1], [0, 0, 1, 1], [], []>} : vector<28x168xf32>, vector<168x84xf32>, vector<28x84xf32> -> vector<28x84xf32>
    %43 = arith.maximumf %39, %42 : vector<28x84xf32>
    %c0_40 = arith.constant 0 : index
    %c0_41 = arith.constant 0 : index
    %c0_42 = arith.constant 0 : index
    %44 = vector.load %arg5[%c0_40, %c0_41, %c0_42] : memref<2x14x28xf32, #tpu.memory_space<vmem>>, vector<1x14x28xf32>
    %45 = vector.shape_cast %44 : vector<1x14x28xf32> to vector<14x28xf32>
    %cst_43 = arith.constant dense<0.000000e+00> : vector<14x84xf32>
    %46 = tpu.matmul %45, %43, %cst_43 {dimension_numbers = #tpu.dot_dimension_numbers<[1], [0], [0], [1], [0, 0, 1, 1], [], []>} : vector<14x28xf32>, vector<28x84xf32>, vector<14x84xf32> -> vector<14x84xf32>
    %c1_44 = arith.constant 1 : index
    %c0_45 = arith.constant 0 : index
    %c0_46 = arith.constant 0 : index
    %47 = vector.load %arg5[%c1_44, %c0_45, %c0_46] : memref<2x14x28xf32, #tpu.memory_space<vmem>>, vector<1x14x28xf32>
    %48 = vector.shape_cast %47 : vector<1x14x28xf32> to vector<14x28xf32>
    %cst_47 = arith.constant dense<0.000000e+00> : vector<14x84xf32>
    %49 = tpu.matmul %48, %43, %cst_47 {dimension_numbers = #tpu.dot_dimension_numbers<[1], [0], [0], [1], [0, 0, 1, 1], [], []>} : vector<14x28xf32>, vector<28x84xf32>, vector<14x84xf32> -> vector<14x84xf32>
    %50 = arith.maximumf %46, %49 : vector<14x84xf32>
    %51 = vector.extract_strided_slice %50 {offsets = [0, 0], sizes = [10, 84], strides = [1, 1]} : vector<14x84xf32> to vector<10x84xf32>
    %c0_48 = arith.constant 0 : index
    %c0_49 = arith.constant 0 : index
    %c0_50 = arith.constant 0 : index
    %52 = vector.load %arg6[%c0_48, %c0_49, %c0_50] : memref<5x84x160xf32, #tpu.memory_space<vmem>>, vector<1x84x160xf32>
    %53 = vector.shape_cast %52 : vector<1x84x160xf32> to vector<84x160xf32>
    %cst_51 = arith.constant dense<0.000000e+00> : vector<10x160xf32>
    %54 = tpu.matmul %51, %53, %cst_51 {dimension_numbers = #tpu.dot_dimension_numbers<[1], [0], [0], [1], [0, 0, 1, 1], [], []>} : vector<10x84xf32>, vector<84x160xf32>, vector<10x160xf32> -> vector<10x160xf32>
    %55 = vector.extract_strided_slice %50 {offsets = [1, 0], sizes = [10, 84], strides = [1, 1]} : vector<14x84xf32> to vector<10x84xf32>
    %c1_52 = arith.constant 1 : index
    %c0_53 = arith.constant 0 : index
    %c0_54 = arith.constant 0 : index
    %56 = vector.load %arg6[%c1_52, %c0_53, %c0_54] : memref<5x84x160xf32, #tpu.memory_space<vmem>>, vector<1x84x160xf32>
    %57 = vector.shape_cast %56 : vector<1x84x160xf32> to vector<84x160xf32>
    %cst_55 = arith.constant dense<0.000000e+00> : vector<10x160xf32>
    %58 = tpu.matmul %55, %57, %cst_55 {dimension_numbers = #tpu.dot_dimension_numbers<[1], [0], [0], [1], [0, 0, 1, 1], [], []>} : vector<10x84xf32>, vector<84x160xf32>, vector<10x160xf32> -> vector<10x160xf32>
    %59 = arith.addf %54, %58 : vector<10x160xf32>
    %60 = vector.extract_strided_slice %50 {offsets = [2, 0], sizes = [10, 84], strides = [1, 1]} : vector<14x84xf32> to vector<10x84xf32>
    %c2_56 = arith.constant 2 : index
    %c0_57 = arith.constant 0 : index
    %c0_58 = arith.constant 0 : index
    %61 = vector.load %arg6[%c2_56, %c0_57, %c0_58] : memref<5x84x160xf32, #tpu.memory_space<vmem>>, vector<1x84x160xf32>
    %62 = vector.shape_cast %61 : vector<1x84x160xf32> to vector<84x160xf32>
    %cst_59 = arith.constant dense<0.000000e+00> : vector<10x160xf32>
    %63 = tpu.matmul %60, %62, %cst_59 {dimension_numbers = #tpu.dot_dimension_numbers<[1], [0], [0], [1], [0, 0, 1, 1], [], []>} : vector<10x84xf32>, vector<84x160xf32>, vector<10x160xf32> -> vector<10x160xf32>
    %64 = arith.addf %59, %63 : vector<10x160xf32>
    %65 = vector.extract_strided_slice %50 {offsets = [3, 0], sizes = [10, 84], strides = [1, 1]} : vector<14x84xf32> to vector<10x84xf32>
    %c3_60 = arith.constant 3 : index
    %c0_61 = arith.constant 0 : index
    %c0_62 = arith.constant 0 : index
    %66 = vector.load %arg6[%c3_60, %c0_61, %c0_62] : memref<5x84x160xf32, #tpu.memory_space<vmem>>, vector<1x84x160xf32>
    %67 = vector.shape_cast %66 : vector<1x84x160xf32> to vector<84x160xf32>
    %cst_63 = arith.constant dense<0.000000e+00> : vector<10x160xf32>
    %68 = tpu.matmul %65, %67, %cst_63 {dimension_numbers = #tpu.dot_dimension_numbers<[1], [0], [0], [1], [0, 0, 1, 1], [], []>} : vector<10x84xf32>, vector<84x160xf32>, vector<10x160xf32> -> vector<10x160xf32>
    %69 = arith.addf %64, %68 : vector<10x160xf32>
    %70 = vector.extract_strided_slice %50 {offsets = [4, 0], sizes = [10, 84], strides = [1, 1]} : vector<14x84xf32> to vector<10x84xf32>
    %c4_64 = arith.constant 4 : index
    %c0_65 = arith.constant 0 : index
    %c0_66 = arith.constant 0 : index
    %71 = vector.load %arg6[%c4_64, %c0_65, %c0_66] : memref<5x84x160xf32, #tpu.memory_space<vmem>>, vector<1x84x160xf32>
    %72 = vector.shape_cast %71 : vector<1x84x160xf32> to vector<84x160xf32>
    %cst_67 = arith.constant dense<0.000000e+00> : vector<10x160xf32>
    %73 = tpu.matmul %70, %72, %cst_67 {dimension_numbers = #tpu.dot_dimension_numbers<[1], [0], [0], [1], [0, 0, 1, 1], [], []>} : vector<10x84xf32>, vector<84x160xf32>, vector<10x160xf32> -> vector<10x160xf32>
    %74 = arith.addf %69, %73 : vector<10x160xf32>
    %75 = vector.broadcast %1 : vector<1x160xf32> to vector<10x160xf32>
    %76 = arith.addf %74, %75 : vector<10x160xf32>
    %cst_68 = arith.constant 0.000000e+00 : f32
    %77 = vector.broadcast %cst_68 : f32 to vector<10x160xf32>
    %78 = arith.maximumf %76, %77 : vector<10x160xf32>
    %c0_69 = arith.constant 0 : index
    %c0_70 = arith.constant 0 : index
    %c0_71 = arith.constant 0 : index
    %79 = vector.load %arg8[%c0_69, %c0_70, %c0_71] : memref<2x160x80xf32, #tpu.memory_space<vmem>>, vector<1x160x80xf32>
    %80 = vector.shape_cast %79 : vector<1x160x80xf32> to vector<160x80xf32>
    %cst_72 = arith.constant dense<0.000000e+00> : vector<10x80xf32>
    %81 = tpu.matmul %78, %80, %cst_72 {dimension_numbers = #tpu.dot_dimension_numbers<[1], [0], [0], [1], [0, 0, 1, 1], [], []>} : vector<10x160xf32>, vector<160x80xf32>, vector<10x80xf32> -> vector<10x80xf32>
    %c1_73 = arith.constant 1 : index
    %c0_74 = arith.constant 0 : index
    %c0_75 = arith.constant 0 : index
    %82 = vector.load %arg8[%c1_73, %c0_74, %c0_75] : memref<2x160x80xf32, #tpu.memory_space<vmem>>, vector<1x160x80xf32>
    %83 = vector.shape_cast %82 : vector<1x160x80xf32> to vector<160x80xf32>
    %cst_76 = arith.constant dense<0.000000e+00> : vector<10x80xf32>
    %84 = tpu.matmul %78, %83, %cst_76 {dimension_numbers = #tpu.dot_dimension_numbers<[1], [0], [0], [1], [0, 0, 1, 1], [], []>} : vector<10x160xf32>, vector<160x80xf32>, vector<10x80xf32> -> vector<10x80xf32>
    %85 = arith.maximumf %81, %84 : vector<10x80xf32>
    %c0_77 = arith.constant 0 : index
    %c0_78 = arith.constant 0 : index
    %c0_79 = arith.constant 0 : index
    %86 = vector.load %arg9[%c0_77, %c0_78, %c0_79] : memref<2x5x10xf32, #tpu.memory_space<vmem>>, vector<1x5x10xf32>
    %87 = vector.shape_cast %86 : vector<1x5x10xf32> to vector<5x10xf32>
    %cst_80 = arith.constant dense<0.000000e+00> : vector<5x80xf32>
    %88 = tpu.matmul %87, %85, %cst_80 {dimension_numbers = #tpu.dot_dimension_numbers<[1], [0], [0], [1], [0, 0, 1, 1], [], []>} : vector<5x10xf32>, vector<10x80xf32>, vector<5x80xf32> -> vector<5x80xf32>
    %c1_81 = arith.constant 1 : index
    %c0_82 = arith.constant 0 : index
    %c0_83 = arith.constant 0 : index
    %89 = vector.load %arg9[%c1_81, %c0_82, %c0_83] : memref<2x5x10xf32, #tpu.memory_space<vmem>>, vector<1x5x10xf32>
    %90 = vector.shape_cast %89 : vector<1x5x10xf32> to vector<5x10xf32>
    %cst_84 = arith.constant dense<0.000000e+00> : vector<5x80xf32>
    %91 = tpu.matmul %90, %85, %cst_84 {dimension_numbers = #tpu.dot_dimension_numbers<[1], [0], [0], [1], [0, 0, 1, 1], [], []>} : vector<5x10xf32>, vector<10x80xf32>, vector<5x80xf32> -> vector<5x80xf32>
    %92 = arith.maximumf %88, %91 : vector<5x80xf32>
    %93 = vector.extract_strided_slice %92 {offsets = [0, 0], sizes = [1, 80], strides = [1, 1]} : vector<5x80xf32> to vector<1x80xf32>
    %c0_85 = arith.constant 0 : index
    %c0_86 = arith.constant 0 : index
    %c0_87 = arith.constant 0 : index
    %94 = vector.load %arg10[%c0_85, %c0_86, %c0_87] : memref<5x80x120xf32, #tpu.memory_space<vmem>>, vector<1x80x120xf32>
    %95 = vector.shape_cast %94 : vector<1x80x120xf32> to vector<80x120xf32>
    %cst_88 = arith.constant dense<0.000000e+00> : vector<1x120xf32>
    %96 = tpu.matmul %93, %95, %cst_88 {dimension_numbers = #tpu.dot_dimension_numbers<[1], [0], [0], [1], [0, 0, 1, 1], [], []>} : vector<1x80xf32>, vector<80x120xf32>, vector<1x120xf32> -> vector<1x120xf32>
    %97 = vector.extract_strided_slice %92 {offsets = [1, 0], sizes = [1, 80], strides = [1, 1]} : vector<5x80xf32> to vector<1x80xf32>
    %c1_89 = arith.constant 1 : index
    %c0_90 = arith.constant 0 : index
    %c0_91 = arith.constant 0 : index
    %98 = vector.load %arg10[%c1_89, %c0_90, %c0_91] : memref<5x80x120xf32, #tpu.memory_space<vmem>>, vector<1x80x120xf32>
    %99 = vector.shape_cast %98 : vector<1x80x120xf32> to vector<80x120xf32>
    %cst_92 = arith.constant dense<0.000000e+00> : vector<1x120xf32>
    %100 = tpu.matmul %97, %99, %cst_92 {dimension_numbers = #tpu.dot_dimension_numbers<[1], [0], [0], [1], [0, 0, 1, 1], [], []>} : vector<1x80xf32>, vector<80x120xf32>, vector<1x120xf32> -> vector<1x120xf32>
    %101 = arith.addf %96, %100 : vector<1x120xf32>
    %102 = vector.extract_strided_slice %92 {offsets = [2, 0], sizes = [1, 80], strides = [1, 1]} : vector<5x80xf32> to vector<1x80xf32>
    %c2_93 = arith.constant 2 : index
    %c0_94 = arith.constant 0 : index
    %c0_95 = arith.constant 0 : index
    %103 = vector.load %arg10[%c2_93, %c0_94, %c0_95] : memref<5x80x120xf32, #tpu.memory_space<vmem>>, vector<1x80x120xf32>
    %104 = vector.shape_cast %103 : vector<1x80x120xf32> to vector<80x120xf32>
    %cst_96 = arith.constant dense<0.000000e+00> : vector<1x120xf32>
    %105 = tpu.matmul %102, %104, %cst_96 {dimension_numbers = #tpu.dot_dimension_numbers<[1], [0], [0], [1], [0, 0, 1, 1], [], []>} : vector<1x80xf32>, vector<80x120xf32>, vector<1x120xf32> -> vector<1x120xf32>
    %106 = arith.addf %101, %105 : vector<1x120xf32>
    %107 = vector.extract_strided_slice %92 {offsets = [3, 0], sizes = [1, 80], strides = [1, 1]} : vector<5x80xf32> to vector<1x80xf32>
    %c3_97 = arith.constant 3 : index
    %c0_98 = arith.constant 0 : index
    %c0_99 = arith.constant 0 : index
    %108 = vector.load %arg10[%c3_97, %c0_98, %c0_99] : memref<5x80x120xf32, #tpu.memory_space<vmem>>, vector<1x80x120xf32>
    %109 = vector.shape_cast %108 : vector<1x80x120xf32> to vector<80x120xf32>
    %cst_100 = arith.constant dense<0.000000e+00> : vector<1x120xf32>
    %110 = tpu.matmul %107, %109, %cst_100 {dimension_numbers = #tpu.dot_dimension_numbers<[1], [0], [0], [1], [0, 0, 1, 1], [], []>} : vector<1x80xf32>, vector<80x120xf32>, vector<1x120xf32> -> vector<1x120xf32>
    %111 = arith.addf %106, %110 : vector<1x120xf32>
    %112 = vector.extract_strided_slice %92 {offsets = [4, 0], sizes = [1, 80], strides = [1, 1]} : vector<5x80xf32> to vector<1x80xf32>
    %c4_101 = arith.constant 4 : index
    %c0_102 = arith.constant 0 : index
    %c0_103 = arith.constant 0 : index
    %113 = vector.load %arg10[%c4_101, %c0_102, %c0_103] : memref<5x80x120xf32, #tpu.memory_space<vmem>>, vector<1x80x120xf32>
    %114 = vector.shape_cast %113 : vector<1x80x120xf32> to vector<80x120xf32>
    %cst_104 = arith.constant dense<0.000000e+00> : vector<1x120xf32>
    %115 = tpu.matmul %112, %114, %cst_104 {dimension_numbers = #tpu.dot_dimension_numbers<[1], [0], [0], [1], [0, 0, 1, 1], [], []>} : vector<1x80xf32>, vector<80x120xf32>, vector<1x120xf32> -> vector<1x120xf32>
    %116 = arith.addf %111, %115 : vector<1x120xf32>
    %117 = arith.addf %116, %2 : vector<1x120xf32>
    %cst_105 = arith.constant 0.000000e+00 : f32
    %118 = vector.broadcast %cst_105 : f32 to vector<1x120xf32>
    %119 = arith.maximumf %117, %118 : vector<1x120xf32>
    %cst_106 = arith.constant dense<0.000000e+00> : vector<1x84xf32>
    %120 = tpu.matmul %119, %3, %cst_106 {dimension_numbers = #tpu.dot_dimension_numbers<[1], [0], [0], [1], [0, 0, 1, 1], [], []>} : vector<1x120xf32>, vector<120x84xf32>, vector<1x84xf32> -> vector<1x84xf32>
    %121 = arith.addf %120, %4 : vector<1x84xf32>
    %cst_107 = arith.constant 0.000000e+00 : f32
    %122 = vector.broadcast %cst_107 : f32 to vector<1x84xf32>
    %123 = arith.maximumf %121, %122 : vector<1x84xf32>
    %cst_108 = arith.constant dense<0.000000e+00> : vector<1x10xf32>
    %124 = tpu.matmul %123, %5, %cst_108 {dimension_numbers = #tpu.dot_dimension_numbers<[1], [0], [0], [1], [0, 0, 1, 1], [], []>} : vector<1x84xf32>, vector<84x10xf32>, vector<1x10xf32> -> vector<1x10xf32>
    %125 = arith.addf %124, %6 : vector<1x10xf32>
    %cst_109 = arith.constant dense<0xFF800000> : vector<1xf32>
    %126 = vector.multi_reduction <maximumf>, %125, %cst_109 [1] : vector<1x10xf32> to vector<1xf32>
    %127 = vector.shape_cast %126 : vector<1xf32> to vector<1x1xf32>
    %128 = vector.broadcast %127 : vector<1x1xf32> to vector<1x10xf32>
    %129 = arith.subf %125, %128 : vector<1x10xf32>
    %130 = math.exp %129 : vector<1x10xf32>
    %cst_110 = arith.constant dense<0.000000e+00> : vector<1xf32>
    %131 = vector.multi_reduction <add>, %130, %cst_110 [1] : vector<1x10xf32> to vector<1xf32>
    %132 = vector.shape_cast %131 : vector<1xf32> to vector<1x1xf32>
    %133 = tpu.reciprocal %132 : vector<1x1xf32> -> vector<1x1xf32>
    %134 = vector.broadcast %133 : vector<1x1xf32> to vector<1x10xf32>
    %135 = arith.mulf %130, %134 : vector<1x10xf32>
    %c0_111 = arith.constant 0 : index
    %c0_112 = arith.constant 0 : index
    %c0_113 = arith.constant 0 : index
    %136 = vector.load %arg16[%c0_111, %c0_112, %c0_113] : memref<2x1x10xf32, #tpu.memory_space<vmem>>, vector<1x1x10xf32>
    %137 = vector.shape_cast %136 : vector<1x1x10xf32> to vector<1x10xf32>
    %138 = vector.shape_cast %135 : vector<1x10xf32> to vector<1x1x10xf32>
    tpu.vector_store %arg16[%c0_111, %c0_112, %c0_113], %138 {strides = array<i32>} : memref<2x1x10xf32, #tpu.memory_space<vmem>>, vector<1x1x10xf32>,
    %c1_114 = arith.constant 1 : index
    %c0_115 = arith.constant 0 : index
    %c0_116 = arith.constant 0 : index
    %139 = vector.load %arg1[%c1_114, %c0_115, %c0_116] : memref<2x32x32xf32, #tpu.memory_space<vmem>>, vector<1x32x32xf32>
    %140 = vector.shape_cast %139 : vector<1x32x32xf32> to vector<32x32xf32>
    %141 = vector.extract_strided_slice %140 {offsets = [0, 0], sizes = [28, 32], strides = [1, 1]} : vector<32x32xf32> to vector<28x32xf32>
    %c0_117 = arith.constant 0 : index
    %c0_118 = arith.constant 0 : index
    %c0_119 = arith.constant 0 : index
    %142 = vector.load %arg2[%c0_117, %c0_118, %c0_119] : memref<5x32x168xf32, #tpu.memory_space<vmem>>, vector<1x32x168xf32>
    %143 = vector.shape_cast %142 : vector<1x32x168xf32> to vector<32x168xf32>
    %cst_120 = arith.constant dense<0.000000e+00> : vector<28x168xf32>
    %144 = tpu.matmul %141, %143, %cst_120 {dimension_numbers = #tpu.dot_dimension_numbers<[1], [0], [0], [1], [0, 0, 1, 1], [], []>} : vector<28x32xf32>, vector<32x168xf32>, vector<28x168xf32> -> vector<28x168xf32>
    %145 = vector.extract_strided_slice %140 {offsets = [1, 0], sizes = [28, 32], strides = [1, 1]} : vector<32x32xf32> to vector<28x32xf32>
    %c1_121 = arith.constant 1 : index
    %c0_122 = arith.constant 0 : index
    %c0_123 = arith.constant 0 : index
    %146 = vector.load %arg2[%c1_121, %c0_122, %c0_123] : memref<5x32x168xf32, #tpu.memory_space<vmem>>, vector<1x32x168xf32>
    %147 = vector.shape_cast %146 : vector<1x32x168xf32> to vector<32x168xf32>
    %cst_124 = arith.constant dense<0.000000e+00> : vector<28x168xf32>
    %148 = tpu.matmul %145, %147, %cst_124 {dimension_numbers = #tpu.dot_dimension_numbers<[1], [0], [0], [1], [0, 0, 1, 1], [], []>} : vector<28x32xf32>, vector<32x168xf32>, vector<28x168xf32> -> vector<28x168xf32>
    %149 = arith.addf %144, %148 : vector<28x168xf32>
    %150 = vector.extract_strided_slice %140 {offsets = [2, 0], sizes = [28, 32], strides = [1, 1]} : vector<32x32xf32> to vector<28x32xf32>
    %c2_125 = arith.constant 2 : index
    %c0_126 = arith.constant 0 : index
    %c0_127 = arith.constant 0 : index
    %151 = vector.load %arg2[%c2_125, %c0_126, %c0_127] : memref<5x32x168xf32, #tpu.memory_space<vmem>>, vector<1x32x168xf32>
    %152 = vector.shape_cast %151 : vector<1x32x168xf32> to vector<32x168xf32>
    %cst_128 = arith.constant dense<0.000000e+00> : vector<28x168xf32>
    %153 = tpu.matmul %150, %152, %cst_128 {dimension_numbers = #tpu.dot_dimension_numbers<[1], [0], [0], [1], [0, 0, 1, 1], [], []>} : vector<28x32xf32>, vector<32x168xf32>, vector<28x168xf32> -> vector<28x168xf32>
    %154 = arith.addf %149, %153 : vector<28x168xf32>
    %155 = vector.extract_strided_slice %140 {offsets = [3, 0], sizes = [28, 32], strides = [1, 1]} : vector<32x32xf32> to vector<28x32xf32>
    %c3_129 = arith.constant 3 : index
    %c0_130 = arith.constant 0 : index
    %c0_131 = arith.constant 0 : index
    %156 = vector.load %arg2[%c3_129, %c0_130, %c0_131] : memref<5x32x168xf32, #tpu.memory_space<vmem>>, vector<1x32x168xf32>
    %157 = vector.shape_cast %156 : vector<1x32x168xf32> to vector<32x168xf32>
    %cst_132 = arith.constant dense<0.000000e+00> : vector<28x168xf32>
    %158 = tpu.matmul %155, %157, %cst_132 {dimension_numbers = #tpu.dot_dimension_numbers<[1], [0], [0], [1], [0, 0, 1, 1], [], []>} : vector<28x32xf32>, vector<32x168xf32>, vector<28x168xf32> -> vector<28x168xf32>
    %159 = arith.addf %154, %158 : vector<28x168xf32>
    %160 = vector.extract_strided_slice %140 {offsets = [4, 0], sizes = [28, 32], strides = [1, 1]} : vector<32x32xf32> to vector<28x32xf32>
    %c4_133 = arith.constant 4 : index
    %c0_134 = arith.constant 0 : index
    %c0_135 = arith.constant 0 : index
    %161 = vector.load %arg2[%c4_133, %c0_134, %c0_135] : memref<5x32x168xf32, #tpu.memory_space<vmem>>, vector<1x32x168xf32>
    %162 = vector.shape_cast %161 : vector<1x32x168xf32> to vector<32x168xf32>
    %cst_136 = arith.constant dense<0.000000e+00> : vector<28x168xf32>
    %163 = tpu.matmul %160, %162, %cst_136 {dimension_numbers = #tpu.dot_dimension_numbers<[1], [0], [0], [1], [0, 0, 1, 1], [], []>} : vector<28x32xf32>, vector<32x168xf32>, vector<28x168xf32> -> vector<28x168xf32>
    %164 = arith.addf %159, %163 : vector<28x168xf32>
    %165 = vector.broadcast %0 : vector<1x168xf32> to vector<28x168xf32>
    %166 = arith.addf %164, %165 : vector<28x168xf32>
    %cst_137 = arith.constant 0.000000e+00 : f32
    %167 = vector.broadcast %cst_137 : f32 to vector<28x168xf32>
    %168 = arith.maximumf %166, %167 : vector<28x168xf32>
    %c0_138 = arith.constant 0 : index
    %c0_139 = arith.constant 0 : index
    %c0_140 = arith.constant 0 : index
    %169 = vector.load %arg4[%c0_138, %c0_139, %c0_140] : memref<2x168x84xf32, #tpu.memory_space<vmem>>, vector<1x168x84xf32>
    %170 = vector.shape_cast %169 : vector<1x168x84xf32> to vector<168x84xf32>
    %cst_141 = arith.constant dense<0.000000e+00> : vector<28x84xf32>
    %171 = tpu.matmul %168, %170, %cst_141 {dimension_numbers = #tpu.dot_dimension_numbers<[1], [0], [0], [1], [0, 0, 1, 1], [], []>} : vector<28x168xf32>, vector<168x84xf32>, vector<28x84xf32> -> vector<28x84xf32>
    %c1_142 = arith.constant 1 : index
    %c0_143 = arith.constant 0 : index
    %c0_144 = arith.constant 0 : index
    %172 = vector.load %arg4[%c1_142, %c0_143, %c0_144] : memref<2x168x84xf32, #tpu.memory_space<vmem>>, vector<1x168x84xf32>
    %173 = vector.shape_cast %172 : vector<1x168x84xf32> to vector<168x84xf32>
    %cst_145 = arith.constant dense<0.000000e+00> : vector<28x84xf32>
    %174 = tpu.matmul %168, %173, %cst_145 {dimension_numbers = #tpu.dot_dimension_numbers<[1], [0], [0], [1], [0, 0, 1, 1], [], []>} : vector<28x168xf32>, vector<168x84xf32>, vector<28x84xf32> -> vector<28x84xf32>
    %175 = arith.maximumf %171, %174 : vector<28x84xf32>
    %c0_146 = arith.constant 0 : index
    %c0_147 = arith.constant 0 : index
    %c0_148 = arith.constant 0 : index
    %176 = vector.load %arg5[%c0_146, %c0_147, %c0_148] : memref<2x14x28xf32, #tpu.memory_space<vmem>>, vector<1x14x28xf32>
    %177 = vector.shape_cast %176 : vector<1x14x28xf32> to vector<14x28xf32>
    %cst_149 = arith.constant dense<0.000000e+00> : vector<14x84xf32>
    %178 = tpu.matmul %177, %175, %cst_149 {dimension_numbers = #tpu.dot_dimension_numbers<[1], [0], [0], [1], [0, 0, 1, 1], [], []>} : vector<14x28xf32>, vector<28x84xf32>, vector<14x84xf32> -> vector<14x84xf32>
    %c1_150 = arith.constant 1 : index
    %c0_151 = arith.constant 0 : index
    %c0_152 = arith.constant 0 : index
    %179 = vector.load %arg5[%c1_150, %c0_151, %c0_152] : memref<2x14x28xf32, #tpu.memory_space<vmem>>, vector<1x14x28xf32>
    %180 = vector.shape_cast %179 : vector<1x14x28xf32> to vector<14x28xf32>
    %cst_153 = arith.constant dense<0.000000e+00> : vector<14x84xf32>
    %181 = tpu.matmul %180, %175, %cst_153 {dimension_numbers = #tpu.dot_dimension_numbers<[1], [0], [0], [1], [0, 0, 1, 1], [], []>} : vector<14x28xf32>, vector<28x84xf32>, vector<14x84xf32> -> vector<14x84xf32>
    %182 = arith.maximumf %178, %181 : vector<14x84xf32>
    %183 = vector.extract_strided_slice %182 {offsets = [0, 0], sizes = [10, 84], strides = [1, 1]} : vector<14x84xf32> to vector<10x84xf32>
    %c0_154 = arith.constant 0 : index
    %c0_155 = arith.constant 0 : index
    %c0_156 = arith.constant 0 : index
    %184 = vector.load %arg6[%c0_154, %c0_155, %c0_156] : memref<5x84x160xf32, #tpu.memory_space<vmem>>, vector<1x84x160xf32>
    %185 = vector.shape_cast %184 : vector<1x84x160xf32> to vector<84x160xf32>
    %cst_157 = arith.constant dense<0.000000e+00> : vector<10x160xf32>
    %186 = tpu.matmul %183, %185, %cst_157 {dimension_numbers = #tpu.dot_dimension_numbers<[1], [0], [0], [1], [0, 0, 1, 1], [], []>} : vector<10x84xf32>, vector<84x160xf32>, vector<10x160xf32> -> vector<10x160xf32>
    %187 = vector.extract_strided_slice %182 {offsets = [1, 0], sizes = [10, 84], strides = [1, 1]} : vector<14x84xf32> to vector<10x84xf32>
    %c1_158 = arith.constant 1 : index
    %c0_159 = arith.constant 0 : index
    %c0_160 = arith.constant 0 : index
    %188 = vector.load %arg6[%c1_158, %c0_159, %c0_160] : memref<5x84x160xf32, #tpu.memory_space<vmem>>, vector<1x84x160xf32>
    %189 = vector.shape_cast %188 : vector<1x84x160xf32> to vector<84x160xf32>
    %cst_161 = arith.constant dense<0.000000e+00> : vector<10x160xf32>
    %190 = tpu.matmul %187, %189, %cst_161 {dimension_numbers = #tpu.dot_dimension_numbers<[1], [0], [0], [1], [0, 0, 1, 1], [], []>} : vector<10x84xf32>, vector<84x160xf32>, vector<10x160xf32> -> vector<10x160xf32>
    %191 = arith.addf %186, %190 : vector<10x160xf32>
    %192 = vector.extract_strided_slice %182 {offsets = [2, 0], sizes = [10, 84], strides = [1, 1]} : vector<14x84xf32> to vector<10x84xf32>
    %c2_162 = arith.constant 2 : index
    %c0_163 = arith.constant 0 : index
    %c0_164 = arith.constant 0 : index
    %193 = vector.load %arg6[%c2_162, %c0_163, %c0_164] : memref<5x84x160xf32, #tpu.memory_space<vmem>>, vector<1x84x160xf32>
    %194 = vector.shape_cast %193 : vector<1x84x160xf32> to vector<84x160xf32>
    %cst_165 = arith.constant dense<0.000000e+00> : vector<10x160xf32>
    %195 = tpu.matmul %192, %194, %cst_165 {dimension_numbers = #tpu.dot_dimension_numbers<[1], [0], [0], [1], [0, 0, 1, 1], [], []>} : vector<10x84xf32>, vector<84x160xf32>, vector<10x160xf32> -> vector<10x160xf32>
    %196 = arith.addf %191, %195 : vector<10x160xf32>
    %197 = vector.extract_strided_slice %182 {offsets = [3, 0], sizes = [10, 84], strides = [1, 1]} : vector<14x84xf32> to vector<10x84xf32>
    %c3_166 = arith.constant 3 : index
    %c0_167 = arith.constant 0 : index
    %c0_168 = arith.constant 0 : index
    %198 = vector.load %arg6[%c3_166, %c0_167, %c0_168] : memref<5x84x160xf32, #tpu.memory_space<vmem>>, vector<1x84x160xf32>
    %199 = vector.shape_cast %198 : vector<1x84x160xf32> to vector<84x160xf32>
    %cst_169 = arith.constant dense<0.000000e+00> : vector<10x160xf32>
    %200 = tpu.matmul %197, %199, %cst_169 {dimension_numbers = #tpu.dot_dimension_numbers<[1], [0], [0], [1], [0, 0, 1, 1], [], []>} : vector<10x84xf32>, vector<84x160xf32>, vector<10x160xf32> -> vector<10x160xf32>
    %201 = arith.addf %196, %200 : vector<10x160xf32>
    %202 = vector.extract_strided_slice %182 {offsets = [4, 0], sizes = [10, 84], strides = [1, 1]} : vector<14x84xf32> to vector<10x84xf32>
    %c4_170 = arith.constant 4 : index
    %c0_171 = arith.constant 0 : index
    %c0_172 = arith.constant 0 : index
    %203 = vector.load %arg6[%c4_170, %c0_171, %c0_172] : memref<5x84x160xf32, #tpu.memory_space<vmem>>, vector<1x84x160xf32>
    %204 = vector.shape_cast %203 : vector<1x84x160xf32> to vector<84x160xf32>
    %cst_173 = arith.constant dense<0.000000e+00> : vector<10x160xf32>
    %205 = tpu.matmul %202, %204, %cst_173 {dimension_numbers = #tpu.dot_dimension_numbers<[1], [0], [0], [1], [0, 0, 1, 1], [], []>} : vector<10x84xf32>, vector<84x160xf32>, vector<10x160xf32> -> vector<10x160xf32>
    %206 = arith.addf %201, %205 : vector<10x160xf32>
    %207 = vector.broadcast %1 : vector<1x160xf32> to vector<10x160xf32>
    %208 = arith.addf %206, %207 : vector<10x160xf32>
    %cst_174 = arith.constant 0.000000e+00 : f32
    %209 = vector.broadcast %cst_174 : f32 to vector<10x160xf32>
    %210 = arith.maximumf %208, %209 : vector<10x160xf32>
    %c0_175 = arith.constant 0 : index
    %c0_176 = arith.constant 0 : index
    %c0_177 = arith.constant 0 : index
    %211 = vector.load %arg8[%c0_175, %c0_176, %c0_177] : memref<2x160x80xf32, #tpu.memory_space<vmem>>, vector<1x160x80xf32>
    %212 = vector.shape_cast %211 : vector<1x160x80xf32> to vector<160x80xf32>
    %cst_178 = arith.constant dense<0.000000e+00> : vector<10x80xf32>
    %213 = tpu.matmul %210, %212, %cst_178 {dimension_numbers = #tpu.dot_dimension_numbers<[1], [0], [0], [1], [0, 0, 1, 1], [], []>} : vector<10x160xf32>, vector<160x80xf32>, vector<10x80xf32> -> vector<10x80xf32>
    %c1_179 = arith.constant 1 : index
    %c0_180 = arith.constant 0 : index
    %c0_181 = arith.constant 0 : index
    %214 = vector.load %arg8[%c1_179, %c0_180, %c0_181] : memref<2x160x80xf32, #tpu.memory_space<vmem>>, vector<1x160x80xf32>
    %215 = vector.shape_cast %214 : vector<1x160x80xf32> to vector<160x80xf32>
    %cst_182 = arith.constant dense<0.000000e+00> : vector<10x80xf32>
    %216 = tpu.matmul %210, %215, %cst_182 {dimension_numbers = #tpu.dot_dimension_numbers<[1], [0], [0], [1], [0, 0, 1, 1], [], []>} : vector<10x160xf32>, vector<160x80xf32>, vector<10x80xf32> -> vector<10x80xf32>
    %217 = arith.maximumf %213, %216 : vector<10x80xf32>
    %c0_183 = arith.constant 0 : index
    %c0_184 = arith.constant 0 : index
    %c0_185 = arith.constant 0 : index
    %218 = vector.load %arg9[%c0_183, %c0_184, %c0_185] : memref<2x5x10xf32, #tpu.memory_space<vmem>>, vector<1x5x10xf32>
    %219 = vector.shape_cast %218 : vector<1x5x10xf32> to vector<5x10xf32>
    %cst_186 = arith.constant dense<0.000000e+00> : vector<5x80xf32>
    %220 = tpu.matmul %219, %217, %cst_186 {dimension_numbers = #tpu.dot_dimension_numbers<[1], [0], [0], [1], [0, 0, 1, 1], [], []>} : vector<5x10xf32>, vector<10x80xf32>, vector<5x80xf32> -> vector<5x80xf32>
    %c1_187 = arith.constant 1 : index
    %c0_188 = arith.constant 0 : index
    %c0_189 = arith.constant 0 : index
    %221 = vector.load %arg9[%c1_187, %c0_188, %c0_189] : memref<2x5x10xf32, #tpu.memory_space<vmem>>, vector<1x5x10xf32>
    %222 = vector.shape_cast %221 : vector<1x5x10xf32> to vector<5x10xf32>
    %cst_190 = arith.constant dense<0.000000e+00> : vector<5x80xf32>
    %223 = tpu.matmul %222, %217, %cst_190 {dimension_numbers = #tpu.dot_dimension_numbers<[1], [0], [0], [1], [0, 0, 1, 1], [], []>} : vector<5x10xf32>, vector<10x80xf32>, vector<5x80xf32> -> vector<5x80xf32>
    %224 = arith.maximumf %220, %223 : vector<5x80xf32>
    %225 = vector.extract_strided_slice %224 {offsets = [0, 0], sizes = [1, 80], strides = [1, 1]} : vector<5x80xf32> to vector<1x80xf32>
    %c0_191 = arith.constant 0 : index
    %c0_192 = arith.constant 0 : index
    %c0_193 = arith.constant 0 : index
    %226 = vector.load %arg10[%c0_191, %c0_192, %c0_193] : memref<5x80x120xf32, #tpu.memory_space<vmem>>, vector<1x80x120xf32>
    %227 = vector.shape_cast %226 : vector<1x80x120xf32> to vector<80x120xf32>
    %cst_194 = arith.constant dense<0.000000e+00> : vector<1x120xf32>
    %228 = tpu.matmul %225, %227, %cst_194 {dimension_numbers = #tpu.dot_dimension_numbers<[1], [0], [0], [1], [0, 0, 1, 1], [], []>} : vector<1x80xf32>, vector<80x120xf32>, vector<1x120xf32> -> vector<1x120xf32>
    %229 = vector.extract_strided_slice %224 {offsets = [1, 0], sizes = [1, 80], strides = [1, 1]} : vector<5x80xf32> to vector<1x80xf32>
    %c1_195 = arith.constant 1 : index
    %c0_196 = arith.constant 0 : index
    %c0_197 = arith.constant 0 : index
    %230 = vector.load %arg10[%c1_195, %c0_196, %c0_197] : memref<5x80x120xf32, #tpu.memory_space<vmem>>, vector<1x80x120xf32>
    %231 = vector.shape_cast %230 : vector<1x80x120xf32> to vector<80x120xf32>
    %cst_198 = arith.constant dense<0.000000e+00> : vector<1x120xf32>
    %232 = tpu.matmul %229, %231, %cst_198 {dimension_numbers = #tpu.dot_dimension_numbers<[1], [0], [0], [1], [0, 0, 1, 1], [], []>} : vector<1x80xf32>, vector<80x120xf32>, vector<1x120xf32> -> vector<1x120xf32>
    %233 = arith.addf %228, %232 : vector<1x120xf32>
    %234 = vector.extract_strided_slice %224 {offsets = [2, 0], sizes = [1, 80], strides = [1, 1]} : vector<5x80xf32> to vector<1x80xf32>
    %c2_199 = arith.constant 2 : index
    %c0_200 = arith.constant 0 : index
    %c0_201 = arith.constant 0 : index
    %235 = vector.load %arg10[%c2_199, %c0_200, %c0_201] : memref<5x80x120xf32, #tpu.memory_space<vmem>>, vector<1x80x120xf32>
    %236 = vector.shape_cast %235 : vector<1x80x120xf32> to vector<80x120xf32>
    %cst_202 = arith.constant dense<0.000000e+00> : vector<1x120xf32>
    %237 = tpu.matmul %234, %236, %cst_202 {dimension_numbers = #tpu.dot_dimension_numbers<[1], [0], [0], [1], [0, 0, 1, 1], [], []>} : vector<1x80xf32>, vector<80x120xf32>, vector<1x120xf32> -> vector<1x120xf32>
    %238 = arith.addf %233, %237 : vector<1x120xf32>
    %239 = vector.extract_strided_slice %224 {offsets = [3, 0], sizes = [1, 80], strides = [1, 1]} : vector<5x80xf32> to vector<1x80xf32>
    %c3_203 = arith.constant 3 : index
    %c0_204 = arith.constant 0 : index
    %c0_205 = arith.constant 0 : index
    %240 = vector.load %arg10[%c3_203, %c0_204, %c0_205] : memref<5x80x120xf32, #tpu.memory_space<vmem>>, vector<1x80x120xf32>
    %241 = vector.shape_cast %240 : vector<1x80x120xf32> to vector<80x120xf32>
    %cst_206 = arith.constant dense<0.000000e+00> : vector<1x120xf32>
    %242 = tpu.matmul %239, %241, %cst_206 {dimension_numbers = #tpu.dot_dimension_numbers<[1], [0], [0], [1], [0, 0, 1, 1], [], []>} : vector<1x80xf32>, vector<80x120xf32>, vector<1x120xf32> -> vector<1x120xf32>
    %243 = arith.addf %238, %242 : vector<1x120xf32>
    %244 = vector.extract_strided_slice %224 {offsets = [4, 0], sizes = [1, 80], strides = [1, 1]} : vector<5x80xf32> to vector<1x80xf32>
    %c4_207 = arith.constant 4 : index
    %c0_208 = arith.constant 0 : index
    %c0_209 = arith.constant 0 : index
    %245 = vector.load %arg10[%c4_207, %c0_208, %c0_209] : memref<5x80x120xf32, #tpu.memory_space<vmem>>, vector<1x80x120xf32>
    %246 = vector.shape_cast %245 : vector<1x80x120xf32> to vector<80x120xf32>
    %cst_210 = arith.constant dense<0.000000e+00> : vector<1x120xf32>
    %247 = tpu.matmul %244, %246, %cst_210 {dimension_numbers = #tpu.dot_dimension_numbers<[1], [0], [0], [1], [0, 0, 1, 1], [], []>} : vector<1x80xf32>, vector<80x120xf32>, vector<1x120xf32> -> vector<1x120xf32>
    %248 = arith.addf %243, %247 : vector<1x120xf32>
    %249 = arith.addf %248, %2 : vector<1x120xf32>
    %cst_211 = arith.constant 0.000000e+00 : f32
    %250 = vector.broadcast %cst_211 : f32 to vector<1x120xf32>
    %251 = arith.maximumf %249, %250 : vector<1x120xf32>
    %cst_212 = arith.constant dense<0.000000e+00> : vector<1x84xf32>
    %252 = tpu.matmul %251, %3, %cst_212 {dimension_numbers = #tpu.dot_dimension_numbers<[1], [0], [0], [1], [0, 0, 1, 1], [], []>} : vector<1x120xf32>, vector<120x84xf32>, vector<1x84xf32> -> vector<1x84xf32>
    %253 = arith.addf %252, %4 : vector<1x84xf32>
    %cst_213 = arith.constant 0.000000e+00 : f32
    %254 = vector.broadcast %cst_213 : f32 to vector<1x84xf32>
    %255 = arith.maximumf %253, %254 : vector<1x84xf32>
    %cst_214 = arith.constant dense<0.000000e+00> : vector<1x10xf32>
    %256 = tpu.matmul %255, %5, %cst_214 {dimension_numbers = #tpu.dot_dimension_numbers<[1], [0], [0], [1], [0, 0, 1, 1], [], []>} : vector<1x84xf32>, vector<84x10xf32>, vector<1x10xf32> -> vector<1x10xf32>
    %257 = arith.addf %256, %6 : vector<1x10xf32>
    %cst_215 = arith.constant dense<0xFF800000> : vector<1xf32>
    %258 = vector.multi_reduction <maximumf>, %257, %cst_215 [1] : vector<1x10xf32> to vector<1xf32>
    %259 = vector.shape_cast %258 : vector<1xf32> to vector<1x1xf32>
    %260 = vector.broadcast %259 : vector<1x1xf32> to vector<1x10xf32>
    %261 = arith.subf %257, %260 : vector<1x10xf32>
    %262 = math.exp %261 : vector<1x10xf32>
    %cst_216 = arith.constant dense<0.000000e+00> : vector<1xf32>
    %263 = vector.multi_reduction <add>, %262, %cst_216 [1] : vector<1x10xf32> to vector<1xf32>
    %264 = vector.shape_cast %263 : vector<1xf32> to vector<1x1xf32>
    %265 = tpu.reciprocal %264 : vector<1x1xf32> -> vector<1x1xf32>
    %266 = vector.broadcast %265 : vector<1x1xf32> to vector<1x10xf32>
    %267 = arith.mulf %262, %266 : vector<1x10xf32>
    %c1_217 = arith.constant 1 : index
    %c0_218 = arith.constant 0 : index
    %c0_219 = arith.constant 0 : index
    %268 = vector.load %arg16[%c1_217, %c0_218, %c0_219] : memref<2x1x10xf32, #tpu.memory_space<vmem>>, vector<1x1x10xf32>
    %269 = vector.shape_cast %268 : vector<1x1x10xf32> to vector<1x10xf32>
    %270 = vector.shape_cast %267 : vector<1x10xf32> to vector<1x1x10xf32>
    tpu.vector_store %arg16[%c1_217, %c0_218, %c0_219], %270 {strides = array<i32>} : memref<2x1x10xf32, #tpu.memory_space<vmem>>, vector<1x1x10xf32>,
    return
  }
  func.func @transform_0(%arg0: i32) -> (i32, i32, i32) {
    %c0_i32 = arith.constant 0 : i32
    %c0_i32_0 = arith.constant 0 : i32
    %c0_i32_1 = arith.constant 0 : i32
    return %arg0, %c0_i32, %c0_i32_0 : i32, i32, i32
  }
  func.func @transform_1(%arg0: i32) -> (i32, i32, i32) {
    %c0_i32 = arith.constant 0 : i32
    %c0_i32_0 = arith.constant 0 : i32
    %c0_i32_1 = arith.constant 0 : i32
    %c0_i32_2 = arith.constant 0 : i32
    return %c0_i32, %c0_i32_0, %c0_i32_1 : i32, i32, i32
  }
  func.func @transform_2(%arg0: i32) -> (i32, i32) {
    %c0_i32 = arith.constant 0 : i32
    %c0_i32_0 = arith.constant 0 : i32
    %c0_i32_1 = arith.constant 0 : i32
    return %c0_i32, %c0_i32_0 : i32, i32
  }
  func.func @transform_3(%arg0: i32) -> (i32, i32, i32) {
    %c0_i32 = arith.constant 0 : i32
    %c0_i32_0 = arith.constant 0 : i32
    %c0_i32_1 = arith.constant 0 : i32
    %c0_i32_2 = arith.constant 0 : i32
    return %c0_i32, %c0_i32_0, %c0_i32_1 : i32, i32, i32
  }
  func.func @transform_4(%arg0: i32) -> (i32, i32, i32) {
    %c0_i32 = arith.constant 0 : i32
    %c0_i32_0 = arith.constant 0 : i32
    %c0_i32_1 = arith.constant 0 : i32
    %c0_i32_2 = arith.constant 0 : i32
    return %c0_i32, %c0_i32_0, %c0_i32_1 : i32, i32, i32
  }
  func.func @transform_5(%arg0: i32) -> (i32, i32, i32) {
    %c0_i32 = arith.constant 0 : i32
    %c0_i32_0 = arith.constant 0 : i32
    %c0_i32_1 = arith.constant 0 : i32
    %c0_i32_2 = arith.constant 0 : i32
    return %c0_i32, %c0_i32_0, %c0_i32_1 : i32, i32, i32
  }
  func.func @transform_6(%arg0: i32) -> (i32, i32) {
    %c0_i32 = arith.constant 0 : i32
    %c0_i32_0 = arith.constant 0 : i32
    %c0_i32_1 = arith.constant 0 : i32
    return %c0_i32, %c0_i32_0 : i32, i32
  }
  func.func @transform_7(%arg0: i32) -> (i32, i32, i32) {
    %c0_i32 = arith.constant 0 : i32
    %c0_i32_0 = arith.constant 0 : i32
    %c0_i32_1 = arith.constant 0 : i32
    %c0_i32_2 = arith.constant 0 : i32
    return %c0_i32, %c0_i32_0, %c0_i32_1 : i32, i32, i32
  }
  func.func @transform_8(%arg0: i32) -> (i32, i32, i32) {
    %c0_i32 = arith.constant 0 : i32
    %c0_i32_0 = arith.constant 0 : i32
    %c0_i32_1 = arith.constant 0 : i32
    %c0_i32_2 = arith.constant 0 : i32
    return %c0_i32, %c0_i32_0, %c0_i32_1 : i32, i32, i32
  }
  func.func @transform_9(%arg0: i32) -> (i32, i32, i32) {
    %c0_i32 = arith.constant 0 : i32
    %c0_i32_0 = arith.constant 0 : i32
    %c0_i32_1 = arith.constant 0 : i32
    %c0_i32_2 = arith.constant 0 : i32
    return %c0_i32, %c0_i32_0, %c0_i32_1 : i32, i32, i32
  }
  func.func @transform_10(%arg0: i32) -> (i32, i32) {
    %c0_i32 = arith.constant 0 : i32
    %c0_i32_0 = arith.constant 0 : i32
    %c0_i32_1 = arith.constant 0 : i32
    return %c0_i32, %c0_i32_0 : i32, i32
  }
  func.func @transform_11(%arg0: i32) -> (i32, i32) {
    %c0_i32 = arith.constant 0 : i32
    %c0_i32_0 = arith.constant 0 : i32
    %c0_i32_1 = arith.constant 0 : i32
    return %c0_i32, %c0_i32_0 : i32, i32
  }
  func.func @transform_12(%arg0: i32) -> (i32, i32) {
    %c0_i32 = arith.constant 0 : i32
    %c0_i32_0 = arith.constant 0 : i32
    %c0_i32_1 = arith.constant 0 : i32
    return %c0_i32, %c0_i32_0 : i32, i32
  }
  func.func @transform_13(%arg0: i32) -> (i32, i32) {
    %c0_i32 = arith.constant 0 : i32
    %c0_i32_0 = arith.constant 0 : i32
    %c0_i32_1 = arith.constant 0 : i32
    return %c0_i32, %c0_i32_0 : i32, i32
  }
  func.func @transform_14(%arg0: i32) -> (i32, i32) {
    %c0_i32 = arith.constant 0 : i32
    %c0_i32_0 = arith.constant 0 : i32
    %c0_i32_1 = arith.constant 0 : i32
    return %c0_i32, %c0_i32_0 : i32, i32
  }
  func.func @transform_15(%arg0: i32) -> (i32, i32, i32) {
    %c0_i32 = arith.constant 0 : i32
    %c0_i32_0 = arith.constant 0 : i32
    %c0_i32_1 = arith.constant 0 : i32
    return %arg0, %c0_i32, %c0_i32_0 : i32, i32, i32
  }
}

</mosaic_0001>

<bundles_post_ra>
// kernel: squeeze.25
= control target key start
LH: loop header
LB: loop body
LE: loop exit
PB: predicated region body
PF: predicated region fallthrough
CT: control target
= control target key end

     0   :  { %vm7_vm0 = vcmask 1043458   ;;  %vm11_vm1 = vcmask 1044484   ;;  %s16_s6 = smov 3  ;;  %s19_s7 = smov 12  ;;  %vm1308_vm2 = vcmask 64512   ;;  %vm61_vm3 = vcmask 1042433   ;;  %s1306_s0 = inlined_call_operand.vmem [shape: f32[1,5,16,120], index: 0, kind: input, shape index: {}]   ;;  %s1307_s1 = inlined_call_operand.hbm [shape: f32[9600], index: 1, kind: output, shape index: {}]  }
   0x1   :  { %v658_v0 = vld [vmem:[%s1306_s0 + $0x1d] sm:$0x10]   ;;  %s28_s14 = smov 3  ;;  %s31_s15 = smov 12  ;;  %vm66_vm4 = vcmask 1044483   ;;  %vm122_vm5 = vcmask 195584  }
   0x2   :  { %v656_v1 = vld [vmem:[%s1306_s0 + $0x1] ss:$48 sm:%s16_s6]   ;;  %v668_v9 = vld [vmem:[%s1306_s0 + $0x23] sm:$0x1]   ;;  %s101_s24 = smov 6  ;;  %s106_s25 = smov 24 }
   0x3   :  { %v657_v2 = vld [vmem:[%s1306_s0 - $0x4f] ss:$48 sm:%s19_s7]   ;;  %v671_v11 = vld [vmem:[%s1306_s0 + $0x23] sm:$0x1]   ;;  %vm80_vm6 = vcmask 130048   ;;  %s113_s3 = smov 6 }
   0x4   :  { %v22_v3 = vsel %vm7_vm0, %v657_v2, %v656_v1  ;;  %v659_v4 = vld [vmem:[%s1306_s0 + $0x1] ss:$48 sm:%s28_s14]   ;;  %v669_v13 = vld [vmem:[%s1306_s0 - $0x2d] ss:$48 sm:%s101_s24]   ;;  %s118_s4 = smov 24  ;;  %s805_s5 = smov 120  }
   0x5   :  { %v660_v5 = vld [vmem:[%s1306_s0 - $0x4f] ss:$48 sm:%s31_s15]   ;;  %v26_v6 = vsel %vm11_vm1, %v658_v0, %v22_v3  ;;  %v670_v14 = vld [vmem:[%s1306_s0 - $0x7d] ss:$48 sm:%s106_s25]   ;;  %v104_v15 = vsel %vm61_vm3, %v669_v13, %v668_v9  ;;  %s59_s10 = smov 6  ;;  %s64_s15 = smov 24 }
   0x6   :  { %v34_v7 = vsel %vm7_vm0, %v660_v5, %v659_v4  ;;  %v661_v8 = vld [vmem:[%s1306_s0 + $0x1d] sm:$0x10]   ;;  %v672_v16 = vld [vmem:[%s1306_s0 - $0x2d] ss:$48 sm:%s113_s3]   ;;  %v662_v17 = vld [vmem:[%s1306_s0 + $0x22] sm:$0x1]   ;;  %v109_v18 = vsel %vm66_vm4, %v670_v14, %v104_v15 }
   0x7   :  { %v38_v10 = vsel %vm11_vm1, %v661_v8, %v34_v7  ;;  %v116_v19 = vsel %vm61_vm3, %v672_v16, %v671_v11  ;;  %v673_v20 = vld [vmem:[%s1306_s0 - $0x7d] ss:$48 sm:%s118_s4]   ;;  %v663_v21 = vld [vmem:[%s1306_s0 - $0x2e] ss:$48 sm:%s59_s10]   ;;  %s69_s16 = smov 3  ;;  %s72_s21 = smov 12 }
   0x8   :  { %v40_v12 = vsel %vm1308_vm2, %v38_v10, %v26_v6  ;;  %v121_v22 = vsel %vm66_vm4, %v673_v20, %v116_v19  ;;  %v62_v23 = vsel %vm61_vm3, %v663_v21, %v662_v17  ;;  %v664_v24 = vld [vmem:[%s1306_s0 - $0x7e] ss:$48 sm:%s64_s15]   ;;  %v674_v30 = vld [vmem:[%s1306_s0 + $0x44] sm:$0x1]   ;;  %s806_s28 = smov 104   ;;  %vm144_vm7 = vcmask 1041409  }
   0x9   :  { %41 = vrot.lane.b32.xlu0 %v40_v12, %s805_s5  ;;  %v665_v25 = vld [vmem:[%s1306_s0 + $0x2] ss:$48 sm:%s69_s16]   ;;  %v123_v26 = vsel %vm122_vm5, %v121_v22, %v109_v18  ;;  %v67_v27 = vsel %vm66_vm4, %v664_v24, %v62_v23  ;;  %v675_v32 = vld [vmem:[%s1306_s0 + $0x23] sm:$0x2]   ;;  %s147_s2 = smov 12  ;;  %s158_s9 = smov 6 }
   0xa   :  { %v666_v28 = vld [vmem:[%s1306_s0 - $0x4e] ss:$48 sm:%s72_s21]   ;;  %124 = vrot.lane.b32.xlu1 %v123_v26, %s806_s28  ;;  %v677_v33 = vld [vmem:[%s1306_s0 + $0x10] sm:$0x10]   ;;  %v145_v35 = vsel %vm144_vm7, %v675_v32, %v674_v30  ;;  %s163_s10 = smov 24  ;;  %vm167_vm8 = vcmask 261120  }
   0xb   :  { %v667_v29 = vld [vmem:[%s1306_s0 + $0x1e] sm:$0x10]   ;;  %v75_v31 = vsel %vm7_vm0, %v666_v28, %v665_v25  ;;  %v676_v36 = vld [vmem:[%s1306_s0 - $0x5c] ss:$48 sm:%s147_s2]   ;;  %s807_s15 = smov 112   ;;  %s190_s20 = smov 12 }
   0xc   :  { %v79_v34 = vsel %vm11_vm1, %v667_v29, %v75_v31  ;;  %v678_v37 = vld [vmem:[%s1306_s0 + $0x24] sm:$0x1]   ;;  %v150_v39 = vsel %vm7_vm0, %v676_v36, %v145_v35  ;;  %v681_v44 = vld [vmem:[%s1306_s0 + $0x45] sm:$0x1]   ;;  %s205_s21 = smov 12  ;;  %s808_s5 = smov 96  }
   0xd   :  { %v81_v38 = vsel %vm80_vm6, %v79_v34, %v67_v27  ;;  %v679_v40 = vld [vmem:[%s1306_s0 - $0x2c] ss:$48 sm:%s158_s9]   ;;  %v154_v42 = vsel %vm11_vm1, %v677_v33, %v150_v39  ;;  %v682_v45 = vld [vmem:[%s1306_s0 + $0x24] sm:$0x2]   ;;  %v684_v49 = vld [vmem:[%s1306_s0 + $0x11] sm:$0x10]  }
   0xe   :  { %v680_v41 = vld [vmem:[%s1306_s0 - $0x7c] ss:$48 sm:%s163_s10]   ;;  %82 = vrot.lane.b32.xlu0 %v81_v38, %s807_s15  ;;  %v161_v43 = vsel %vm61_vm3, %v679_v40, %v678_v37  ;;  %v188_v47 = vsel %vm144_vm7, %v682_v45, %v681_v44  ;;  %v685_v50 = vld [vmem:[%s1306_s0 + $0x45] sm:$0x1]   ;;  %vm213_vm9 = vcmask 326656   ;;  %s234_s10 = smov 12 }
   0xf   :  { %v166_v46 = vsel %vm66_vm4, %v680_v41, %v161_v43  ;;  %v683_v48 = vld [vmem:[%s1306_s0 - $0x5b] ss:$48 sm:%s190_s20]   ;;  %v689_v58 = vld [vmem:[%s1306_s0 + $0x46] sm:$0x1]   ;;  %v692_v62 = vld [vmem:[%s1306_s0 + $0x12] sm:$0x10]  }
  0x10   :  { %v168_v51 = vsel %vm167_vm8, %v166_v46, %v154_v42  ;;  %v193_v52 = vsel %vm7_vm0, %v683_v48, %v188_v47  ;;  %v686_v53 = vld [vmem:[%s1306_s0 + $0x24] sm:$0x2]   ;;  %v688_v55 = vld [vmem:[%s1306_s0 + $0x11] sm:$0x10]   ;;  %v690_v59 = vld [vmem:[%s1306_s0 + $0x25] sm:$0x2]  }
  0x11   :  { %v687_v54 = vld [vmem:[%s1306_s0 - $0x5b] ss:$48 sm:%s205_s21]   ;;  %169 = vrot.lane.b32.xlu1 %v168_v51, %s808_s5  ;;  %v197_v56 = vsel %vm11_vm1, %v684_v49, %v193_v52  ;;  %v203_v57 = vsel %vm144_vm7, %v686_v53, %v685_v50  ;;  %v232_v61 = vsel %vm144_vm7, %v690_v59, %v689_v58  ;;  %v693_v63 = vld [vmem:[%s1306_s0 + $0x46] sm:$0x1]   ;;  %s249_s15 = smov 12  ;;  %vm257_vm10 = vcmask 392192  }
  0x12   :  { %v208_v60 = vsel %vm7_vm0, %v687_v54, %v203_v57  ;;  %v691_v1 = vld [vmem:[%s1306_s0 - $0x5a] ss:$48 sm:%s234_s10]   ;;  %v697_v8 = vld [vmem:[%s1306_s0 + $0x47] sm:$0x1]   ;;  %s809_s26 = smov 88   ;;  %s278_s29 = smov 12 }
  0x13   :  { %v212_v0 = vsel %vm11_vm1, %v688_v55, %v208_v60  ;;  %v694_v2 = vld [vmem:[%s1306_s0 + $0x25] sm:$0x2]   ;;  %v696_v3 = vld [vmem:[%s1306_s0 + $0x12] sm:$0x10]   ;;  %v237_v5 = vsel %vm7_vm0, %v691_v1, %v232_v61  ;;  %v698_v11 = vld [vmem:[%s1306_s0 + $0x26] sm:$0x2]  }
  0x14   :  { %v214_v4 = vsel %vm213_vm9, %v212_v0, %v197_v56  ;;  %v247_v6 = vsel %vm144_vm7, %v694_v2, %v693_v63  ;;  %v695_v7 = vld [vmem:[%s1306_s0 - $0x5a] ss:$48 sm:%s249_s15]   ;;  %v241_v9 = vsel %vm11_vm1, %v692_v62, %v237_v5  ;;  %v700_v12 = vld [vmem:[%s1306_s0 + $0x13] sm:$0x10]   ;;  %s293_s3 = smov 12  ;;  %v276_v14 = vsel %vm144_vm7, %v698_v11, %v697_v8  ;;  %s810_s14 = smov 80  }
  0x15   :  { %215 = vrot.lane.b32.xlu0 %v214_v4, %s809_s26  ;;  %v252_v10 = vsel %vm7_vm0, %v695_v7, %v247_v6  ;;  %v699_v15 = vld [vmem:[%s1306_s0 - $0x59] ss:$48 sm:%s278_s29]   ;;  %vm301_vm11 = vcmask 457728   ;;  %v705_v25 = vld [vmem:[%s1306_s0 + $0x48] sm:$0x1]   ;;  %s322_s19 = smov 12 }
  0x16   :  { %v256_v13 = vsel %vm11_vm1, %v696_v3, %v252_v10  ;;  %v701_v16 = vld [vmem:[%s1306_s0 + $0x47] sm:$0x1]   ;;  %v281_v19 = vsel %vm7_vm0, %v699_v15, %v276_v14  ;;  %v704_v22 = vld [vmem:[%s1306_s0 + $0x13] sm:$0x10]   ;;  %v706_v26 = vld [vmem:[%s1306_s0 + $0x27] sm:$0x2]  }
  0x17   :  { %v702_v17 = vld [vmem:[%s1306_s0 + $0x26] sm:$0x2]   ;;  %v258_v18 = vsel %vm257_vm10, %v256_v13, %v241_v9  ;;  %v285_v23 = vsel %vm11_vm1, %v700_v12, %v281_v19  ;;  %v320_v28 = vsel %vm144_vm7, %v706_v26, %v705_v25  ;;  %v707_v29 = vld [vmem:[%s1306_s0 - $0x58] ss:$48 sm:%s322_s19]   ;;  %vm305_vm12 = vcmask 523264   ;;  %s337_s28 = smov 12 }
  0x18   :  { %v291_v20 = vsel %vm144_vm7, %v702_v17, %v701_v16  ;;  %v703_v21 = vld [vmem:[%s1306_s0 - $0x59] ss:$48 sm:%s293_s3]   ;;  %259 = vrot.lane.b32.xlu1 %v258_v18, %s810_s14  ;;  %v708_v30 = vld [vmem:[%s1306_s0 + $0x14] sm:$0x10]   ;;  %v325_v33 = vsel %vm7_vm0, %v707_v29, %v320_v28  ;;  %s811_s2 = smov 72   ;;  %s366_s7 = smov 12 }
  0x19   :  { %v296_v24 = vsel %vm7_vm0, %v703_v21, %v291_v20  ;;  %v709_v31 = vld [vmem:[%s1306_s0 + $0x48] sm:$0x1]   ;;  %v712_v35 = vld [vmem:[%s1306_s0 + $0x14] sm:$0x10]   ;;  %v329_v36 = vsel %vm11_vm1, %v708_v30, %v325_v33  ;;  %v713_v39 = vld [vmem:[%s1306_s0 + $0x49] sm:$0x1]  }
  0x1a   :  { %v300_v27 = vsel %vm11_vm1, %v704_v22, %v296_v24  ;;  %v710_v34 = vld [vmem:[%s1306_s0 + $0x27] sm:$0x2]   ;;  %v714_v41 = vld [vmem:[%s1306_s0 + $0x28] sm:$0x2]   ;;  %v716_v43 = vld [vmem:[%s1306_s0 + $0x15] sm:$0x10]  }
  0x1b   :  { %v302_v32 = vsel %vm301_vm11, %v300_v27, %v285_v23  ;;  %v335_v37 = vsel %vm144_vm7, %v710_v34, %v709_v31  ;;  %v711_v38 = vld [vmem:[%s1306_s0 - $0x58] ss:$48 sm:%s337_s28]   ;;  %v715_v42 = vld [vmem:[%s1306_s0 - $0x57] ss:$48 sm:%s366_s7]   ;;  %vm261_vm13 = vcmask 588800   ;;  %v364_v45 = vsel %vm144_vm7, %v714_v41, %v713_v39  ;;  %s381_s18 = smov 12 }
  0x1c   :  { %303 = vrot.lane.b32.xlu0 %v302_v32, %s811_s2  ;;  %v340_v40 = vsel %vm7_vm0, %v711_v38, %v335_v37  ;;  %v717_v46 = vld [vmem:[%s1306_s0 + $0x49] sm:$0x1]   ;;  %v369_v49 = vsel %vm7_vm0, %v715_v42, %v364_v45  ;;  %v720_v52 = vld [vmem:[%s1306_s0 + $0x15] sm:$0x10]   ;;  %s410_s23 = smov 12  ;;  %s812_s24 = smov 64  }
  0x1d   :  { %v344_v44 = vsel %vm11_vm1, %v712_v35, %v340_v40  ;;  %v718_v47 = vld [vmem:[%s1306_s0 + $0x28] sm:$0x2]   ;;  %v373_v53 = vsel %vm11_vm1, %v716_v43, %v369_v49  ;;  %v721_v55 = vld [vmem:[%s1306_s0 + $0x4a] sm:$0x1]   ;;  %v724_v57 = vld [vmem:[%s1306_s0 + $0x16] sm:$0x10]  }
  0x1e   :  { %v346_v48 = vsel %vm305_vm12, %v344_v44, %v329_v36  ;;  %v379_v50 = vsel %vm144_vm7, %v718_v47, %v717_v46  ;;  %v719_v51 = vld [vmem:[%s1306_s0 - $0x57] ss:$48 sm:%s381_s18]   ;;  %v722_v56 = vld [vmem:[%s1306_s0 + $0x29] sm:$0x2]   ;;  %vm217_vm14 = vcmask 654336   ;;  %s425_s8 = smov 12 }
  0x1f   :  { %347 = vrot.lane.b32.xlu1 %v346_v48, %s812_s24  ;;  %v384_v54 = vsel %vm7_vm0, %v719_v51, %v379_v50  ;;  %v408_v59 = vsel %vm144_vm7, %v722_v56, %v721_v55  ;;  %v723_v60 = vld [vmem:[%s1306_s0 - $0x56] ss:$48 sm:%s410_s23]   ;;  %s813_s11 = smov 56   ;;  %v729_v5 = vld [vmem:[%s1306_s0 + $0x4b] sm:$0x1]   ;;  %s454_s16 = smov 12 }
  0x20   :  { %v388_v58 = vsel %vm11_vm1, %v720_v52, %v384_v54  ;;  %v725_v61 = vld [vmem:[%s1306_s0 + $0x4a] sm:$0x1]   ;;  %v413_v0 = vsel %vm7_vm0, %v723_v60, %v408_v59  ;;  %v728_v2 = vld [vmem:[%s1306_s0 + $0x16] sm:$0x10]   ;;  %s469_s17 = smov 12  ;;  %vm171_vm15 = vcmask 719872  }
  0x21   :  { %v726_v62 = vld [vmem:[%s1306_s0 + $0x29] sm:$0x2]   ;;  %v390_v63 = vsel %vm261_vm13, %v388_v58, %v373_v53  ;;  %v417_v3 = vsel %vm11_vm1, %v724_v57, %v413_v0  ;;  %v730_v7 = vld [vmem:[%s1306_s0 + $0x2a] sm:$0x2]   ;;  %v732_v9 = vld [vmem:[%s1306_s0 + $0x17] sm:$0x10]  }
  0x22   :  { %v423_v1 = vsel %vm144_vm7, %v726_v62, %v725_v61  ;;  %391 = vrot.lane.b32.xlu0 %v390_v63, %s813_s11  ;;  %v727_v4 = vld [vmem:[%s1306_s0 - $0x56] ss:$48 sm:%s425_s8]   ;;  %v452_v11 = vsel %vm144_vm7, %v730_v7, %v729_v5  ;;  %v733_v12 = vld [vmem:[%s1306_s0 + $0x4b] sm:$0x1]   ;;  %s814_s5 = smov 48   ;;  %s498_s8 = smov 12 }
  0x23   :  { %v428_v6 = vsel %vm7_vm0, %v727_v4, %v423_v1  ;;  %v731_v8 = vld [vmem:[%s1306_s0 - $0x55] ss:$48 sm:%s454_s16]   ;;  %v737_v19 = vld [vmem:[%s1306_s0 + $0x4c] sm:$0x1]   ;;  %v740_v23 = vld [vmem:[%s1306_s0 + $0x18] sm:$0x10]  }
  0x24   :  { %v432_v10 = vsel %vm11_vm1, %v728_v2, %v428_v6  ;;  %v734_v13 = vld [vmem:[%s1306_s0 + $0x2a] sm:$0x2]   ;;  %v457_v16 = vsel %vm7_vm0, %v731_v8, %v452_v11  ;;  %v736_v18 = vld [vmem:[%s1306_s0 + $0x17] sm:$0x10]   ;;  %v738_v22 = vld [vmem:[%s1306_s0 + $0x2b] sm:$0x2]  }
  0x25   :  { %v735_v14 = vld [vmem:[%s1306_s0 - $0x55] ss:$48 sm:%s469_s17]   ;;  %v434_v15 = vsel %vm217_vm14, %v432_v10, %v417_v3  ;;  %v467_v17 = vsel %vm144_vm7, %v734_v13, %v733_v12  ;;  %v461_v20 = vsel %vm11_vm1, %v732_v9, %v457_v16  ;;  %s513_s11 = smov 12  ;;  %v496_v25 = vsel %vm144_vm7, %v738_v22, %v737_v19  ;;  %v739_v26 = vld [vmem:[%s1306_s0 - $0x54] ss:$48 sm:%s498_s8]   ;;  %s815_s22 = smov 40  }
  0x26   :  { %435 = vrot.lane.b32.xlu1 %v434_v15, %s814_s5  ;;  %v472_v21 = vsel %vm7_vm0, %v735_v14, %v467_v17  ;;  %v741_v27 = vld [vmem:[%s1306_s0 + $0x4c] sm:$0x1]   ;;  %vm126_vm3 = vcmask 785408   ;;  %v501_v30 = vsel %vm7_vm0, %v739_v26, %v496_v25  ;;  %v744_v33 = vld [vmem:[%s1306_s0 + $0x18] sm:$0x10]   ;;  %s542_s27 = smov 12 }
  0x27   :  { %v476_v24 = vsel %vm11_vm1, %v736_v18, %v472_v21  ;;  %v742_v28 = vld [vmem:[%s1306_s0 + $0x2b] sm:$0x2]   ;;  %v505_v34 = vsel %vm11_vm1, %v740_v23, %v501_v30  ;;  %v745_v36 = vld [vmem:[%s1306_s0 + $0x4d] sm:$0x1]   ;;  %s557_s28 = smov 12  ;;  %s816_s12 = smov 32  }
  0x28   :  { %v478_v29 = vsel %vm171_vm15, %v476_v24, %v461_v20  ;;  %v511_v31 = vsel %vm144_vm7, %v742_v28, %v741_v27  ;;  %v743_v32 = vld [vmem:[%s1306_s0 - $0x54] ss:$48 sm:%s513_s11]   ;;  %v746_v37 = vld [vmem:[%s1306_s0 + $0x2c] sm:$0x2]   ;;  %v748_v41 = vld [vmem:[%s1306_s0 + $0x19] sm:$0x10]  }
  0x29   :  { %479 = vrot.lane.b32.xlu0 %v478_v29, %s815_s22  ;;  %v516_v35 = vsel %vm7_vm0, %v743_v32, %v511_v31  ;;  %v540_v39 = vsel %vm144_vm7, %v746_v37, %v745_v36  ;;  %v747_v40 = vld [vmem:[%s1306_s0 - $0x53] ss:$48 sm:%s542_s27]   ;;  %vm84_vm4 = vcmask 850944   ;;  %v753_v50 = vld [vmem:[%s1306_s0 + $0x4e] sm:$0x1]   ;;  %s586_s17 = smov 12 }
  0x2a   :  { %v520_v38 = vsel %vm11_vm1, %v744_v33, %v516_v35  ;;  %v749_v42 = vld [vmem:[%s1306_s0 + $0x4d] sm:$0x1]   ;;  %v545_v44 = vsel %vm7_vm0, %v747_v40, %v540_v39  ;;  %v752_v47 = vld [vmem:[%s1306_s0 + $0x19] sm:$0x10]   ;;  %v754_v51 = vld [vmem:[%s1306_s0 + $0x2d] sm:$0x2]  }
  0x2b   :  { %v522_v43 = vsel %vm126_vm3, %v520_v38, %v505_v34  ;;  %v750_v45 = vld [vmem:[%s1306_s0 + $0x2c] sm:$0x2]   ;;  %v549_v48 = vsel %vm11_vm1, %v748_v41, %v545_v44  ;;  %v584_v53 = vsel %vm144_vm7, %v754_v51, %v753_v50  ;;  %v756_v54 = vld [vmem:[%s1306_s0 + $0x1a] sm:$0x10]   ;;  %v757_v55 = vld [vmem:[%s1306_s0 + $0x4e] sm:$0x1]  }
  0x2c   :  { %v751_v46 = vld [vmem:[%s1306_s0 - $0x53] ss:$48 sm:%s557_s28]   ;;  %523 = vrot.lane.b32.xlu1 %v522_v43, %s816_s12  ;;  %v555_v49 = vsel %vm144_vm7, %v750_v45, %v749_v42  ;;  %s601_s22 = smov 12  ;;  %v758_v58 = vld [vmem:[%s1306_s0 + $0x2d] sm:$0x2]   ;;  %vm43_vm2 = vcmask 916480  }
  0x2d   :  { %v560_v52 = vsel %vm7_vm0, %v751_v46, %v555_v49  ;;  %v755_v57 = vld [vmem:[%s1306_s0 - $0x52] ss:$48 sm:%s586_s17]   ;;  %v599_v62 = vsel %vm144_vm7, %v758_v58, %v757_v55  ;;  %v761_v0 = vld [vmem:[%s1306_s0 + $0x4f] sm:$0x1]   ;;  %s630_s4 = smov 12  ;;  %s817_s5 = smov 24  }
  0x2e   :  { %v564_v56 = vsel %vm11_vm1, %v752_v47, %v560_v52  ;;  %v760_v59 = vld [vmem:[%s1306_s0 + $0x1a] sm:$0x10]   ;;  %v589_v61 = vsel %vm7_vm0, %v755_v57, %v584_v53  ;;  %v762_v3 = vld [vmem:[%s1306_s0 + $0x2e] sm:$0x2]   ;;  %v764_v7 = vld [vmem:[%s1306_s0 + $0x1b] sm:$0x10]  }
  0x2f   :  { %v566_v60 = vsel %vm84_vm4, %v564_v56, %v549_v48  ;;  %v759_v63 = vld [vmem:[%s1306_s0 - $0x52] ss:$48 sm:%s601_s22]   ;;  %v593_v1 = vsel %vm11_vm1, %v756_v54, %v589_v61  ;;  %v763_v4 = vld [vmem:[%s1306_s0 - $0x51] ss:$48 sm:%s630_s4]   ;;  %v628_v6 = vsel %vm144_vm7, %v762_v3, %v761_v0  ;;  %s3_s12 = smov 3  ;;  %s5_s17 = smov 12 }
  0x30   :  { %567 = vrot.lane.b32.xlu0 %v566_v60, %s817_s5  ;;  %v604_v2 = vsel %vm7_vm0, %v759_v63, %v599_v62  ;;  %v633_v9 = vsel %vm7_vm0, %v763_v4, %v628_v6  ;;  %v655_v10 = vld [vmem:[%s1306_s0 + $0x3c] sm:$0x10]   ;;  %s818_s18 = smov 16   ;;  %vm13_vm7 = vcmask 982016  }
  0x31   :  { %v608_v5 = vsel %vm11_vm1, %v760_v59, %v604_v2  ;;  %v4_v11 = vld [vmem:[%s1306_s0] ss:$16 sm:%s3_s12]   ;;  %v637_v12 = vsel %vm11_vm1, %v764_v7, %v633_v9 }
  0x32   :  { %v610_v8 = vsel %vm43_vm2, %v608_v5, %v593_v1  ;;  %v6_v13 = vld [vmem:[%s1306_s0] ss:$16 sm:%s5_s17]   ;;  %s819_s0 = smov 8  }
  0x33   :  { %611 = vrot.lane.b32.xlu1 %v610_v8, %s818_s18  ;;  %v8_v14 = vsel %vm7_vm0, %v6_v13, %v4_v11 }
  0x34   :  { %638 = vrot.lane.b32.xlu0 %v637_v12, %s819_s0 }
  0x35   :  { %2 = vsyncpa [#allocation1], 0  ;;  %v12_v15 = vsel %vm11_vm1, %v655_v10, %v8_v14  ;;  %vm50_vm0 = vcmask 1048512   ;;  %vm91_vm1 = vcmask 1048448   ;;  %s820_s21 = smov [#allocation0]  }
  0x36   :  { %14 = vst.msk [vmem:[#allocation0] ss:$15 sm:$0x1f] %vm13_vm7, %v12_v15   ;;  %s649_s22 = sshll.u32 %s820_s21, 4  ;;  %vm1309_vm7 = vcmask 64512   ;;  %s650_s22 = int_to_ptr.vmem [resolvable:$true] %s649_s22 }
  0x37   :  { %s781_s23 = scalar_lea.vmem %s650_s22, 1280  ;;  %p786_p1 = scmp.lt.s32.totalorder %s650_s22, %s650_s22 }
  0x38   :  { %p782_p0 = scmp.ne.s32.totalorder %s650_s22, %s781_s23  ;;  %p787_p2 = scmp.lt.s32.totalorder %s781_s23, %s781_s23 }
  0x3a   :  { %p788_p3 = por %p787_p2, %p786_p1 }
  0x3c   :  { %p789_p4 = pnand %p788_p3, %p782_p0 }
  0x7b   :  { %v42_v16 = vpop.permute.xlu0 %41  }
  0x7c   :  { %51 = vst.msk [vmem:[#allocation0] ss:$45 sm:$0x3] %vm50_vm0, %v42_v16   ;;  %53 = vst.msk [vmem:[#allocation0 - $0x4b] ss:$45 sm:$0xc] %vm50_vm0, %v42_v16   ;;  %v125_v17 = vpop.permute.xlu1 %124  }
  0x7d   :  { %55 = vst.msk [vmem:[#allocation0 + $0x1a] sm:$0x10] %vm50_vm0, %v42_v16   ;;  %vm1310_vm0 = vmmov %vm1309_vm7 }
  0x7e   :  { %45 = vst.msk [vmem:[#allocation0 + $0x1] ss:$45 sm:$0x3] %vm43_vm2, %v42_v16   ;;  %47 = vst.msk [vmem:[#allocation0 - $0x4a] ss:$45 sm:$0xc] %vm43_vm2, %v42_v16  }
  0x7f   :  { %49 = vst.msk [vmem:[#allocation0 + $0x1b] sm:$0x10] %vm43_vm2, %v42_v16   ;;  %vm133_vm2 = vcmask 1048384  }
  0x80   :  { %128 = vst.msk [vmem:[#allocation0 + $0x21] ss:$-30 sm:$0x3] %vm126_vm3, %v125_v17   ;;  %130 = vst.msk [vmem:[#allocation0 + $0x6c] ss:$-30 sm:$0xc] %vm126_vm3, %v125_v17   ;;  %v83_v18 = vpop.permute.xlu0 %82  }
  0x81   :  { %132 = vst.msk [vmem:[#allocation0 + $0x3b] sm:$0x10] %vm126_vm3, %v125_v17   ;;  %vm176_vm3 = vcmask 1048320  }
  0x82   :  { %93 = vst.msk [vmem:[#allocation0 + $0x1] ss:$45 sm:$0x3] %vm91_vm1, %v83_v18   ;;  %95 = vst.msk [vmem:[#allocation0 - $0x4a] ss:$45 sm:$0xc] %vm91_vm1, %v83_v18  }
  0x83   :  { %97 = vst.msk [vmem:[#allocation0 + $0x1b] sm:$0x10] %vm91_vm1, %v83_v18   ;;  %v170_v19 = vpop.permute.xlu1 %169  }
  0x84   :  { %86 = vst.msk [vmem:[#allocation0 + $0x20] ss:$-30 sm:$0x3] %vm84_vm4, %v83_v18   ;;  %88 = vst.msk [vmem:[#allocation0 + $0x6b] ss:$-30 sm:$0xc] %vm84_vm4, %v83_v18  }
  0x85   :  { %90 = vst.msk [vmem:[#allocation0 + $0x3a] sm:$0x10] %vm84_vm4, %v83_v18   ;;  %vm640_vm4 = vcmask 1047616  }
  0x86   :  { %135 = vst.msk [vmem:[#allocation0 + $0x20] ss:$-30 sm:$0x3] %vm133_vm2, %v125_v17   ;;  %137 = vst.msk [vmem:[#allocation0 + $0x6b] ss:$-30 sm:$0xc] %vm133_vm2, %v125_v17  }
  0x87   :  { %139 = vst.msk [vmem:[#allocation0 + $0x3a] sm:$0x10] %vm133_vm2, %v125_v17   ;;  %v216_v20 = vpop.permute.xlu0 %215  }
  0x88   :  { %178 = vst.msk [vmem:[#allocation0 + $0x21] ss:$-30 sm:$0x3] %vm176_vm3, %v170_v19   ;;  %180 = vst.msk [vmem:[#allocation0 + $0x6c] ss:$-30 sm:$0xc] %vm176_vm3, %v170_v19  }
  0x89   :  { %182 = vst.msk [vmem:[#allocation0 + $0x3b] sm:$0x10] %vm176_vm3, %v170_v19  }
  0x8a   :  { %173 = vst.msk [vmem:[#allocation0 + $0x40] ss:$-30 sm:$0x7] %vm171_vm15, %v170_v19   ;;  %175 = vst.msk [vmem:[#allocation0 + $0x8b] ss:$-30 sm:$0x18] %vm171_vm15, %v170_v19   ;;  %v260_v21 = vpop.permute.xlu1 %259  }
  0x8b   :  { %vm222_vm15 = vcmask 1048256   ;;  %219 = vst.msk [vmem:[#allocation0 + $0x41] ss:$-30 sm:$0x7] %vm217_vm14, %v216_v20  }
  0x8c   :  { %221 = vst.msk [vmem:[#allocation0 + $0x8c] ss:$-30 sm:$0x18] %vm217_vm14, %v216_v20   ;;  %vm266_vm14 = vcmask 1048192  }
  0x8d   :  { %224 = vst.msk [vmem:[#allocation0 + $0x40] ss:$-30 sm:$0x7] %vm222_vm15, %v216_v20   ;;  %226 = vst.msk [vmem:[#allocation0 + $0x8b] ss:$-30 sm:$0x18] %vm222_vm15, %v216_v20  }
  0x8e   :  { %263 = vst.msk [vmem:[#allocation0 + $0x42] ss:$-30 sm:$0x7] %vm261_vm13, %v260_v21   ;;  %265 = vst.msk [vmem:[#allocation0 + $0x8d] ss:$-30 sm:$0x18] %vm261_vm13, %v260_v21   ;;  %v304_v22 = vpop.permute.xlu0 %303  }
  0x8f   :  { %268 = vst.msk [vmem:[#allocation0 + $0x41] ss:$-30 sm:$0x7] %vm266_vm14, %v260_v21   ;;  %270 = vst.msk [vmem:[#allocation0 + $0x8c] ss:$-30 sm:$0x18] %vm266_vm14, %v260_v21  }
  0x90   :  { %vm310_vm13 = vcmask 1048128   ;;  %307 = vst.msk [vmem:[#allocation0 + $0x43] ss:$-30 sm:$0x7] %vm305_vm12, %v304_v22  }
  0x91   :  { %309 = vst.msk [vmem:[#allocation0 + $0x8e] ss:$-30 sm:$0x18] %vm305_vm12, %v304_v22   ;;  %vm354_vm12 = vcmask 1048064   ;;  %v348_v23 = vpop.permute.xlu1 %347  }
  0x92   :  { %312 = vst.msk [vmem:[#allocation0 + $0x42] ss:$-30 sm:$0x7] %vm310_vm13, %v304_v22   ;;  %314 = vst.msk [vmem:[#allocation0 + $0x8d] ss:$-30 sm:$0x18] %vm310_vm13, %v304_v22  }
  0x93   :  { %351 = vst.msk [vmem:[#allocation0 + $0x44] ss:$-30 sm:$0x7] %vm301_vm11, %v348_v23   ;;  %353 = vst.msk [vmem:[#allocation0 + $0x8f] ss:$-30 sm:$0x18] %vm301_vm11, %v348_v23  }
  0x94   :  { %356 = vst.msk [vmem:[#allocation0 + $0x43] ss:$-30 sm:$0x7] %vm354_vm12, %v348_v23   ;;  %358 = vst.msk [vmem:[#allocation0 + $0x8e] ss:$-30 sm:$0x18] %vm354_vm12, %v348_v23   ;;  %v392_v24 = vpop.permute.xlu0 %391  }
  0x95   :  { %vm398_vm11 = vcmask 1048000   ;;  %395 = vst.msk [vmem:[#allocation0 + $0x45] ss:$-30 sm:$0x7] %vm257_vm10, %v392_v24  }
  0x96   :  { %397 = vst.msk [vmem:[#allocation0 + $0x90] ss:$-30 sm:$0x18] %vm257_vm10, %v392_v24   ;;  %vm442_vm10 = vcmask 1047936  }
  0x97   :  { %400 = vst.msk [vmem:[#allocation0 + $0x44] ss:$-30 sm:$0x7] %vm398_vm11, %v392_v24   ;;  %402 = vst.msk [vmem:[#allocation0 + $0x8f] ss:$-30 sm:$0x18] %vm398_vm11, %v392_v24  }
  0x98   :  { %v436_v25 = vpop.permute.xlu1 %435  }
  0x99   :  { %439 = vst.msk [vmem:[#allocation0 + $0x46] ss:$-30 sm:$0x7] %vm213_vm9, %v436_v25   ;;  %441 = vst.msk [vmem:[#allocation0 + $0x91] ss:$-30 sm:$0x18] %vm213_vm9, %v436_v25  }
  0x9a   :  { %444 = vst.msk [vmem:[#allocation0 + $0x45] ss:$-30 sm:$0x7] %vm442_vm10, %v436_v25   ;;  %446 = vst.msk [vmem:[#allocation0 + $0x90] ss:$-30 sm:$0x18] %vm442_vm10, %v436_v25  }
  0x9b   :  { %vm486_vm9 = vcmask 1047872   ;;  %v480_v26 = vpop.permute.xlu0 %479  }
  0x9c   :  { %483 = vst.msk [vmem:[#allocation0 + $0x47] ss:$-30 sm:$0x7] %vm167_vm8, %v480_v26   ;;  %485 = vst.msk [vmem:[#allocation0 + $0x92] ss:$-30 sm:$0x18] %vm167_vm8, %v480_v26  }
  0x9d   :  { %488 = vst.msk [vmem:[#allocation0 + $0x46] ss:$-30 sm:$0x7] %vm486_vm9, %v480_v26   ;;  %490 = vst.msk [vmem:[#allocation0 + $0x91] ss:$-30 sm:$0x18] %vm486_vm9, %v480_v26  }
  0x9e   :  { %vm530_vm8 = vcmask 1047808   ;;  %v524_v27 = vpop.permute.xlu1 %523  }
  0x9f   :  { %532 = vst.msk [vmem:[#allocation0 + $0x47] ss:$-30 sm:$0x7] %vm530_vm8, %v524_v27   ;;  %534 = vst.msk [vmem:[#allocation0 + $0x92] ss:$-30 sm:$0x18] %vm530_vm8, %v524_v27  }
  0xa0   :  { %527 = vst.msk [vmem:[#allocation0 + $0x48] ss:$-30 sm:$0x7] %vm122_vm5, %v524_v27   ;;  %529 = vst.msk [vmem:[#allocation0 + $0x93] ss:$-30 sm:$0x18] %vm122_vm5, %v524_v27  }
  0xa1   :  { %vm574_vm5 = vcmask 1047744  }
  0xa2   :  { %v568_v28 = vpop.permute.xlu0 %567  }
  0xa3   :  { %571 = vst.msk [vmem:[#allocation0 + $0x49] ss:$-30 sm:$0x7] %vm80_vm6, %v568_v28   ;;  %573 = vst.msk [vmem:[#allocation0 + $0x94] ss:$-30 sm:$0x18] %vm80_vm6, %v568_v28  }
  0xa4   :  { %576 = vst.msk [vmem:[#allocation0 + $0x48] ss:$-30 sm:$0x7] %vm574_vm5, %v568_v28   ;;  %578 = vst.msk [vmem:[#allocation0 + $0x93] ss:$-30 sm:$0x18] %vm574_vm5, %v568_v28  }
  0xa5   :  { %vm618_vm6 = vcmask 1047680   ;;  %v612_v29 = vpop.permute.xlu1 %611  }
  0xa6   :  { %615 = vst.msk [vmem:[#allocation0 + $0x4a] ss:$-30 sm:$0x7] %vm1309_vm7, %v612_v29   ;;  %v639_v30 = vpop.permute.xlu0 %638  }
  0xa7   :  { %617 = vst.msk [vmem:[#allocation0 + $0x95] ss:$-30 sm:$0x18] %vm1310_vm0, %v612_v29  }
  0xa8   :  { %620 = vst.msk [vmem:[#allocation0 + $0x49] ss:$-30 sm:$0x7] %vm618_vm6, %v612_v29   ;;  %622 = vst.msk [vmem:[#allocation0 + $0x94] ss:$-30 sm:$0x18] %vm618_vm6, %v612_v29  }
  0xa9   :  { %642 = vst.msk [vmem:[#allocation0 + $0x4a] ss:$-30 sm:$0x7] %vm640_vm4, %v639_v30   ;;  %644 = vst.msk [vmem:[#allocation0 + $0x95] ss:$-30 sm:$0x18] %vm640_vm4, %v639_v30  }
  0xaa   :  { %792 = shalt.err (!%p789_p4)
}
  0xab   :  { %s793_s26 = scalar_lea.hbm %s1307_s1, 1280 }
  0xac   :  { %p794_p5 = scmp.ne.s32.totalorder %s1307_s1, %s793_s26  ;;  %p797_p6 = scmp.lt.u32.totalorder %s793_s26, %s1307_s1 }
  0xae   :  { %p799_p7 = pnand %p797_p6, %p794_p5 }
  0xb0   :  { %802 = shalt.err (!%p799_p7)
}
  0xb1   :  { %652 = dma.vmem_to_hbm [thread:$0]  %s650_s22, 1280, %s1307_s1, [#allocation1]  }
  0xb2   :  { %803 = dma.done.wait [#allocation1], 1280  }
  0xb3   :  { %804 = vsyncadd [#allocation1], 4294966016 }
  0xb4   :  { %654 = vsyncpa [#allocation1], 1 }

// kernel: squeeze.20
= control target key start
LH: loop header
LB: loop body
LE: loop exit
PB: predicated region body
PF: predicated region fallthrough
CT: control target
= control target key end

     0   :  { %s23_s8 = smov 3  ;;  %vm28_vm0 = vcmask 1043458   ;;  %s106_s9 = smov 112   ;;  %vm3_vm1 = vcmask 130048   ;;  %vm74_vm2 = vcmask 1043459   ;;  %vm14_vm3 = vcmask 1048448   ;;  %s174_s0 = inlined_call_operand.vmem [shape: f32[1,5,6,16], index: 0, kind: input, shape index: {}]   ;;  %s175_s1 = inlined_call_operand.vmem [shape: f32[480], index: 1, kind: output, shape index: {}]  }
   0x1   :  { %v87_v0 = vld [vmem:[%s174_s0 + $0x9] ss:$10 sm:$0x7]   ;;  %s26_s12 = smov 12  ;;  %s35_s17 = smov 3  ;;  %vm20_vm4 = vcmask 917248  }
   0x2   :  { %12 = vrot.lane.b32.xlu0 %v87_v0, %s106_s9  ;;  %v89_v1 = vld [vmem:[%s174_s0 + $0x5] ss:$12 sm:%s23_s8]   ;;  %v88_v3 = vld [vmem:[%s174_s0 + $0x8] ss:$10 sm:$0x7]   ;;  %s38_s18 = smov 12 }
   0x3   :  { %v90_v2 = vld [vmem:[%s174_s0 + $0x7] ss:$10 sm:%s26_s12]   ;;  %s107_s19 = smov 80   ;;  %v91_v5 = vld [vmem:[%s174_s0 + $0x4] ss:$12 sm:%s35_s17]   ;;  %s47_s22 = smov 3 }
   0x4   :  { %v29_v4 = vsel %vm28_vm0, %v90_v2, %v89_v1  ;;  %s108_s23 = smov 96   ;;  %v92_v6 = vld [vmem:[%s174_s0 + $0x6] ss:$10 sm:%s38_s18]   ;;  %s50_s26 = smov 12  ;;  %v98_v8 = vld [vmem:[%s174_s0 + $0x1e] sm:$0x8]  }
   0x5   :  { %30 = vrot.lane.b32.xlu1 %v29_v4, %s107_s19  ;;  %v97_v7 = vld [vmem:[%s174_s0 + $0x1] ss:$10 sm:$0x7]   ;;  %v86_v9 = vld [vmem:[%s174_s0 + $0x20] sm:$0x1]   ;;  %v41_v10 = vsel %vm28_vm0, %v92_v6, %v91_v5  ;;  %s59_s8 = smov 3 }
   0x6   :  { %18 = vrot.lane.b32.xlu0 %v88_v3, %s108_s23  ;;  %v93_v11 = vld [vmem:[%s174_s0 + $0x3] ss:$10 sm:%s47_s22]   ;;  %s62_s9 = smov 12  ;;  %9 = vst.msk [vmem:[#allocation0 + $0x3] sm:$0x1] %vm3_vm1, %v86_v9   ;;  %s109_s14 = smov 64   ;;  %v75_v18 = vsel %vm74_vm2, %v98_v8, %v97_v7 }
   0x7   :  { %v94_v12 = vld [vmem:[%s174_s0 + $0x5] ss:$10 sm:%s50_s26]   ;;  %v95_v14 = vld [vmem:[%s174_s0 + $0x2] ss:$10 sm:%s59_s8]   ;;  %s111_s17 = smov 32   ;;  %s112_s18 = smov 16  }
   0x8   :  { %v53_v13 = vsel %vm28_vm0, %v94_v12, %v93_v11  ;;  %v96_v15 = vld [vmem:[%s174_s0 + $0x4] ss:$10 sm:%s62_s9]   ;;  %vm32_vm5 = vcmask 786048   ;;  %vm44_vm6 = vcmask 654848   ;;  %vm56_vm7 = vcmask 523648  }
   0x9   :  { %42 = vrot.lane.b32.xlu1 %v41_v10, %s109_s14  ;;  %v2_v16 = vld [vmem:[%s174_s0] ss:$10 sm:$0x7]   ;;  %s110_s0 = smov 48   ;;  %v65_v17 = vsel %vm28_vm0, %v96_v15, %v95_v14  ;;  %vm68_vm8 = vcmask 392448   ;;  %vm78_vm9 = vcmask 261248  }
   0xa   :  { %54 = vrot.lane.b32.xlu0 %v53_v13, %s110_s0  ;;  %4 = vst.msk [vmem:[#allocation0] sm:$0x7] %vm3_vm1, %v2_v16  }
   0xd   :  { %66 = vrot.lane.b32.xlu1 %v65_v17, %s111_s17 }
   0xe   :  { %76 = vrot.lane.b32.xlu0 %v75_v18, %s112_s18 }
  0x74   :  { %v13_v19 = vpop.permute.xlu0 %12  }
  0x75   :  { %15 = vst.msk [vmem:[#allocation0] sm:$0x7] %vm14_vm3, %v13_v19  }
  0x77   :  { %v31_v20 = vpop.permute.xlu1 %30  }
  0x78   :  { %v19_v21 = vpop.permute.xlu0 %18  }
  0x79   :  { %21 = vst.msk [vmem:[#allocation0] sm:$0x7] %vm20_vm4, %v19_v21  }
  0x7a   :  { %33 = vst.msk [vmem:[#allocation0] sm:$0xf] %vm32_vm5, %v31_v20  }
  0x7b   :  { %v43_v22 = vpop.permute.xlu1 %42  }
  0x7c   :  { %45 = vst.msk [vmem:[#allocation0] sm:$0xf] %vm44_vm6, %v43_v22   ;;  %v55_v23 = vpop.permute.xlu0 %54  }
  0x7d   :  { %57 = vst.msk [vmem:[#allocation0] sm:$0xf] %vm56_vm7, %v55_v23  }
  0x7f   :  { %v67_v24 = vpop.permute.xlu1 %66  }
  0x80   :  { %69 = vst.msk [vmem:[#allocation0] sm:$0xf] %vm68_vm8, %v67_v24   ;;  %v77_v25 = vpop.permute.xlu0 %76  }
  0x81   :  { %79 = vst.msk [vmem:[#allocation0] sm:$0xf] %vm78_vm9, %v77_v25  }
  0x88   :  { %v83_v26 = vld [vmem:[#allocation0] sm:$0xf] }
  0x89   :  { %85 = vst [vmem:[%s175_s1] sm:$0xf] %v83_v26 }

// kernel: squeeze.15
= control target key start
LH: loop header
LB: loop body
LE: loop exit
PB: predicated region body
PF: predicated region fallthrough
CT: control target
= control target key end

     0   :  { %s43_s10 = smov 24   ;;  %s44_s11 = smov 12   ;;  %vm3_vm0 = vcmask 48128   ;;  %vm9_vm1 = vcmask 244928   ;;  %vm15_vm2 = vcmask 195728   ;;  %vm21_vm3 = vcmask 146528   ;;  %s75_s0 = inlined_call_operand.vmem [shape: f32[5,6], index: 0, kind: input, shape index: {}]   ;;  %s76_s1 = inlined_call_operand.vmem [shape: f32[30], index: 1, kind: output, shape index: {}]  }
   0x1   :  { %v35_v0 = vld [vmem:[%s75_s0 + $0x4] sm:$0x1]   ;;  %v37_v1 = vld [vmem:[%s75_s0 + $0x2] sm:$0x1]   ;;  %v36_v2 = vld [vmem:[%s75_s0 + $0x3] sm:$0x1]  }
   0x2   :  { %7 = vrot.lane.b32.xlu0 %v35_v0, %s43_s10  ;;  %19 = vrot.lane.b32.xlu1 %v37_v1, %s44_s11  ;;  %v38_v3 = vld [vmem:[%s75_s0 + $0x1] sm:$0x1]   ;;  %v2_v4 = vld [vmem:[%s75_s0] sm:$0x1]   ;;  %s45_s0 = smov 18   ;;  %s46_s18 = smov 6  }
   0x3   :  { %4 = vst.msk [vmem:[#allocation0] sm:$0x1] %vm3_vm0, %v2_v4   ;;  %vm27_vm4 = vcmask 97328  }
   0x6   :  { %13 = vrot.lane.b32.xlu0 %v36_v2, %s45_s0  ;;  %25 = vrot.lane.b32.xlu1 %v38_v3, %s46_s18 }
  0x74   :  { %v8_v5 = vpop.permute.xlu0 %7   ;;  %v20_v6 = vpop.permute.xlu1 %19  }
  0x75   :  { %10 = vst.msk [vmem:[#allocation0] sm:$0x1] %vm9_vm1, %v8_v5  }
  0x78   :  { %v14_v7 = vpop.permute.xlu0 %13   ;;  %v26_v8 = vpop.permute.xlu1 %25  }
  0x79   :  { %16 = vst.msk [vmem:[#allocation0] sm:$0x1] %vm15_vm2, %v14_v7  }
  0x7a   :  { %22 = vst.msk [vmem:[#allocation0] sm:$0x1] %vm21_vm3, %v20_v6  }
  0x7b   :  { %28 = vst.msk [vmem:[#allocation0] sm:$0x1] %vm27_vm4, %v26_v8  }
  0x82   :  { %v32_v9 = vld [vmem:[#allocation0] sm:$0x1] }
  0x83   :  { %34 = vst [vmem:[%s76_s1] sm:$0x1] %v32_v9 }

// kernel: tile.13
= control target key start
LH: loop header
LB: loop body
LE: loop exit
PB: predicated region body
PF: predicated region fallthrough
CT: control target
= control target key end

     0   :  { %s40_s0 = inlined_call_operand.vmem [shape: f32[6], index: 0, kind: input, shape index: {}]   ;;  %s41_s1 = inlined_call_operand.vmem [shape: f32[28,6], index: 1, kind: output, shape index: {}]  }
   0x1   :  { %v4_v0 = vld [vmem:[%s40_s0] ss:$0 sm:$0xff] }
   0x2   :  { %5 = vst [vmem:[%s41_s1] sm:$0xff] %v4_v0  ;;  %12 = vst [vmem:[%s41_s1 + $0x8] sm:$0xff] %v4_v0 }
   0x3   :  { %13 = vst [vmem:[%s41_s1 + $0x10] sm:$0xff] %v4_v0  ;;  %14 = vst [vmem:[%s41_s1 + $0x18] sm:$0xff] %v4_v0 }

// kernel: tile.14
= control target key start
LH: loop header
LB: loop body
LE: loop exit
PB: predicated region body
PF: predicated region fallthrough
CT: control target
= control target key end

     0   :  { %vm9_vm0 = vcmask 15360   ;;  %s247_s12 = smov 126   ;;  %s248_s13 = smov 114   ;;  %vm3_vm1 = vcmask 48128   ;;  %vm13_vm2 = vcmask 31744   ;;  %vm16_vm3 = vcmask 1048560   ;;  %s377_s0 = inlined_call_operand.vmem [shape: f32[28,6], index: 0, kind: input, shape index: {}]   ;;  %s378_s1 = inlined_call_operand.vmem [shape: f32[1,168], index: 1, kind: output, shape index: {}]  }
   0x1   :  { %v191_v0 = vld [vmem:[%s377_s0 + $0x15] sm:$0x1]   ;;  %v194_v3 = vld [vmem:[%s377_s0 + $0x13] sm:$0x1]   ;;  %v193_v4 = vld [vmem:[%s377_s0 + $0x14] sm:$0x1]  }
   0x2   :  { %v192_v1 = vld [vmem:[%s377_s0 + $0x15] sm:$0x1]   ;;  %26 = vrot.lane.b32.xlu1 %v194_v3, %s248_s13  ;;  %v195_v5 = vld [vmem:[%s377_s0 + $0x12] sm:$0x1]   ;;  %s249_s18 = smov 120   ;;  %s250_s19 = smov 108  }
   0x3   :  { %v10_v2 = vsel %vm9_vm0, %v192_v1, %v191_v0  ;;  %v196_v6 = vld [vmem:[%s377_s0 + $0x11] sm:$0x1]   ;;  %v197_v7 = vld [vmem:[%s377_s0 + $0x10] sm:$0x1]   ;;  %s251_s24 = smov 102   ;;  %s252_s25 = smov 96  }
   0x4   :  { %11 = vrot.lane.b32.xlu0 %v10_v2, %s247_s12  ;;  %v198_v8 = vld [vmem:[%s377_s0 + $0xf] sm:$0x1]   ;;  %v199_v9 = vld [vmem:[%s377_s0 + $0xe] sm:$0x1]   ;;  %s253_s30 = smov 90   ;;  %s254_s2 = smov 84  }
   0x5   :  { %v2_v10 = vld [vmem:[%s377_s0] sm:$0x1]   ;;  %v200_v11 = vld [vmem:[%s377_s0 + $0xd] sm:$0x1]   ;;  %v201_v12 = vld [vmem:[%s377_s0 + $0xc] sm:$0x1]  }
   0x6   :  { %32 = vrot.lane.b32.xlu1 %v195_v5, %s250_s19  ;;  %4 = vst.msk [vmem:[#allocation0] sm:$0x1] %vm3_vm1, %v2_v10   ;;  %s255_s9 = smov 78   ;;  %s256_s10 = smov 72   ;;  %v202_v13 = vld [vmem:[%s377_s0 + $0xb] sm:$0x1]  }
   0x7   :  { %v203_v14 = vld [vmem:[%s377_s0 + $0xa] sm:$0x1]   ;;  %s257_s15 = smov 66   ;;  %s258_s16 = smov 60   ;;  %v204_v15 = vld [vmem:[%s377_s0 + $0x9] sm:$0x1]  }
   0x8   :  { %20 = vrot.lane.b32.xlu0 %v193_v4, %s249_s18  ;;  %v205_v16 = vld [vmem:[%s377_s0 + $0x8] sm:$0x1]   ;;  %s259_s21 = smov 54   ;;  %s260_s22 = smov 48   ;;  %v206_v17 = vld [vmem:[%s377_s0 + $0x7] sm:$0x1]  }
   0x9   :  { %v207_v18 = vld [vmem:[%s377_s0 + $0x6] sm:$0x1]   ;;  %s261_s27 = smov 42   ;;  %s262_s28 = smov 36   ;;  %v208_v19 = vld [vmem:[%s377_s0 + $0x1b] sm:$0x1]  }
   0xa   :  { %44 = vrot.lane.b32.xlu1 %v197_v7, %s252_s25  ;;  %v209_v20 = vld [vmem:[%s377_s0 + $0x5] sm:$0x1]   ;;  %s263_s4 = smov 34   ;;  %s264_s5 = smov 30   ;;  %v210_v21 = vld [vmem:[%s377_s0 + $0x1a] sm:$0x1]  }
   0xb   :  { %v211_v22 = vld [vmem:[%s377_s0 + $0x4] sm:$0x1]   ;;  %s266_s11 = smov 24   ;;  %v212_v23 = vld [vmem:[%s377_s0 + $0x19] sm:$0x1]   ;;  %s268_s17 = smov 18  }
   0xc   :  { %38 = vrot.lane.b32.xlu0 %v196_v6, %s251_s24  ;;  %v213_v24 = vld [vmem:[%s377_s0 + $0x3] sm:$0x1]   ;;  %v214_v25 = vld [vmem:[%s377_s0 + $0x18] sm:$0x1]   ;;  %v215_v26 = vld [vmem:[%s377_s0 + $0x2] sm:$0x1]  }
   0xd   :  { %s270_s23 = smov 12   ;;  %v216_v27 = vld [vmem:[%s377_s0 + $0x17] sm:$0x1]   ;;  %v217_v28 = vld [vmem:[%s377_s0 + $0x1] sm:$0x1]   ;;  %s272_s29 = smov 6  }
   0xe   :  { %56 = vrot.lane.b32.xlu1 %v199_v9, %s254_s2  ;;  %v218_v29 = vld [vmem:[%s377_s0 + $0x16] sm:$0x1]   ;;  %s273_s0 = smov 4   ;;  %vm22_vm4 = vcmask 1032128   ;;  %vm28_vm5 = vcmask 982928   ;;  %vm34_vm6 = vcmask 933728  }
   0xf   :  { %vm40_vm7 = vcmask 884528   ;;  %vm46_vm8 = vcmask 835328   ;;  %vm52_vm9 = vcmask 786128   ;;  %vm58_vm10 = vcmask 736928  }
  0x10   :  { %50 = vrot.lane.b32.xlu0 %v198_v8, %s253_s30  ;;  %vm64_vm11 = vcmask 687728   ;;  %vm70_vm12 = vcmask 638528   ;;  %vm76_vm13 = vcmask 589328   ;;  %vm82_vm14 = vcmask 540128  }
  0x11   :  { %vm88_vm15 = vcmask 490928   ;;  %vm94_vm0 = vcmask 441728   ;;  %vm100_vm1 = vcmask 392528  }
  0x12   :  { %68 = vrot.lane.b32.xlu1 %v201_v12, %s256_s10  ;;  %s265_s10 = smov 28  }
  0x14   :  { %62 = vrot.lane.b32.xlu0 %v200_v11, %s255_s9 }
  0x16   :  { %80 = vrot.lane.b32.xlu1 %v203_v14, %s258_s16  ;;  %s267_s16 = smov 22  }
  0x18   :  { %74 = vrot.lane.b32.xlu0 %v202_v13, %s257_s15 }
  0x1a   :  { %92 = vrot.lane.b32.xlu1 %v205_v16, %s260_s22  ;;  %s269_s22 = smov 16  }
  0x1c   :  { %86 = vrot.lane.b32.xlu0 %v204_v15, %s259_s21 }
  0x1e   :  { %104 = vrot.lane.b32.xlu1 %v207_v18, %s262_s28  ;;  %s271_s28 = smov 10  }
  0x20   :  { %98 = vrot.lane.b32.xlu0 %v206_v17, %s261_s27 }
  0x22   :  { %117 = vrot.lane.b32.xlu1 %v209_v20, %s264_s5 }
  0x24   :  { %110 = vrot.lane.b32.xlu0 %v208_v19, %s263_s4 }
  0x26   :  { %130 = vrot.lane.b32.xlu1 %v211_v22, %s266_s11 }
  0x28   :  { %123 = vrot.lane.b32.xlu0 %v210_v21, %s265_s10 }
  0x2a   :  { %143 = vrot.lane.b32.xlu1 %v213_v24, %s268_s17 }
  0x2c   :  { %136 = vrot.lane.b32.xlu0 %v212_v23, %s267_s16 }
  0x2e   :  { %156 = vrot.lane.b32.xlu1 %v215_v26, %s270_s23 }
  0x30   :  { %149 = vrot.lane.b32.xlu0 %v214_v25, %s269_s22 }
  0x32   :  { %169 = vrot.lane.b32.xlu1 %v217_v28, %s272_s29 }
  0x34   :  { %162 = vrot.lane.b32.xlu0 %v216_v27, %s271_s28 }
  0x38   :  { %175 = vrot.lane.b32.xlu0 %v218_v29, %s273_s0 }
  0x74   :  { %v27_v31 = vpop.permute.xlu1 %26  }
  0x76   :  { %v12_v30 = vpop.permute.xlu0 %11  }
  0x77   :  { %15 = vst.msk [vmem:[#allocation0 + $0x8] sm:$0x1] %vm13_vm2, %v12_v30   ;;  %vm106_vm2 = vcmask 343328  }
  0x78   :  { %17 = vst.msk [vmem:[#allocation0] sm:$0x1] %vm16_vm3, %v12_v30   ;;  %v33_v33 = vpop.permute.xlu1 %32   ;;  %vm112_vm3 = vcmask 326928  }
  0x7a   :  { %v21_v32 = vpop.permute.xlu0 %20  }
  0x7b   :  { %23 = vst.msk [vmem:[#allocation0] sm:$0x1] %vm22_vm4, %v21_v32   ;;  %vm119_vm4 = vcmask 294128  }
  0x7c   :  { %29 = vst.msk [vmem:[#allocation0] sm:$0x1] %vm28_vm5, %v27_v31   ;;  %v45_v35 = vpop.permute.xlu1 %44   ;;  %vm125_vm5 = vcmask 277728  }
  0x7d   :  { %35 = vst.msk [vmem:[#allocation0] sm:$0x1] %vm34_vm6, %v33_v33   ;;  %vm132_vm6 = vcmask 244928  }
  0x7e   :  { %v39_v34 = vpop.permute.xlu0 %38  }
  0x7f   :  { %41 = vst.msk [vmem:[#allocation0] sm:$0x1] %vm40_vm7, %v39_v34   ;;  %vm138_vm7 = vcmask 228528  }
  0x80   :  { %47 = vst.msk [vmem:[#allocation0] sm:$0x1] %vm46_vm8, %v45_v35   ;;  %v57_v37 = vpop.permute.xlu1 %56   ;;  %vm145_vm8 = vcmask 195728  }
  0x82   :  { %v51_v36 = vpop.permute.xlu0 %50  }
  0x83   :  { %53 = vst.msk [vmem:[#allocation0] sm:$0x1] %vm52_vm9, %v51_v36   ;;  %vm151_vm9 = vcmask 179328  }
  0x84   :  { %59 = vst.msk [vmem:[#allocation0] sm:$0x1] %vm58_vm10, %v57_v37   ;;  %v69_v39 = vpop.permute.xlu1 %68   ;;  %vm158_vm10 = vcmask 146528  }
  0x86   :  { %v63_v38 = vpop.permute.xlu0 %62  }
  0x87   :  { %65 = vst.msk [vmem:[#allocation0] sm:$0x1] %vm64_vm11, %v63_v38   ;;  %vm164_vm11 = vcmask 130128  }
  0x88   :  { %71 = vst.msk [vmem:[#allocation0] sm:$0x1] %vm70_vm12, %v69_v39   ;;  %v81_v41 = vpop.permute.xlu1 %80   ;;  %vm171_vm12 = vcmask 97328  }
  0x8a   :  { %v75_v40 = vpop.permute.xlu0 %74  }
  0x8b   :  { %77 = vst.msk [vmem:[#allocation0] sm:$0x1] %vm76_vm13, %v75_v40   ;;  %vm177_vm13 = vcmask 80928  }
  0x8c   :  { %83 = vst.msk [vmem:[#allocation0] sm:$0x1] %vm82_vm14, %v81_v41   ;;  %v93_v43 = vpop.permute.xlu1 %92  }
  0x8e   :  { %v87_v42 = vpop.permute.xlu0 %86  }
  0x8f   :  { %89 = vst.msk [vmem:[#allocation0] sm:$0x1] %vm88_vm15, %v87_v42  }
  0x90   :  { %95 = vst.msk [vmem:[#allocation0] sm:$0x1] %vm94_vm0, %v93_v43   ;;  %v105_v45 = vpop.permute.xlu1 %104  }
  0x92   :  { %v99_v44 = vpop.permute.xlu0 %98  }
  0x93   :  { %101 = vst.msk [vmem:[#allocation0] sm:$0x1] %vm100_vm1, %v99_v44  }
  0x94   :  { %107 = vst.msk [vmem:[#allocation0] sm:$0x1] %vm106_vm2, %v105_v45   ;;  %v118_v47 = vpop.permute.xlu1 %117  }
  0x95   :  { %120 = vst.msk [vmem:[#allocation0] sm:$0x1] %vm119_vm4, %v118_v47  }
  0x96   :  { %v111_v46 = vpop.permute.xlu0 %110  }
  0x97   :  { %114 = vst.msk [vmem:[#allocation0 + $0x8] sm:$0x1] %vm112_vm3, %v111_v46  }
  0x98   :  { %v131_v49 = vpop.permute.xlu1 %130  }
  0x99   :  { %133 = vst.msk [vmem:[#allocation0] sm:$0x1] %vm132_vm6, %v131_v49  }
  0x9a   :  { %v124_v48 = vpop.permute.xlu0 %123  }
  0x9b   :  { %127 = vst.msk [vmem:[#allocation0 + $0x8] sm:$0x1] %vm125_vm5, %v124_v48  }
  0x9c   :  { %v144_v51 = vpop.permute.xlu1 %143  }
  0x9d   :  { %146 = vst.msk [vmem:[#allocation0] sm:$0x1] %vm145_vm8, %v144_v51  }
  0x9e   :  { %v137_v50 = vpop.permute.xlu0 %136  }
  0x9f   :  { %140 = vst.msk [vmem:[#allocation0 + $0x8] sm:$0x1] %vm138_vm7, %v137_v50  }
  0xa0   :  { %v157_v53 = vpop.permute.xlu1 %156  }
  0xa1   :  { %159 = vst.msk [vmem:[#allocation0] sm:$0x1] %vm158_vm10, %v157_v53  }
  0xa2   :  { %v150_v52 = vpop.permute.xlu0 %149  }
  0xa3   :  { %153 = vst.msk [vmem:[#allocation0 + $0x8] sm:$0x1] %vm151_vm9, %v150_v52  }
  0xa4   :  { %v170_v55 = vpop.permute.xlu1 %169  }
  0xa5   :  { %172 = vst.msk [vmem:[#allocation0] sm:$0x1] %vm171_vm12, %v170_v55  }
  0xa6   :  { %v163_v54 = vpop.permute.xlu0 %162  }
  0xa7   :  { %166 = vst.msk [vmem:[#allocation0 + $0x8] sm:$0x1] %vm164_vm11, %v163_v54  }
  0xaa   :  { %v176_v56 = vpop.permute.xlu0 %175  }
  0xab   :  { %179 = vst.msk [vmem:[#allocation0 + $0x8] sm:$0x1] %vm177_vm13, %v176_v56  }
  0xac   :  { %v183_v57 = vld [vmem:[#allocation0] sm:$0x1] }
  0xad   :  { %185 = vst [vmem:[%s378_s1] sm:$0x1] %v183_v57 }
  0xb2   :  { %v187_v58 = vld [vmem:[#allocation0 + $0x8] sm:$0x1] }
  0xb3   :  { %219 = vst [vmem:[%s378_s1 + $0x1] sm:$0x1] %v187_v58 }

// kernel: tile.18
= control target key start
LH: loop header
LB: loop body
LE: loop exit
PB: predicated region body
PF: predicated region fallthrough
CT: control target
= control target key end

     0   :  { %s28_s0 = inlined_call_operand.vmem [shape: f32[16], index: 0, kind: input, shape index: {}]   ;;  %s29_s1 = inlined_call_operand.vmem [shape: f32[10,16], index: 1, kind: output, shape index: {}]  }
   0x1   :  { %v4_v0 = vld [vmem:[%s28_s0] ss:$0 sm:$0xff] }
   0x2   :  { %5 = vst [vmem:[%s29_s1] sm:$0xff] %v4_v0  ;;  %8 = vst [vmem:[%s29_s1 + $0x8] sm:$0xff] %v4_v0 }

// kernel: tile.19
= control target key start
LH: loop header
LB: loop body
LE: loop exit
PB: predicated region body
PF: predicated region fallthrough
CT: control target
= control target key end

     0   :  { %s75_s10 = smov 112   ;;  %s76_s11 = smov 80   ;;  %vm4_vm0 = vcmask 130048   ;;  %vm10_vm1 = vcmask 1048448   ;;  %vm16_vm2 = vcmask 917248   ;;  %vm22_vm3 = vcmask 786048   ;;  %s122_s0 = inlined_call_operand.vmem [shape: f32[10,16], index: 0, kind: input, shape index: {}]   ;;  %s123_s1 = inlined_call_operand.vmem [shape: f32[1,160], index: 1, kind: output, shape index: {}]  }
   0x1   :  { %v60_v0 = vld [vmem:[%s122_s0 + $0x7] sm:$0x1]   ;;  %v62_v1 = vld [vmem:[%s122_s0 + $0x5] sm:$0x1]   ;;  %v61_v2 = vld [vmem:[%s122_s0 + $0x6] sm:$0x1]  }
   0x2   :  { %8 = vrot.lane.b32.xlu0 %v60_v0, %s75_s10  ;;  %20 = vrot.lane.b32.xlu1 %v62_v1, %s76_s11  ;;  %v63_v3 = vld [vmem:[%s122_s0 + $0x4] sm:$0x1]   ;;  %s2_s16 = smov 3  ;;  %s77_s17 = smov 96   ;;  %v64_v5 = vld [vmem:[%s122_s0 + $0x3] sm:$0x1]  }
   0x3   :  { %s78_s18 = smov 64   ;;  %v3_v4 = vld [vmem:[%s122_s0] ss:$8 sm:%s2_s16]   ;;  %v65_v6 = vld [vmem:[%s122_s0 + $0x2] sm:$0x1]   ;;  %s43_s25 = smov 3 }
   0x4   :  { %5 = vst.msk [vmem:[#allocation0] ss:$8 sm:$0x3] %vm4_vm0, %v3_v4   ;;  %s79_s26 = smov 48   ;;  %s80_s27 = smov 32   ;;  %vm28_vm4 = vcmask 654848  }
   0x5   :  { %v66_v7 = vld [vmem:[%s122_s0 + $0x1] ss:$8 sm:%s43_s25]   ;;  %s81_s0 = smov 16   ;;  %vm34_vm5 = vcmask 523648   ;;  %vm40_vm6 = vcmask 392448   ;;  %vm47_vm7 = vcmask 261248  }
   0x6   :  { %14 = vrot.lane.b32.xlu0 %v61_v2, %s77_s17  ;;  %26 = vrot.lane.b32.xlu1 %v63_v3, %s78_s18 }
   0xa   :  { %32 = vrot.lane.b32.xlu0 %v64_v5, %s79_s26  ;;  %38 = vrot.lane.b32.xlu1 %v65_v6, %s80_s27 }
   0xe   :  { %45 = vrot.lane.b32.xlu0 %v66_v7, %s81_s0 }
  0x74   :  { %v9_v8 = vpop.permute.xlu0 %8   ;;  %v21_v9 = vpop.permute.xlu1 %20  }
  0x75   :  { %11 = vst.msk [vmem:[#allocation0] sm:$0x1] %vm10_vm1, %v9_v8  }
  0x78   :  { %v15_v10 = vpop.permute.xlu0 %14   ;;  %v27_v11 = vpop.permute.xlu1 %26  }
  0x79   :  { %17 = vst.msk [vmem:[#allocation0] sm:$0x1] %vm16_vm2, %v15_v10  }
  0x7a   :  { %23 = vst.msk [vmem:[#allocation0] sm:$0x1] %vm22_vm3, %v21_v9  }
  0x7b   :  { %29 = vst.msk [vmem:[#allocation0] sm:$0x1] %vm28_vm4, %v27_v11  }
  0x7c   :  { %v33_v12 = vpop.permute.xlu0 %32   ;;  %v39_v13 = vpop.permute.xlu1 %38  }
  0x7d   :  { %35 = vst.msk [vmem:[#allocation0] sm:$0x1] %vm34_vm5, %v33_v12  }
  0x7e   :  { %41 = vst.msk [vmem:[#allocation0] sm:$0x1] %vm40_vm6, %v39_v13  }
  0x80   :  { %v46_v14 = vpop.permute.xlu0 %45  }
  0x81   :  { %48 = vst.msk [vmem:[#allocation0] ss:$8 sm:$0x3] %vm47_vm7, %v46_v14  }
  0x88   :  { %v52_v15 = vld [vmem:[#allocation0] sm:$0x1]  ;;  %v56_v16 = vld [vmem:[#allocation0 + $0x8] sm:$0x1] }
  0x89   :  { %54 = vst [vmem:[%s123_s1] sm:$0x1] %v52_v15  ;;  %67 = vst [vmem:[%s123_s1 + $0x1] sm:$0x1] %v56_v16 }

// kernel: lenet_forward.1
= control target key start
LH: loop header
LB: loop body
LE: loop exit
PB: predicated region body
PF: predicated region fallthrough
CT: control target
= control target key end

     0   :  { %v7280_v7 = vmov 0.0   ;;  %v7281_v15 = vmov 0.0|0.0   ;;  %vm107_vm0 = vcmask 1046528   ;;  %vm115_vm1 = vcmask 261120   ;;  %s10018_s0 = inlined_call_operand.vmem [shape: f32[2,32,32], index: 0, kind: input, shape index: {}]   ;;  %s10019_s1 = inlined_call_operand.vmem [shape: f32[5,32,168], index: 1, kind: input, shape index: {}]   ;;  %s10020_s2 = inlined_call_operand.vmem [shape: f32[1,168], index: 2, kind: input, shape index: {}]   ;;  %s10021_s3 = inlined_call_operand.vmem [shape: f32[2,168,84], index: 3, kind: input, shape index: {}]   ;;  %s10022_s4 = inlined_call_operand.vmem [shape: f32[2,14,28], index: 4, kind: input, shape index: {}]   ;;  %s10023_s5 = inlined_call_operand.vmem [shape: f32[5,84,160], index: 5, kind: input, shape index: {}]   ;;  %s10024_s6 = inlined_call_operand.vmem [shape: f32[1,160], index: 6, kind: input, shape index: {}]   ;;  %s10025_s7 = inlined_call_operand.vmem [shape: f32[2,160,80], index: 7, kind: input, shape index: {}]   ;;  %s10026_s8 = inlined_call_operand.vmem [shape: f32[2,5,10], index: 8, kind: input, shape index: {}]   ;;  %s10027_s9 = inlined_call_operand.vmem [shape: f32[5,80,120], index: 9, kind: input, shape index: {}]   ;;  %s10028_s10 = inlined_call_operand.vmem [shape: f32[1,120], index: 10, kind: input, shape index: {}]   ;;  %s10029_s11 = inlined_call_operand.vmem [shape: f32[120,84], index: 11, kind: input, shape index: {}]   ;;  %s10030_s12 = inlined_call_operand.vmem [shape: f32[1,84], index: 12, kind: input, shape index: {}]   ;;  %s10031_s13 = inlined_call_operand.vmem [shape: f32[84,10], index: 13, kind: input, shape index: {}]   ;;  %s10032_s14 = inlined_call_operand.vmem [shape: f32[1,10], index: 14, kind: input, shape index: {}]   ;;  %s10033_s15 = inlined_call_operand.hbm [shape: f32[2,1,10], index: 15, kind: output, shape index: {}]  }
   0x1   :  { %v5171_v0 = vld [vmem:[%s10019_s1 + $0x48] sm:$0xff]  ;;  %v5173_v1 = vld [vmem:[%s10019_s1 + $0x58] sm:$0xff]  ;;  %v5170_v2 = vld [vmem:[%s10019_s1 + $0x40] sm:$0xff]  ;;  %188 = vmatprep.mubr.f32.mxu0 %v7280_v7  ;;  %6382 = vmatprep.subr.bf16.mxu1 %v7281_v15  ;;  %vm563_vm2 = vcmask 1043456  }
   0x2   :  { %v6342_v3 = vpack.c.bf16 %v5173_v1, %v5171_v0  ;;  %v5172_v4 = vld [vmem:[%s10019_s1 + $0x50] sm:$0xff]  ;;  %v5175_v5 = vld [vmem:[%s10019_s1 + $0x68] sm:$0xff]  ;;  %v5177_v6 = vld [vmem:[%s10019_s1 + $0x78] sm:$0xff] }
   0x3   :  { %v6344_v8 = vpack.c.bf16 %v5172_v4, %v5170_v2  ;;  %v6346_v9 = vpack.c.bf16 %v5177_v6, %v5175_v5  ;;  %v5174_v10 = vld [vmem:[%s10019_s1 + $0x60] sm:$0xff]  ;;  %v5176_v11 = vld [vmem:[%s10019_s1 + $0x70] sm:$0xff]  ;;  %v7400_v13 = vld [vmem:[%s10018_s0 + $0x8] sm:$0xff] }
   0x4   :  { %v7395_v12 = vld [vmem:[%s10018_s0] sm:$0xff]  ;;  %6343 = vmatprep.subr.bf16.mxu0 %v6342_v3  ;;  %v87_v14 = vld [vmem:[%s10019_s1 + $0x8] sm:$0xff]  ;;  %v6348_v16 = vpack.c.bf16 %v5176_v11, %v5174_v10  ;;  %v109_v18 = vrot.slane %v7400_v13, 1  ;;  %v7411_v19 = vld [vmem:[%s10018_s0 + $0x10] sm:$0xff]  ;;  %v565_v36 = vrot.slane %v7400_v13, 4 }
   0x5   :  { %6345 = vmatpush1.bf16.msra.mxu0 %v6344_v8  ;;  %v108_v17 = vrot.slane %v7395_v12, 1  ;;  %v89_v20 = vld [vmem:[%s10019_s1 + $0x18] sm:$0xff]  ;;  %v86_v22 = vld [vmem:[%s10019_s1] sm:$0xff]  ;;  %v88_v23 = vld [vmem:[%s10019_s1 + $0x10] sm:$0xff]  ;;  %v111_v26 = vrot.slane %v7411_v19, 1  ;;  %v564_v35 = vrot.slane %v7395_v12, 4 }
   0x6   :  { %6347 = vmatprep.subr.bf16.mxu0 %v6346_v9  ;;  %v6350_v21 = vpack.c.bf16 %v89_v20, %v87_v14  ;;  %v91_v24 = vld [vmem:[%s10019_s1 + $0x28] sm:$0xff]  ;;  %v93_v25 = vld [vmem:[%s10019_s1 + $0x38] sm:$0xff]  ;;  %v6352_v28 = vpack.c.bf16 %v88_v23, %v86_v22  ;;  %v90_v31 = vld [vmem:[%s10019_s1 + $0x20] sm:$0xff]  ;;  %v567_v38 = vrot.slane %v7411_v19, 4 }
   0x7   :  { %v110_v27 = vsel %vm107_vm0, %v108_v17, %v109_v18  ;;  %v7433_v29 = vld [vmem:[%s10018_s0 + $0x18] sm:$0xff]  ;;  %v6354_v30 = vpack.c.bf16 %v93_v25, %v91_v24  ;;  %v92_v32 = vld [vmem:[%s10019_s1 + $0x30] sm:$0xff]  ;;  %v5187_v33 = vld [vmem:[%s10019_s1 + $0x88] sm:$0xff]  ;;  %v112_v37 = vsel %vm107_vm0, %v109_v18, %v111_v26  ;;  %v7455_v41 = vsel %vm563_vm2, %v564_v35, %v565_v36 }
   0x8   :  { %v5189_v34 = vld [vmem:[%s10019_s1 + $0x98] sm:$0xff]  ;;  %v113_v39 = vrot.slane %v7433_v29, 1  ;;  %v6356_v40 = vpack.c.bf16 %v92_v32, %v90_v31  ;;  %v569_v42 = vrot.slane %v7433_v29, 4  ;;  %v7459_v44 = vsel %vm563_vm2, %v565_v36, %v567_v38  ;;  %v703_v46 = vld [vmem:[%s10021_s3] sm:$0xff]  ;;  %v704_v47 = vld [vmem:[%s10021_s3 + $0x8] sm:$0xff] }
   0x9   :  { %6349 = vmatpush1.bf16.msra.mxu0 %v6348_v16  ;;  %v6358_v43 = vpack.c.bf16 %v5189_v34, %v5187_v33  ;;  %v705_v48 = vld [vmem:[%s10021_s3 + $0x10] sm:$0xff]  ;;  %v706_v49 = vld [vmem:[%s10021_s3 + $0x18] sm:$0xff]  ;;  %v6383_v51 = vpack.c.bf16 %v704_v47, %v703_v46  ;;  %v707_v53 = vld [vmem:[%s10021_s3 + $0x20] sm:$0xff] }
   0xa   :  { %6351 = vmatprep.subr.bf16.mxu0 %v6350_v21  ;;  %v7464_v45 = vsel %vm563_vm2, %v567_v38, %v569_v42  ;;  %v114_v50 = vsel %vm107_vm0, %v111_v26, %v113_v39  ;;  %v6386_v52 = vpack.c.bf16 %v706_v49, %v705_v48  ;;  %v708_v54 = vld [vmem:[%s10021_s3 + $0x28] sm:$0xff]  ;;  %v5186_v55 = vld [vmem:[%s10019_s1 + $0x80] sm:$0xff]  ;;  %v5188_v56 = vld [vmem:[%s10019_s1 + $0x90] sm:$0xff] }
   0xb   :  { %6384 = vmatpush1.bf16.msra.mxu1 %v6383_v51 }
   0xc   :  { %5178 = vmatmul.mubr.msk.f32.vlgmr.msra.gmra.mrb[0].mxu0 %vm115_vm1, %v110_v27  ;;  %6385 = vmatprep.subr.bf16.mxu1 %v7281_v15 }
   0xd   :  { %194 = vmatprep.mubr.f32.mxu0 %v7280_v7  ;;  %6353 = vmatpush1.bf16.msra.mxu0 %v6352_v28 }
   0xe   :  { %6355 = vmatprep.subr.bf16.mxu0 %v6354_v30 }
  0x10   :  { %5179 = vmatmul.mubr.msk.f32.gmra.mrb[2].mxu0 %vm115_vm1, %v112_v37 }
  0x11   :  { %200 = vmatprep.mubr.f32.mxu0 %v7280_v7  ;;  %6357 = vmatpush1.bf16.msra.mxu0 %v6356_v40 }
  0x12   :  { %6359 = vmatprep.subr.bf16.mxu0 %v6358_v43 }
  0x14   :  { %5180 = vmatmul.mubr.msk.f32.gmra.mrb[4].mxu0 %vm115_vm1, %v114_v50 }
  0x15   :  { %206 = vmatprep.mubr.f32.mxu0 %v7280_v7 }
  0x16   :  { %20 = vsyncpa [#allocation3], 0  ;;  %v5191_v57 = vld [vmem:[%s10019_s1 + $0xa8] sm:$0xff]  ;;  %v5193_v58 = vld [vmem:[%s10019_s1 + $0xb8] sm:$0xff]  ;;  %6387 = vmatpush1.bf16.msra.mxu1 %v6386_v52  ;;  %v6389_v59 = vpack.c.bf16 %v708_v54, %v707_v53  ;;  %v6360_v62 = vpack.c.bf16 %v5188_v56, %v5186_v55  ;;  %v320_v20 = vrot.slane %v7395_v12, 2  ;;  %v321_v21 = vrot.slane %v7400_v13, 2 }
  0x17   :  { %6388 = vmatprep.subr.bf16.mxu1 %v7281_v15  ;;  %v709_v60 = vld [vmem:[%s10021_s3 + $0x30] sm:$0xff]  ;;  %v710_v61 = vld [vmem:[%s10021_s3 + $0x38] sm:$0xff]  ;;  %v6362_v63 = vpack.c.bf16 %v5193_v58, %v5191_v57  ;;  %v5190_v0 = vld [vmem:[%s10019_s1 + $0xa0] sm:$0xff]  ;;  %vm319_vm3 = vcmask 1045504   ;;  %v323_v31 = vrot.slane %v7411_v19, 2  ;;  %v325_v46 = vrot.slane %v7433_v29, 2 }
  0x18   :  { %5181 = vmatmul.mubr.msk.f32.gmra.mrb[6].mxu0 %vm115_vm1, %v113_v39  ;;  %v5192_v1 = vld [vmem:[%s10019_s1 + $0xb0] sm:$0xff]  ;;  %v5199_v2 = vld [vmem:[%s10019_s1 + $0xc8] sm:$0xff]  ;;  %v5201_v3 = vld [vmem:[%s10019_s1 + $0xd8] sm:$0xff]  ;;  %v6392_v4 = vpack.c.bf16 %v710_v61, %v709_v60  ;;  %v322_v30 = vsel %vm319_vm3, %v320_v20, %v321_v21  ;;  %v442_v51 = vrot.slane %v7395_v12, 3  ;;  %v443_v52 = vrot.slane %v7400_v13, 3 }
  0x19   :  { %285 = vmatprep.mubr.f32.mxu0 %v7280_v7  ;;  %v711_v5 = vld [vmem:[%s10021_s3 + $0x40] sm:$0xff]  ;;  %v712_v6 = vld [vmem:[%s10021_s3 + $0x48] sm:$0xff]  ;;  %v6364_v8 = vpack.c.bf16 %v5192_v1, %v5190_v0  ;;  %v6366_v9 = vpack.c.bf16 %v5201_v3, %v5199_v2  ;;  %v713_v11 = vld [vmem:[%s10021_s3 + $0x50] sm:$0xff]  ;;  %v324_v43 = vsel %vm319_vm3, %v321_v21, %v323_v31  ;;  %v326_v50 = vsel %vm319_vm3, %v323_v31, %v325_v46 }
  0x1a   :  { %6390 = vmatpush1.bf16.msra.mxu1 %v6389_v59  ;;  %v6395_v10 = vpack.c.bf16 %v712_v6, %v711_v5  ;;  %v714_v14 = vld [vmem:[%s10021_s3 + $0x58] sm:$0xff]  ;;  %v715_v17 = vld [vmem:[%s10021_s3 + $0x60] sm:$0xff]  ;;  %v716_v18 = vld [vmem:[%s10021_s3 + $0x68] sm:$0xff]  ;;  %vm441_vm4 = vcmask 1044480   ;;  %vm724_vm5 = vcmask 326656   ;;  %vm935_vm6 = vcmask 228352  }
  0x1b   :  { %6391 = vmatprep.subr.bf16.mxu1 %v7281_v15  ;;  %v6398_v16 = vpack.c.bf16 %v714_v14, %v713_v11  ;;  %v5198_v22 = vld [vmem:[%s10019_s1 + $0xc0] sm:$0xff]  ;;  %v5200_v23 = vld [vmem:[%s10019_s1 + $0xd0] sm:$0xff]  ;;  %v5203_v24 = vld [vmem:[%s10019_s1 + $0xe8] sm:$0xff]  ;;  %v6401_v26 = vpack.c.bf16 %v716_v18, %v715_v17  ;;  %vm7282_vm7 = vmmov 1   ;;  %vm1156_vm9 = vcmask 687104  }
  0x1c   :  { %5182 = vmatmul.mubr.msk.f32.vlgmr.msra.gmra.mrb[0].mxu0 %vm115_vm1, %v7395_v12  ;;  %v5205_v25 = vld [vmem:[%s10019_s1 + $0xf8] sm:$0xff]  ;;  %v717_v27 = vld [vmem:[%s10021_s3 + $0x70] sm:$0xff]  ;;  %v6368_v32 = vpack.c.bf16 %v5200_v23, %v5198_v22  ;;  %v5202_v34 = vld [vmem:[%s10019_s1 + $0xe0] sm:$0xff]  ;;  %v444_v12 = vsel %vm441_vm4, %v442_v51, %v443_v52  ;;  %vm7283_vm10 = vmmov 0   ;;  %vm1905_vm11 = vcmask 1041408  }
  0x1d   :  { %291 = vmatprep.mubr.f32.mxu0 %v7280_v7  ;;  %6361 = vmatpush1.bf16.msra.mxu0 %v6360_v62  ;;  %v718_v28 = vld [vmem:[%s10021_s3 + $0x78] sm:$0xff]  ;;  %v6370_v33 = vpack.c.bf16 %v5205_v25, %v5203_v24  ;;  %v5204_v35 = vld [vmem:[%s10019_s1 + $0xf0] sm:$0xff]  ;;  %v5211_v36 = vld [vmem:[%s10019_s1 + $0x108] sm:$0xff]  ;;  %v447_v62 = vrot.slane %v7433_v29, 3  ;;  %vm1901_vm13 = vcmask 80896   ;;  %vm2078_vm14 = vcmask 654336  }
  0x1e   :  { %6363 = vmatprep.subr.bf16.mxu0 %v6362_v63  ;;  %6393 = vmatpush1.bf16.msra.mxu1 %v6392_v4  ;;  %v5213_v37 = vld [vmem:[%s10019_s1 + $0x118] sm:$0xff]  ;;  %v6404_v38 = vpack.c.bf16 %v718_v28, %v717_v27  ;;  %v719_v39 = vld [vmem:[%s10021_s3 + $0x80] sm:$0xff]  ;;  %v720_v40 = vld [vmem:[%s10021_s3 + $0x88] sm:$0xff]  ;;  %v6372_v47 = vpack.c.bf16 %v5204_v35, %v5202_v34  ;;  %vm2480_vm15 = vcmask 982016  }
  0x1f   :  { %6394 = vmatprep.subr.bf16.mxu1 %v7281_v15  ;;  %v6374_v48 = vpack.c.bf16 %v5213_v37, %v5211_v36  ;;  %v6407_v49 = vpack.c.bf16 %v720_v40, %v719_v39  ;;  %v5210_v53 = vld [vmem:[%s10019_s1 + $0x100] sm:$0xff]  ;;  %v5212_v54 = vld [vmem:[%s10019_s1 + $0x110] sm:$0xff]  ;;  %v5215_v55 = vld [vmem:[%s10019_s1 + $0x128] sm:$0xff] }
  0x20   :  { %5183 = vmatmul.mubr.msk.f32.gmra.mrb[2].mxu0 %vm115_vm1, %v7400_v13  ;;  %v5217_v56 = vld [vmem:[%s10019_s1 + $0x138] sm:$0xff]  ;;  %v445_v13 = vrot.slane %v7411_v19, 3  ;;  %v6376_v57 = vpack.c.bf16 %v5212_v54, %v5210_v53  ;;  %v5214_v59 = vld [vmem:[%s10019_s1 + $0x120] sm:$0xff]  ;;  %v5216_v60 = vld [vmem:[%s10019_s1 + $0x130] sm:$0xff] }
  0x21   :  { %297 = vmatprep.mubr.f32.mxu0 %v7280_v7  ;;  %6365 = vmatpush1.bf16.msra.mxu0 %v6364_v8  ;;  %v6378_v58 = vpack.c.bf16 %v5217_v56, %v5215_v55  ;;  %v722_v0 = vld [vmem:[%s10021_s3 + $0x98] sm:$0xff]  ;;  %v51_v2 = vld [vmem:[%s10020_s2] sm:$0x3]  ;;  %v5227_v11 = vld [vmem:[%s10021_s3 + $0xb0] sm:$0xff] }
  0x22   :  { %6367 = vmatprep.subr.bf16.mxu0 %v6366_v9  ;;  %6396 = vmatpush1.bf16.msra.mxu1 %v6395_v10  ;;  %v446_v61 = vsel %vm441_vm4, %v443_v52, %v445_v13  ;;  %v448_v63 = vsel %vm441_vm4, %v445_v13, %v447_v62  ;;  %v5226_v10 = vld [vmem:[%s10021_s3 + $0xa8] sm:$0xff]  ;;  %v5228_v23 = vld [vmem:[%s10021_s3 + $0xb8] sm:$0xff]  ;;  %v5229_v24 = vld [vmem:[%s10021_s3 + $0xc0] sm:$0xff] }
  0x23   :  { %6397 = vmatprep.subr.bf16.mxu1 %v7281_v15  ;;  %v6413_v18 = vpack.c.bf16 %v5227_v11, %v5226_v10  ;;  %v6416_v28 = vpack.c.bf16 %v5229_v24, %v5228_v23  ;;  %v5231_v34 = vld [vmem:[%s10021_s3 + $0xd0] sm:$0xff]  ;;  %v5234_v52 = vld [vmem:[%s10021_s3 + $0xe8] sm:$0xff]  ;;  %v5236_v55 = vld [vmem:[%s10021_s3 + $0xf8] sm:$0xff] }
  0x24   :  { %5184 = vmatmul.mubr.msk.f32.gmra.mrb[4].mxu0 %vm115_vm1, %v7411_v19  ;;  %v6380_v19 = vpack.c.bf16 %v5216_v60, %v5214_v59  ;;  %v5235_v53 = vld [vmem:[%s10021_s3 + $0xf0] sm:$0xff]  ;;  %v5237_v56 = vld [vmem:[%s10021_s3 + $0x100] sm:$0xff]  ;;  %v5238_v13 = vld [vmem:[%s10021_s3 + $0x108] sm:$0xff] }
  0x25   :  { %303 = vmatprep.mubr.f32.mxu0 %v7280_v7  ;;  %v6425_v54 = vpack.c.bf16 %v5235_v53, %v5234_v52  ;;  %v5240_v59 = vld [vmem:[%s10021_s3 + $0x118] sm:$0xff]  ;;  %v5241_v60 = vld [vmem:[%s10021_s3 + $0x120] sm:$0xff]  ;;  %vm7826_vm8 = vmpackc.low %vm563_vm2, %vm7282_vm7 }
  0x26   :  { %6399 = vmatpush1.bf16.msra.mxu1 %v6398_v16  ;;  %v5261_v10 = vld [vmem:[%s10023_s5 + $0xc0] sm:$0xff]  ;;  %v5264_v11 = vld [vmem:[%s10023_s5 + $0xd8] sm:$0xff]  ;;  %vm8421_vm12 = vmpackc.low %vm1905_vm11, %vm7282_vm7  ;;  %vm2631_vm7 = vcmask 73728  }
  0x27   :  { %6400 = vmatprep.subr.bf16.mxu1 %v7281_v15  ;;  %v5255_v52 = vld [vmem:[%s10022_s4 + $0x18] sm:$0x3f] }
  0x28   :  { %5185 = vmatmul.mubr.msk.f32.gmra.mrb[6].mxu0 %vm115_vm1, %v7433_v29  ;;  %v677_v29 = vlaneseq  ;;  %v5268_v53 = vld [vmem:[%s10023_s5 + $0xf8] sm:$0xff] }
  0x29   :  { %399 = vmatprep.mubr.f32.mxu0 %v7280_v7 }
  0x2a   :  { %6402 = vmatpush1.bf16.msra.mxu1 %v6401_v26 }
  0x2b   :  { %6403 = vmatprep.subr.bf16.mxu1 %v7281_v15 }
  0x2c   :  { %5194 = vmatmul.mubr.msk.f32.vlgmr.msra.gmra.mrb[0].mxu0 %vm115_vm1, %v322_v30 }
  0x2d   :  { %405 = vmatprep.mubr.f32.mxu0 %v7280_v7  ;;  %6369 = vmatpush1.bf16.msra.mxu0 %v6368_v32 }
  0x2e   :  { %6371 = vmatprep.subr.bf16.mxu0 %v6370_v33  ;;  %6405 = vmatpush1.bf16.msra.mxu1 %v6404_v38  ;;  %v5230_v33 = vld [vmem:[%s10021_s3 + $0xc8] sm:$0xff] }
  0x2f   :  { %6406 = vmatprep.subr.bf16.mxu1 %v7281_v15  ;;  %v6419_v38 = vpack.c.bf16 %v5231_v34, %v5230_v33 }
  0x30   :  { %5195 = vmatmul.mubr.msk.f32.gmra.mrb[2].mxu0 %vm115_vm1, %v324_v43 }
  0x31   :  { %411 = vmatprep.mubr.f32.mxu0 %v7280_v7  ;;  %6373 = vmatpush1.bf16.msra.mxu0 %v6372_v47  ;;  %v5233_v47 = vld [vmem:[%s10021_s3 + $0xe0] sm:$0xff] }
  0x32   :  { %6375 = vmatprep.subr.bf16.mxu0 %v6374_v48  ;;  %6408 = vmatpush1.bf16.msra.mxu1 %v6407_v49 }
  0x33   :  { %6409 = vmatprep.subr.bf16.mxu1 %v7281_v15 }
  0x34   :  { %5196 = vmatmul.mubr.msk.f32.gmra.mrb[4].mxu0 %vm115_vm1, %v326_v50 }
  0x35   :  { %417 = vmatprep.mubr.f32.mxu0 %v7280_v7 }
  0x38   :  { %5197 = vmatmul.mubr.msk.f32.gmra.mrb[6].mxu0 %vm115_vm1, %v325_v46  ;;  %v5232_v46 = vld [vmem:[%s10021_s3 + $0xd8] sm:$0xff] }
  0x39   :  { %521 = vmatprep.mubr.f32.mxu0 %v7280_v7  ;;  %v6422_v50 = vpack.c.bf16 %v5233_v47, %v5232_v46 }
  0x3c   :  { %5206 = vmatmul.mubr.msk.f32.vlgmr.msra.gmra.mrb[0].mxu0 %vm115_vm1, %v444_v12  ;;  %v6428_v12 = vpack.c.bf16 %v5237_v56, %v5236_v55  ;;  %v5267_v56 = vld [vmem:[%s10023_s5 + $0xf0] sm:$0xff] }
  0x3d   :  { %527 = vmatprep.mubr.f32.mxu0 %v7280_v7  ;;  %6377 = vmatpush1.bf16.msra.mxu0 %v6376_v57  ;;  %v5239_v57 = vld [vmem:[%s10021_s3 + $0x110] sm:$0xff] }
  0x3e   :  { %6379 = vmatprep.subr.bf16.mxu0 %v6378_v58  ;;  %v6431_v58 = vpack.c.bf16 %v5239_v57, %v5238_v13  ;;  %v5272_v57 = vld [vmem:[%s10023_s5 + $0x118] sm:$0xff] }
  0x40   :  { %5207 = vmatmul.mubr.msk.f32.gmra.mrb[2].mxu0 %vm115_vm1, %v446_v61  ;;  %v6434_v61 = vpack.c.bf16 %v5241_v60, %v5240_v59  ;;  %v5271_v59 = vld [vmem:[%s10023_s5 + $0x110] sm:$0xff] }
  0x41   :  { %533 = vmatprep.mubr.f32.mxu0 %v7280_v7  ;;  %6381 = vmatpush1.bf16.msra.mxu0 %v6380_v19  ;;  %v5243_v19 = vld [vmem:[%s10021_s3 + $0x130] sm:$0xff] }
  0x44   :  { %5208 = vmatmul.mubr.msk.f32.gmra.mrb[4].mxu0 %vm115_vm1, %v448_v63 }
  0x45   :  { %539 = vmatprep.mubr.f32.mxu0 %v7280_v7 }
  0x48   :  { %5209 = vmatmul.mubr.msk.f32.gmra.mrb[6].mxu0 %vm115_vm1, %v447_v62  ;;  %v5242_v62 = vld [vmem:[%s10021_s3 + $0x128] sm:$0xff] }
  0x49   :  { %643 = vmatprep.mubr.f32.mxu0 %v7280_v7  ;;  %v6437_v63 = vpack.c.bf16 %v5243_v19, %v5242_v62  ;;  %v5276_v19 = vld [vmem:[%s10023_s5 + $0x138] sm:$0xff] }
  0x4c   :  { %5218 = vmatmul.mubr.msk.f32.vlgmr.msra.gmra.mrb[0].mxu0 %vm115_vm1, %v7455_v41  ;;  %v721_v41 = vld [vmem:[%s10021_s3 + $0x90] sm:$0xff] }
  0x4d   :  { %649 = vmatprep.mubr.f32.mxu0 %v7280_v7 }
  0x50   :  { %5219 = vmatmul.mubr.msk.f32.gmra.mrb[2].mxu0 %vm115_vm1, %v7459_v44  ;;  %v6410_v44 = vpack.c.bf16 %v722_v0, %v721_v41  ;;  %v5244_v41 = vld [vmem:[%s10021_s3 + $0x138] sm:$0xff]  ;;  %v5245_v0 = vld [vmem:[%s10021_s3 + $0x140] sm:$0xff] }
  0x51   :  { %655 = vmatprep.mubr.f32.mxu0 %v7280_v7 }
  0x52   :  { %6411 = vmatpush1.bf16.msra.mxu1 %v6410_v44  ;;  %v6440_v44 = vpack.c.bf16 %v5245_v0, %v5244_v41  ;;  %v5275_v0 = vld [vmem:[%s10023_s5 + $0x130] sm:$0xff] }
  0x53   :  { %777 = vmatprep.subr.mxu1 %v7280_v7 }
  0x54   :  { %5220 = vmatmul.mubr.msk.f32.gmra.mrb[4].mxu0 %vm115_vm1, %v7464_v45  ;;  %v723_v45 = vld [vmem:[%s10021_s3 + $0xa0] sm:$0xff] }
  0x55   :  { %661 = vmatprep.mubr.f32.mxu0 %v7280_v7 }
  0x56   :  { %778 = vmatpush1.msra.mxu1 %v723_v45  ;;  %v5246_v45 = vld [vmem:[%s10021_s3 + $0x148] sm:$0xff] }
  0x57   :  { %6412 = vmatprep.subr.bf16.mxu1 %v7281_v15 }
  0x58   :  { %5221 = vmatmul.mubr.msk.f32.gmra.mrb[6].mxu0 %vm115_vm1, %v569_v42  ;;  %v7667_v42 = vshrl.u32 %v677_v29, 7  ;;  %v933_v29 = vld [vmem:[%s10022_s4] sm:$0xff] }
  0x59   :  { %5932 = vmatprep.mubr.msk.f32.mxu0 %vm935_vm6, %v933_v29  ;;  %v5280_v29 = vld [vmem:[%s10023_s5 + $0x158] sm:$0xf] }
  0x5a   :  { %v679_v1 = vsub.s32 0, %v7667_v42  ;;  %v683_v3 = vsub.s32 1, %v7667_v42 }
  0x5c   :  { %v7676_v4 = vrot.slane %v51_v2, %v679_v1  ;;  %v7680_v5 = vrot.slane %v51_v2, %v683_v3  ;;  %v5260_v2 = vld [vmem:[%s10023_s5 + $0xb8] sm:$0xff] }
 0x11f   :  { %v645_v6 = vpop.f32.mrb[0].mxu0 }
 0x120   :  { %v7683_v8 = vadd.f32 %v7676_v4, %v645_v6  ;;  %v647_v9 = vpop.f32.mrb[1].mxu0  ;;  %v5262_v6 = vld [vmem:[%s10023_s5 + $0xc8] sm:$0xff] }
 0x121   :  { %v688_v14 = vadd.f32 %v7680_v5, %v647_v9  ;;  %v6462_v9 = vpack.c.bf16 %v5262_v6, %v5260_v2  ;;  %v5279_v2 = vld [vmem:[%s10023_s5 + $0x150] sm:$0xf]  ;;  %v1107_v6 = vld [vmem:[%s10023_s5 + $0x8] sm:$0xff] }
 0x122   :  { %v695_v20 = vmax.f32 %v7683_v8, 0.0  ;;  %v5259_v8 = vld [vmem:[%s10023_s5 + $0xb0] sm:$0xff] }
 0x123   :  { %v696_v16 = vmax.f32 %v688_v14, 0.0  ;;  %v651_v17 = vpop.f32.mrb[2].mxu0  ;;  %v5266_v14 = vld [vmem:[%s10023_s5 + $0xe8] sm:$0xff] }
 0x124   :  { %v7694_v21 = vadd.f32 %v7676_v4, %v651_v17  ;;  %v653_v22 = vpop.f32.mrb[3].mxu0  ;;  %v6466_v17 = vpack.c.bf16 %v5266_v14, %v5264_v11  ;;  %v1702_v11 = vld [vmem:[%s10025_s7 + $0x8] sm:$0xff]  ;;  %v1703_v14 = vld [vmem:[%s10025_s7 + $0x10] sm:$0xff] }
 0x125   :  { %v7703_v25 = vadd.f32 %v7680_v5, %v653_v22  ;;  %5222 = vmatprep.mubr.msk.f32.mxu1 %vm724_vm5, %v696_v16 }
 0x126   :  { %802 = vmatmul.mubr.f32.vlgmr.msra.gmra.mrb[0].mxu1 %v695_v20  ;;  %v697_v30 = vmax.f32 %v7694_v21, 0.0 }
 0x127   :  { %v698_v26 = vmax.f32 %v7703_v25, 0.0  ;;  %6414 = vmatpush1.bf16.msra.mxu1 %v6413_v18  ;;  %v657_v27 = vpop.f32.mrb[4].mxu0  ;;  %v5263_v18 = vld [vmem:[%s10023_s5 + $0xd0] sm:$0xff] }
 0x128   :  { %v7711_v31 = vadd.f32 %v7676_v4, %v657_v27  ;;  %v659_v32 = vpop.f32.mrb[5].mxu0  ;;  %6415 = vmatprep.subr.bf16.mxu1 %v7281_v15 }
 0x129   :  { %v692_v35 = vadd.f32 %v7680_v5, %v659_v32  ;;  %5223 = vmatprep.mubr.msk.f32.mxu1 %vm724_vm5, %v698_v26 }
 0x12a   :  { %807 = vmatmul.mubr.f32.gmra.mrb[2].mxu1 %v697_v30  ;;  %v699_v39 = vmax.f32 %v7711_v31, 0.0 }
 0x12b   :  { %v700_v36 = vmax.f32 %v692_v35, 0.0  ;;  %6417 = vmatpush1.bf16.msra.mxu1 %v6416_v28  ;;  %v663_v37 = vpop.f32.mrb[6].mxu0 }
 0x12c   :  { %v693_v40 = vadd.f32 %v7676_v4, %v663_v37  ;;  %v665_v43 = vpop.f32.mrb[7].mxu0  ;;  %6418 = vmatprep.subr.bf16.mxu1 %v7281_v15 }
 0x12d   :  { %v694_v48 = vadd.f32 %v7680_v5, %v665_v43  ;;  %5224 = vmatprep.mubr.msk.f32.mxu1 %vm724_vm5, %v700_v36 }
 0x12e   :  { %812 = vmatmul.mubr.f32.gmra.mrb[4].mxu1 %v699_v39  ;;  %v701_v51 = vmax.f32 %v693_v40, 0.0 }
 0x12f   :  { %v702_v49 = vmax.f32 %v694_v48, 0.0  ;;  %6420 = vmatpush1.bf16.msra.mxu1 %v6419_v38  ;;  %v5538_v48 = vld [vmem:[%s10023_s5 + $0xb8] sm:$0xff] }
 0x130   :  { %6421 = vmatprep.subr.bf16.mxu1 %v7281_v15 }
 0x131   :  { %5225 = vmatprep.mubr.msk.f32.mxu1 %vm724_vm5, %v702_v49 }
 0x132   :  { %817 = vmatmul.mubr.f32.gmra.mrb[6].mxu1 %v701_v51 }
 0x133   :  { %6423 = vmatpush1.bf16.msra.mxu1 %v6422_v50  ;;  %5247 = vmatprep.mubr.msk.f32.mxu1 %vm724_vm5, %v696_v16  ;;  %v6464_v16 = vpack.c.bf16 %v5261_v10, %v5259_v8  ;;  %v934_v50 = vld [vmem:[%s10022_s4 + $0x8] sm:$0x3f]  ;;  %v1109_v8 = vld [vmem:[%s10023_s5 + $0x18] sm:$0xff]  ;;  %v1701_v10 = vld [vmem:[%s10025_s7] sm:$0xff] }
 0x134   :  { %6424 = vmatprep.subr.bf16.mxu1 %v7281_v15 }
 0x137   :  { %6426 = vmatpush1.bf16.msra.mxu1 %v6425_v54  ;;  %v5270_v54 = vld [vmem:[%s10023_s5 + $0x108] sm:$0xff] }
 0x138   :  { %6427 = vmatprep.subr.bf16.mxu1 %v7281_v15  ;;  %v6470_v55 = vpack.c.bf16 %v5270_v54, %v5268_v53 }
 0x13b   :  { %6429 = vmatpush1.bf16.msra.mxu1 %v6428_v12  ;;  %v5269_v12 = vld [vmem:[%s10023_s5 + $0x100] sm:$0xff] }
 0x13c   :  { %6430 = vmatprep.subr.bf16.mxu1 %v7281_v15  ;;  %v6472_v13 = vpack.c.bf16 %v5269_v12, %v5267_v56  ;;  %v1113_v56 = vld [vmem:[%s10023_s5 + $0x38] sm:$0xff] }
 0x13f   :  { %6432 = vmatpush1.bf16.msra.mxu1 %v6431_v58  ;;  %v5274_v58 = vld [vmem:[%s10023_s5 + $0x128] sm:$0xff] }
 0x140   :  { %6433 = vmatprep.subr.bf16.mxu1 %v7281_v15  ;;  %v6474_v60 = vpack.c.bf16 %v5274_v58, %v5272_v57 }
 0x143   :  { %6435 = vmatpush1.bf16.msra.mxu1 %v6434_v61  ;;  %v5273_v61 = vld [vmem:[%s10023_s5 + $0x120] sm:$0xff] }
 0x144   :  { %6436 = vmatprep.subr.bf16.mxu1 %v7281_v15  ;;  %v6476_v62 = vpack.c.bf16 %v5273_v61, %v5271_v59 }
 0x147   :  { %6438 = vmatpush1.bf16.msra.mxu1 %v6437_v63  ;;  %v5278_v63 = vld [vmem:[%s10023_s5 + $0x148] sm:$0xff] }
 0x148   :  { %6439 = vmatprep.subr.bf16.mxu1 %v7281_v15  ;;  %v6478_v41 = vpack.c.bf16 %v5278_v63, %v5276_v19 }
 0x14b   :  { %6441 = vmatpush1.bf16.msra.mxu1 %v6440_v44  ;;  %v5277_v44 = vld [vmem:[%s10023_s5 + $0x140] sm:$0xff] }
 0x14c   :  { %884 = vmatprep.subr.mxu1 %v7280_v7 }
 0x14f   :  { %885 = vmatpush1.msra.mxu1 %v5246_v45  ;;  %v6480_v45 = vpack.c.bf16 %v5277_v44, %v5275_v0  ;;  %v1112_v0 = vld [vmem:[%s10023_s5 + $0x30] sm:$0xff] }
 0x150   :  { %909 = vmatmul.mubr.f32.vlgmr.msra.gmra.mrb[8].mxu1 %v695_v20  ;;  %v5265_v20 = vld [vmem:[%s10023_s5 + $0xe0] sm:$0xff]  ;;  %6463 = vmatprep.subr.bf16.mxu1 %v6462_v9  ;;  %v6482_v9 = vpack.c.bf16 %v1109_v8, %v1107_v6 }
 0x151   :  { %5248 = vmatprep.mubr.msk.f32.mxu1 %vm724_vm5, %v698_v26  ;;  %6465 = vmatpush1.bf16.msra.mxu1 %v6464_v16  ;;  %v6468_v21 = vpack.c.bf16 %v5265_v20, %v5263_v18  ;;  %v6563_v16 = vpack.c.bf16 %v1702_v11, %v1701_v10  ;;  %v1705_v20 = vld [vmem:[%s10025_s7 + $0x20] sm:$0xff] }
 0x152   :  { %6467 = vmatprep.subr.bf16.mxu1 %v6466_v17  ;;  %v1704_v17 = vld [vmem:[%s10025_s7 + $0x18] sm:$0xff]  ;;  %v1114_v11 = vld [vmem:[%s10023_s5 + $0x40] sm:$0xff] }
 0x153   :  { %v6566_v18 = vpack.c.bf16 %v1704_v17, %v1703_v14  ;;  %v1116_v14 = vld [vmem:[%s10023_s5 + $0x50] sm:$0xff]  ;;  %v1121_v17 = vld [vmem:[%s10023_s5 + $0x78] sm:$0xff] }
 0x154   :  { %914 = vmatmul.mubr.f32.gmra.mrb[10].mxu1 %v697_v30 }
 0x155   :  { %5249 = vmatprep.mubr.msk.f32.mxu1 %vm724_vm5, %v700_v36  ;;  %6469 = vmatpush1.bf16.msra.mxu1 %v6468_v21  ;;  %v1706_v21 = vld [vmem:[%s10025_s7 + $0x28] sm:$0xff] }
 0x156   :  { %6471 = vmatprep.subr.bf16.mxu1 %v6470_v55  ;;  %v1111_v55 = vld [vmem:[%s10023_s5 + $0x28] sm:$0xff] }
 0x157   :  { %v6486_v63 = vpack.c.bf16 %v1113_v56, %v1111_v55  ;;  %v5297_v55 = vld [vmem:[%s10023_s5 + $0x1a0] sm:$0xff]  ;;  %v5299_v56 = vld [vmem:[%s10023_s5 + $0x1b0] sm:$0xff] }
 0x158   :  { %919 = vmatmul.mubr.f32.gmra.mrb[12].mxu1 %v699_v39 }
 0x159   :  { %5250 = vmatprep.mubr.msk.f32.mxu1 %vm724_vm5, %v702_v49  ;;  %6473 = vmatpush1.bf16.msra.mxu1 %v6472_v13 }
 0x15a   :  { %6475 = vmatprep.subr.bf16.mxu1 %v6474_v60 }
 0x15c   :  { %924 = vmatmul.mubr.f32.gmra.mrb[14].mxu1 %v701_v51  ;;  %v5254_v51 = vld [vmem:[%s10022_s4 + $0x10] sm:$0xff] }
 0x15d   :  { %1231 = vmatprep.mubr.f32.mxu1 %v7280_v7  ;;  %6477 = vmatpush1.bf16.msra.mxu1 %v6476_v62 }
 0x15e   :  { %6479 = vmatprep.subr.bf16.mxu1 %v6478_v41  ;;  %v1110_v41 = vld [vmem:[%s10023_s5 + $0x20] sm:$0xff] }
 0x161   :  { %6481 = vmatpush1.bf16.msra.mxu1 %v6480_v45  ;;  %v1115_v45 = vld [vmem:[%s10023_s5 + $0x48] sm:$0xff] }
 0x162   :  { %5281 = vmatprep.subr.msk.mxu1 %vm563_vm2, %v5280_v29  ;;  %v1117_v29 = vld [vmem:[%s10023_s5 + $0x58] sm:$0xff] }
 0x163   :  { %v6490_v10 = vpack.c.bf16 %v1117_v29, %v1115_v45  ;;  %v5307_v45 = vld [vmem:[%s10023_s5 + $0x1f0] sm:$0xff] }
 0x165   :  { %5282 = vmatpush1.msk.msra.mxu1 %vm563_vm2, %v5279_v2 }
 0x166   :  { %6483 = vmatprep.subr.bf16.mxu1 %v6482_v9  ;;  %v6488_v9 = vpack.c.bf16 %v1112_v0, %v1110_v41 }
 0x1f9   :  { %v803_v22 = vpop.f32.mrb[0].mxu1 }
 0x1fa   :  { %v805_v23 = vpop.f32.mrb[1].mxu1 }
 0x1fb   :  { %v1707_v23 = vld [vmem:[%s10025_s7 + $0x30] sm:$0xff] }
 0x1fd   :  { %v808_v24 = vpop.f32.mrb[2].mxu1 }
 0x1fe   :  { %v810_v25 = vpop.f32.mrb[3].mxu1 }
 0x201   :  { %v813_v26 = vpop.f32.mrb[4].mxu1 }
 0x202   :  { %v815_v27 = vpop.f32.mrb[5].mxu1 }
 0x203   :  { %v1710_v27 = vld [vmem:[%s10025_s7 + $0x48] sm:$0xff] }
 0x205   :  { %v818_v28 = vpop.f32.mrb[6].mxu1 }
 0x206   :  { %v820_v30 = vpop.f32.mrb[7].mxu1 }
 0x207   :  { %v1711_v30 = vld [vmem:[%s10025_s7 + $0x50] sm:$0xff] }
 0x223   :  { %v910_v31 = vpop.f32.mrb[8].mxu1 }
 0x224   :  { %v929_v32 = vmax.f32 %v803_v22, %v910_v31  ;;  %v912_v33 = vpop.f32.mrb[9].mxu1  ;;  %v6569_v22 = vpack.c.bf16 %v1706_v21, %v1705_v20  ;;  %v1712_v31 = vld [vmem:[%s10025_s7 + $0x58] sm:$0xff]  ;;  %v1118_v21 = vld [vmem:[%s10023_s5 + $0x60] sm:$0xff] }
 0x225   :  { %v1713_v33 = vld [vmem:[%s10025_s7 + $0x60] sm:$0xff] }
 0x227   :  { %v915_v34 = vpop.f32.mrb[10].mxu1 }
 0x228   :  { %v930_v35 = vmax.f32 %v808_v24, %v915_v34  ;;  %v917_v36 = vpop.f32.mrb[11].mxu1  ;;  %v1708_v24 = vld [vmem:[%s10025_s7 + $0x38] sm:$0xff]  ;;  %v1714_v34 = vld [vmem:[%s10025_s7 + $0x68] sm:$0xff] }
 0x229   :  { %v6572_v25 = vpack.c.bf16 %v1708_v24, %v1707_v23  ;;  %v1123_v23 = vld [vmem:[%s10023_s5 + $0x88] sm:$0xff]  ;;  %v1125_v24 = vld [vmem:[%s10023_s5 + $0x98] sm:$0xff] }
 0x22a   :  { %v6442_v37 = vpack.c.bf16 %v930_v35, %v929_v32  ;;  %v6578_v32 = vpack.c.bf16 %v1712_v31, %v1711_v30  ;;  %v1127_v31 = vld [vmem:[%s10023_s5 + $0xa8] sm:$0xf] }
 0x22b   :  { %v920_v38 = vpop.f32.mrb[12].mxu1 }
 0x22c   :  { %v931_v39 = vmax.f32 %v813_v26, %v920_v38  ;;  %v922_v40 = vpop.f32.mrb[13].mxu1  ;;  %6443 = vmatprep.subr.bf16.mxu0 %v6442_v37  ;;  %v1709_v26 = vld [vmem:[%s10025_s7 + $0x40] sm:$0xff]  ;;  %v1715_v38 = vld [vmem:[%s10025_s7 + $0x70] sm:$0xff] }
 0x22d   :  { %6445 = vmatpush3.bf16.msra.mxu0 %v6442_v37  ;;  %v1106_v40 = vld [vmem:[%s10023_s5] sm:$0xff] }
 0x22f   :  { %v925_v43 = vpop.f32.mrb[14].mxu1 }
 0x230   :  { %v932_v46 = vmax.f32 %v818_v28, %v925_v43  ;;  %v927_v47 = vpop.f32.mrb[15].mxu1  ;;  %v6575_v28 = vpack.c.bf16 %v1710_v27, %v1709_v26  ;;  %v6498_v26 = vpack.c.bf16 %v1125_v24, %v1123_v23  ;;  %v1122_v27 = vld [vmem:[%s10023_s5 + $0x80] sm:$0xff]  ;;  %v5319_v24 = vld [vmem:[%s10023_s5 + $0x230] sm:$0xff] }
 0x231   :  { %v1717_v47 = vld [vmem:[%s10025_s7 + $0x80] sm:$0xff] }
 0x232   :  { %v6446_v49 = vpack.c.bf16 %v932_v46, %v931_v39  ;;  %v1716_v39 = vld [vmem:[%s10025_s7 + $0x78] sm:$0xff]  ;;  %v1108_v46 = vld [vmem:[%s10023_s5 + $0x10] sm:$0xff] }
 0x233   :  { %v6584_v43 = vpack.c.bf16 %v1716_v39, %v1715_v38  ;;  %v6484_v54 = vpack.c.bf16 %v1108_v46, %v1106_v40  ;;  %v1126_v38 = vld [vmem:[%s10023_s5 + $0xa0] sm:$0xf] }
 0x234   :  { %6448 = vmatprep.subr.msk.bf16.mxu0 %vm7826_vm8, %v6446_v49  ;;  %v5293_v46 = vld [vmem:[%s10023_s5 + $0x180] sm:$0xff] }
 0x235   :  { %6451 = vmatpush3.bf16.msk.msra.mxu0 %vm7826_vm8, %v6446_v49 }
 0x236   :  { %6453 = vmatprep.subr.bf16.mxu0 %v6442_v37 }
 0x238   :  { %5933 = vmatmul.mubr.msk.f32.vlgmr.msra.gmra.mrb[8].mxu0 %vm935_vm6, %v934_v50 }
 0x239   :  { %6455 = vmatpush3.bf16.msra.mxu0 %v6442_v37  ;;  %5943 = vmatprep.mubr.msk.f32.mxu0 %vm935_vm6, %v5254_v51  ;;  %v6581_v37 = vpack.c.bf16 %v1714_v34, %v1713_v33  ;;  %v5292_v33 = vld [vmem:[%s10023_s5 + $0x178] sm:$0xff]  ;;  %v5289_v34 = vld [vmem:[%s10023_s5 + $0x160] sm:$0xff] }
 0x23a   :  { %6458 = vmatprep.subr.msk.bf16.mxu0 %vm7826_vm8, %v6446_v49 }
 0x23d   :  { %6461 = vmatpush3.bf16.msk.msra.mxu0 %vm7826_vm8, %v6446_v49  ;;  %v1718_v49 = vld [vmem:[%s10025_s7 + $0x88] sm:$0xff] }
 0x23e   :  { %6562 = vmatprep.subr.bf16.mxu0 %v7281_v15  ;;  %v6587_v12 = vpack.c.bf16 %v1718_v49, %v1717_v47  ;;  %v5295_v47 = vld [vmem:[%s10023_s5 + $0x190] sm:$0xff]  ;;  %v5298_v49 = vld [vmem:[%s10023_s5 + $0x1a8] sm:$0xff] }
 0x240   :  { %5944 = vmatmul.mubr.msk.f32.vlgmr.msra.gmra.mrb[10].mxu0 %vm935_vm6, %v5255_v52 }
 0x241   :  { %6564 = vmatpush1.bf16.msra.mxu0 %v6563_v16  ;;  %v1119_v16 = vld [vmem:[%s10023_s5 + $0x68] sm:$0xff] }
 0x242   :  { %6565 = vmatprep.subr.bf16.mxu0 %v7281_v15  ;;  %v6494_v20 = vpack.c.bf16 %v1121_v17, %v1119_v16  ;;  %v5317_v16 = vld [vmem:[%s10023_s5 + $0x220] sm:$0xff]  ;;  %v5320_v17 = vld [vmem:[%s10023_s5 + $0x238] sm:$0xff] }
 0x245   :  { %6567 = vmatpush1.bf16.msra.mxu0 %v6566_v18  ;;  %v6492_v18 = vpack.c.bf16 %v1116_v14, %v1114_v11  ;;  %v5318_v11 = vld [vmem:[%s10023_s5 + $0x228] sm:$0xff]  ;;  %v5315_v14 = vld [vmem:[%s10023_s5 + $0x210] sm:$0xff] }
 0x246   :  { %6568 = vmatprep.subr.bf16.mxu0 %v7281_v15 }
 0x249   :  { %6570 = vmatpush1.bf16.msra.mxu0 %v6569_v22  ;;  %v1120_v22 = vld [vmem:[%s10023_s5 + $0x70] sm:$0xff] }
 0x24a   :  { %6571 = vmatprep.subr.bf16.mxu0 %v7281_v15 }
 0x24d   :  { %6573 = vmatpush1.bf16.msra.mxu0 %v6572_v25  ;;  %v6496_v25 = vpack.c.bf16 %v1120_v22, %v1118_v21  ;;  %v6524_v22 = vpack.c.bf16 %v5317_v16, %v5315_v14  ;;  %v5353_v14 = vld [vmem:[%s10023_s5 + $0x320] sm:$0xff]  ;;  %v5355_v16 = vld [vmem:[%s10023_s5 + $0x330] sm:$0xff] }
 0x24e   :  { %6574 = vmatprep.subr.bf16.mxu0 %v7281_v15 }
 0x251   :  { %6576 = vmatpush1.bf16.msra.mxu0 %v6575_v28  ;;  %v1124_v28 = vld [vmem:[%s10023_s5 + $0x90] sm:$0xff] }
 0x252   :  { %6577 = vmatprep.subr.bf16.mxu0 %v7281_v15  ;;  %v6500_v30 = vpack.c.bf16 %v1124_v28, %v1122_v27  ;;  %v5326_v27 = vld [vmem:[%s10023_s5 + $0x268] sm:$0xff] }
 0x255   :  { %6579 = vmatpush1.bf16.msra.mxu0 %v6578_v32  ;;  %v5290_v32 = vld [vmem:[%s10023_s5 + $0x168] sm:$0xff] }
 0x256   :  { %6580 = vmatprep.subr.bf16.mxu0 %v7281_v15  ;;  %v6502_v39 = vpack.c.bf16 %v5292_v33, %v5290_v32  ;;  %v5325_v32 = vld [vmem:[%s10023_s5 + $0x260] sm:$0xff]  ;;  %v5328_v33 = vld [vmem:[%s10023_s5 + $0x278] sm:$0xff] }
 0x259   :  { %6582 = vmatpush1.bf16.msra.mxu0 %v6581_v37  ;;  %v5296_v37 = vld [vmem:[%s10023_s5 + $0x198] sm:$0xff] }
 0x25a   :  { %6583 = vmatprep.subr.bf16.mxu0 %v7281_v15 }
 0x25d   :  { %6585 = vmatpush1.bf16.msra.mxu0 %v6584_v43 }
 0x25e   :  { %6586 = vmatprep.subr.bf16.mxu0 %v7281_v15 }
 0x261   :  { %6588 = vmatpush1.bf16.msra.mxu0 %v6587_v12  ;;  %v5302_v12 = vld [vmem:[%s10023_s5 + $0x1c8] sm:$0xff] }
 0x262   :  { %6589 = vmatprep.subr.bf16.mxu0 %v7281_v15 }
 0x30b   :  { %v5934_v35 = vpop.f32.mrb[8].mxu0 }
 0x30c   :  { %v1011_v36 = vpop.f32.mrb[9].mxu0 }
 0x313   :  { %v5945_v50 = vpop.f32.mrb[10].mxu0 }
 0x314   :  { %v7968_v51 = vmax.f32 %v5934_v35, %v5945_v50  ;;  %v1095_v52 = vpop.f32.mrb[11].mxu0  ;;  %v5291_v35 = vld [vmem:[%s10023_s5 + $0x170] sm:$0xff]  ;;  %v5300_v50 = vld [vmem:[%s10023_s5 + $0x1b8] sm:$0xff] }
 0x315   :  { %v7970_v53 = vmax.f32 %v1011_v36, %v1095_v52  ;;  %v5294_v36 = vld [vmem:[%s10023_s5 + $0x188] sm:$0xff]  ;;  %v6504_v40 = vpack.c.bf16 %v5291_v35, %v5289_v34  ;;  %v6508_v52 = vpack.c.bf16 %v5295_v47, %v5293_v46  ;;  %v5333_v46 = vld [vmem:[%s10023_s5 + $0x2a0] sm:$0xff] }
 0x316   :  { %v1154_v13 = vrot.slane %v7968_v51, 1  ;;  %v1355_v57 = vrot.slane %v7968_v51, 2  ;;  %v1472_v58 = vrot.slane %v7968_v51, 3  ;;  %v1589_v59 = vrot.slane %v7968_v51, 4 }
 0x317   :  { %v1153_v60 = vrot.slane %v7970_v53, 1  ;;  %v1354_v61 = vrot.slane %v7970_v53, 2  ;;  %v1471_v62 = vrot.slane %v7970_v53, 3  ;;  %v1588_v19 = vrot.slane %v7970_v53, 4 }
 0x318   :  { %v6506_v43 = vpack.c.bf16 %v5296_v37, %v5294_v36  ;;  %v5327_v36 = vld [vmem:[%s10023_s5 + $0x270] sm:$0xff]  ;;  %v5329_v37 = vld [vmem:[%s10023_s5 + $0x280] sm:$0xff] }
 0x319   :  { %v1155_v44 = vsel %vm107_vm0, %v1153_v60, %v1154_v13  ;;  %v8003_v2 = vsel %vm319_vm3, %v1354_v61, %v1355_v57  ;;  %v8008_v6 = vsel %vm441_vm4, %v1471_v62, %v1472_v58  ;;  %v8013_v8 = vsel %vm563_vm2, %v1588_v19, %v1589_v59  ;;  %v5301_v61 = vld [vmem:[%s10023_s5 + $0x1c0] sm:$0xff]  ;;  %v5303_v62 = vld [vmem:[%s10023_s5 + $0x1d0] sm:$0xff]  ;;  %v5306_v19 = vld [vmem:[%s10023_s5 + $0x1e8] sm:$0xff] }
 0x31a   :  { %5283 = vmatmul.mubr.msk.f32.vlgmr.msra.gmra.mrb[16].mxu1 %vm1156_vm9, %v1155_v44  ;;  %v6516_v41 = vpack.c.bf16 %v5303_v62, %v5301_v61  ;;  %v5305_v44 = vld [vmem:[%s10023_s5 + $0x1e0] sm:$0xff] }
 0x31b   :  { %6485 = vmatpush1.bf16.msra.mxu1 %v6484_v54  ;;  %1237 = vmatprep.mubr.f32.mxu1 %v7280_v7  ;;  %v6510_v54 = vpack.c.bf16 %v5300_v50, %v5298_v49  ;;  %v6520_v29 = vpack.c.bf16 %v5307_v45, %v5305_v44  ;;  %v5336_v49 = vld [vmem:[%s10023_s5 + $0x2b8] sm:$0xf]  ;;  %v5342_v50 = vld [vmem:[%s10023_s5 + $0x2c8] sm:$0xff]  ;;  %v5345_v62 = vld [vmem:[%s10023_s5 + $0x2e0] sm:$0xff] }
 0x31c   :  { %6487 = vmatprep.subr.bf16.mxu1 %v6486_v63  ;;  %v5308_v63 = vld [vmem:[%s10023_s5 + $0x1f8] sm:$0xff]  ;;  %v5349_v45 = vld [vmem:[%s10023_s5 + $0x300] sm:$0xff] }
 0x31d   :  { %v6518_v0 = vpack.c.bf16 %v5308_v63, %v5306_v19  ;;  %v5347_v19 = vld [vmem:[%s10023_s5 + $0x2f0] sm:$0xff]  ;;  %v5350_v63 = vld [vmem:[%s10023_s5 + $0x308] sm:$0xff] }
 0x31e   :  { %5284 = vmatmul.mubr.msk.f32.gmra.mrb[18].mxu1 %vm1156_vm9, %v1154_v13  ;;  %v6512_v13 = vpack.c.bf16 %v5299_v56, %v5297_v55  ;;  %v5343_v55 = vld [vmem:[%s10023_s5 + $0x2d0] sm:$0xff]  ;;  %v5346_v56 = vld [vmem:[%s10023_s5 + $0x2e8] sm:$0xff] }
 0x31f   :  { %6489 = vmatpush1.bf16.msra.mxu1 %v6488_v9  ;;  %1318 = vmatprep.mubr.f32.mxu1 %v7280_v7  ;;  %v5310_v9 = vld [vmem:[%s10023_s5 + $0x208] sm:$0xf] }
 0x320   :  { %6491 = vmatprep.subr.bf16.mxu1 %v6490_v10  ;;  %v5316_v10 = vld [vmem:[%s10023_s5 + $0x218] sm:$0xff] }
 0x321   :  { %v6522_v21 = vpack.c.bf16 %v5318_v11, %v5316_v10 }
 0x323   :  { %6493 = vmatpush1.bf16.msra.mxu1 %v6492_v18  ;;  %v5322_v18 = vld [vmem:[%s10023_s5 + $0x248] sm:$0xff] }
 0x324   :  { %6495 = vmatprep.subr.bf16.mxu1 %v6494_v20  ;;  %v5309_v20 = vld [vmem:[%s10023_s5 + $0x200] sm:$0xf]  ;;  %v6526_v23 = vpack.c.bf16 %v5322_v18, %v5320_v17  ;;  %v5358_v17 = vld [vmem:[%s10023_s5 + $0x348] sm:$0xff]  ;;  %v6556_v18 = vpack.c.bf16 %v5355_v16, %v5353_v14 }
 0x325   :  { %v2055_v14 = vld [vmem:[%s10027_s9] sm:$0xff]  ;;  %v2056_v16 = vld [vmem:[%s10027_s9 + $0x8] sm:$0xff] }
 0x327   :  { %6497 = vmatpush1.bf16.msra.mxu1 %v6496_v25  ;;  %v5321_v25 = vld [vmem:[%s10023_s5 + $0x240] sm:$0xff] }
 0x328   :  { %6499 = vmatprep.subr.bf16.mxu1 %v6498_v26  ;;  %v5324_v26 = vld [vmem:[%s10023_s5 + $0x258] sm:$0xff]  ;;  %v6528_v28 = vpack.c.bf16 %v5321_v25, %v5319_v24  ;;  %v5362_v24 = vld [vmem:[%s10023_s5 + $0x368] sm:$0xf]  ;;  %v5361_v25 = vld [vmem:[%s10023_s5 + $0x360] sm:$0xf] }
 0x32b   :  { %6501 = vmatpush1.bf16.msra.mxu1 %v6500_v30  ;;  %v6530_v30 = vpack.c.bf16 %v5326_v27, %v5324_v26  ;;  %v1719_v26 = vld [vmem:[%s10025_s7 + $0x90] sm:$0xff]  ;;  %v1720_v27 = vld [vmem:[%s10025_s7 + $0x98] sm:$0xff] }
 0x32c   :  { %5285 = vmatprep.subr.msk.mxu1 %vm563_vm2, %v1127_v31  ;;  %v5323_v31 = vld [vmem:[%s10023_s5 + $0x250] sm:$0xff] }
 0x32d   :  { %v6532_v34 = vpack.c.bf16 %v5325_v32, %v5323_v31 }
 0x32f   :  { %5286 = vmatpush1.msk.msra.mxu1 %vm563_vm2, %v1126_v38  ;;  %v5332_v38 = vld [vmem:[%s10023_s5 + $0x298] sm:$0xff] }
 0x330   :  { %5287 = vmatmul.mubr.msk.f32.vlgmr.msra.gmra.mrb[16].mxu1 %vm1156_vm9, %v7970_v53  ;;  %6503 = vmatprep.subr.bf16.mxu1 %v6502_v39  ;;  %v5304_v53 = vld [vmem:[%s10023_s5 + $0x1d8] sm:$0xff]  ;;  %v6536_v39 = vpack.c.bf16 %v5329_v37, %v5327_v36 }
 0x331   :  { %6505 = vmatpush1.bf16.msra.mxu1 %v6504_v40  ;;  %1324 = vmatprep.mubr.f32.mxu1 %v7280_v7  ;;  %v6514_v60 = vpack.c.bf16 %v5304_v53, %v5302_v12  ;;  %v5348_v12 = vld [vmem:[%s10023_s5 + $0x2f8] sm:$0xff]  ;;  %v5335_v53 = vld [vmem:[%s10023_s5 + $0x2b0] sm:$0xf] }
 0x332   :  { %6507 = vmatprep.subr.bf16.mxu1 %v6506_v43  ;;  %v5331_v43 = vld [vmem:[%s10023_s5 + $0x290] sm:$0xff]  ;;  %v6546_v61 = vpack.c.bf16 %v5348_v12, %v5346_v56  ;;  %v5377_v56 = vld [vmem:[%s10025_s7 + $0xe0] sm:$0xff]  ;;  %v5378_v12 = vld [vmem:[%s10025_s7 + $0xe8] sm:$0xff] }
 0x333   :  { %v6540_v47 = vpack.c.bf16 %v5333_v46, %v5331_v43 }
 0x334   :  { %5288 = vmatmul.mubr.msk.f32.gmra.mrb[18].mxu1 %vm1156_vm9, %v7968_v51 }
 0x335   :  { %6509 = vmatpush1.bf16.msra.mxu1 %v6508_v52  ;;  %1431 = vmatprep.mubr.f32.mxu1 %v7280_v7  ;;  %v5344_v52 = vld [vmem:[%s10023_s5 + $0x2d8] sm:$0xff] }
 0x336   :  { %6511 = vmatprep.subr.bf16.mxu1 %v6510_v54  ;;  %v5341_v54 = vld [vmem:[%s10023_s5 + $0x2c0] sm:$0xff] }
 0x339   :  { %6513 = vmatpush1.bf16.msra.mxu1 %v6512_v13  ;;  %v6542_v13 = vpack.c.bf16 %v5344_v52, %v5342_v50  ;;  %v5375_v52 = vld [vmem:[%s10025_s7 + $0xd0] sm:$0xff] }
 0x33a   :  { %6515 = vmatprep.subr.bf16.mxu1 %v6514_v60  ;;  %v6544_v60 = vpack.c.bf16 %v5343_v55, %v5341_v54  ;;  %v5376_v54 = vld [vmem:[%s10025_s7 + $0xd8] sm:$0xff] }
 0x33b   :  { %v6602_v55 = vpack.c.bf16 %v5376_v54, %v5375_v52  ;;  %v5403_v52 = vld [vmem:[%s10027_s9 + $0x88] sm:$0xff] }
 0x33d   :  { %6517 = vmatpush1.bf16.msra.mxu1 %v6516_v41  ;;  %v5352_v41 = vld [vmem:[%s10023_s5 + $0x318] sm:$0xff] }
 0x33e   :  { %6519 = vmatprep.subr.bf16.mxu1 %v6518_v0  ;;  %v6548_v0 = vpack.c.bf16 %v5347_v19, %v5345_v62  ;;  %v6550_v44 = vpack.c.bf16 %v5352_v41, %v5350_v63  ;;  %v5381_v62 = vld [vmem:[%s10025_s7 + $0x100] sm:$0xff]  ;;  %v5382_v19 = vld [vmem:[%s10025_s7 + $0x108] sm:$0xff]  ;;  %v5383_v41 = vld [vmem:[%s10025_s7 + $0x110] sm:$0xff] }
 0x33f   :  { %v6611_v63 = vpack.c.bf16 %v5382_v19, %v5381_v62  ;;  %v5419_v19 = vld [vmem:[%s10027_s9 + $0xf0] sm:$0xff] }
 0x341   :  { %6521 = vmatpush1.bf16.msra.mxu1 %v6520_v29  ;;  %v5351_v29 = vld [vmem:[%s10023_s5 + $0x310] sm:$0xff] }
 0x342   :  { %5311 = vmatprep.subr.msk.mxu1 %vm563_vm2, %v5310_v9  ;;  %v5354_v9 = vld [vmem:[%s10023_s5 + $0x328] sm:$0xff]  ;;  %v6552_v10 = vpack.c.bf16 %v5351_v29, %v5349_v45  ;;  %v5385_v45 = vld [vmem:[%s10025_s7 + $0x120] sm:$0xff] }
 0x343   :  { %v5386_v29 = vld [vmem:[%s10025_s7 + $0x128] sm:$0xff] }
 0x345   :  { %5312 = vmatpush1.msk.msra.mxu1 %vm563_vm2, %v5309_v20 }
 0x346   :  { %5313 = vmatmul.mubr.msk.f32.vlgmr.msra.gmra.mrb[16].mxu1 %vm1156_vm9, %v8003_v2  ;;  %6523 = vmatprep.subr.bf16.mxu1 %v6522_v21  ;;  %v5330_v2 = vld [vmem:[%s10023_s5 + $0x288] sm:$0xff]  ;;  %v5357_v21 = vld [vmem:[%s10023_s5 + $0x340] sm:$0xff] }
 0x347   :  { %6525 = vmatpush1.bf16.msra.mxu1 %v6524_v22  ;;  %1437 = vmatprep.mubr.f32.mxu1 %v7280_v7  ;;  %v6534_v35 = vpack.c.bf16 %v5330_v2, %v5328_v33  ;;  %v5359_v22 = vld [vmem:[%s10023_s5 + $0x350] sm:$0xff]  ;;  %v5369_v33 = vld [vmem:[%s10025_s7 + $0xa0] sm:$0xff]  ;;  %v5370_v2 = vld [vmem:[%s10025_s7 + $0xa8] sm:$0xff] }
 0x348   :  { %6527 = vmatprep.subr.bf16.mxu1 %v6526_v23  ;;  %v6560_v23 = vpack.c.bf16 %v5359_v22, %v5357_v21  ;;  %v6593_v42 = vpack.c.bf16 %v5370_v2, %v5369_v33  ;;  %v2059_v21 = vld [vmem:[%s10027_s9 + $0x20] sm:$0xff]  ;;  %v2060_v22 = vld [vmem:[%s10027_s9 + $0x28] sm:$0xff] }
 0x34a   :  { %5314 = vmatmul.mubr.msk.f32.gmra.mrb[18].mxu1 %vm1156_vm9, %v1355_v57  ;;  %v5334_v57 = vld [vmem:[%s10023_s5 + $0x2a8] sm:$0xff] }
 0x34b   :  { %6529 = vmatpush1.bf16.msra.mxu1 %v6528_v28  ;;  %1548 = vmatprep.mubr.f32.mxu1 %v7280_v7  ;;  %v6538_v40 = vpack.c.bf16 %v5334_v57, %v5332_v38  ;;  %v6590_v28 = vpack.c.bf16 %v1720_v27, %v1719_v26  ;;  %v5371_v38 = vld [vmem:[%s10025_s7 + $0xb0] sm:$0xff]  ;;  %v5372_v57 = vld [vmem:[%s10025_s7 + $0xb8] sm:$0xff] }
 0x34c   :  { %6531 = vmatprep.subr.bf16.mxu1 %v6530_v30  ;;  %v6596_v43 = vpack.c.bf16 %v5372_v57, %v5371_v38  ;;  %v5393_v38 = vld [vmem:[%s10026_s8 + $0x8] sm:$0x1f] }
 0x34d   :  { %6591 = vmatpush1.bf16.msra.mxu0 %v6590_v28 }
 0x34e   :  { %6592 = vmatprep.subr.bf16.mxu0 %v7281_v15 }
 0x34f   :  { %6533 = vmatpush1.bf16.msra.mxu1 %v6532_v34 }
 0x350   :  { %6535 = vmatprep.subr.bf16.mxu1 %v6534_v35 }
 0x353   :  { %6537 = vmatpush1.bf16.msra.mxu1 %v6536_v39 }
 0x354   :  { %6539 = vmatprep.subr.bf16.mxu1 %v6538_v40 }
 0x357   :  { %6541 = vmatpush1.bf16.msra.mxu1 %v6540_v47  ;;  %v5373_v47 = vld [vmem:[%s10025_s7 + $0xc0] sm:$0xff] }
 0x358   :  { %5337 = vmatprep.subr.msk.mxu1 %vm563_vm2, %v5336_v49  ;;  %v5374_v49 = vld [vmem:[%s10025_s7 + $0xc8] sm:$0xff] }
 0x359   :  { %v6599_v50 = vpack.c.bf16 %v5374_v49, %v5373_v47  ;;  %v5401_v47 = vld [vmem:[%s10027_s9 + $0x78] sm:$0xff] }
 0x35b   :  { %5338 = vmatpush1.msk.msra.mxu1 %vm563_vm2, %v5335_v53  ;;  %v6605_v53 = vpack.c.bf16 %v5378_v12, %v5377_v56  ;;  %v2064_v56 = vld [vmem:[%s10027_s9 + $0x48] sm:$0xff] }
 0x35c   :  { %5339 = vmatmul.mubr.msk.f32.vlgmr.msra.gmra.mrb[16].mxu1 %vm1156_vm9, %v8008_v6  ;;  %6543 = vmatprep.subr.bf16.mxu1 %v6542_v13  ;;  %v5356_v6 = vld [vmem:[%s10023_s5 + $0x338] sm:$0xff]  ;;  %v5379_v13 = vld [vmem:[%s10025_s7 + $0xf0] sm:$0xff] }
 0x35d   :  { %6545 = vmatpush1.bf16.msra.mxu1 %v6544_v60  ;;  %1554 = vmatprep.mubr.f32.mxu1 %v7280_v7  ;;  %v6554_v11 = vpack.c.bf16 %v5356_v6, %v5354_v9  ;;  %v5380_v60 = vld [vmem:[%s10025_s7 + $0xf8] sm:$0xff]  ;;  %v6617_v9 = vpack.c.bf16 %v5386_v29, %v5385_v45  ;;  %v5387_v6 = vld [vmem:[%s10025_s7 + $0x130] sm:$0xff] }
 0x35e   :  { %6547 = vmatprep.subr.bf16.mxu1 %v6546_v61  ;;  %v6608_v61 = vpack.c.bf16 %v5380_v60, %v5379_v13  ;;  %v5405_v13 = vld [vmem:[%s10027_s9 + $0x98] sm:$0xff] }
 0x360   :  { %5340 = vmatmul.mubr.msk.f32.gmra.mrb[18].mxu1 %vm1156_vm9, %v1472_v58  ;;  %v5360_v58 = vld [vmem:[%s10023_s5 + $0x358] sm:$0xff] }
 0x361   :  { %6549 = vmatpush1.bf16.msra.mxu1 %v6548_v0  ;;  %1665 = vmatprep.mubr.f32.mxu1 %v7280_v7  ;;  %v6558_v20 = vpack.c.bf16 %v5360_v58, %v5358_v17  ;;  %v5384_v0 = vld [vmem:[%s10025_s7 + $0x118] sm:$0xff]  ;;  %v6646_v17 = vpack.c.bf16 %v2056_v16, %v2055_v14  ;;  %v2057_v58 = vld [vmem:[%s10027_s9 + $0x10] sm:$0xff] }
 0x362   :  { %6551 = vmatprep.subr.bf16.mxu1 %v6550_v44  ;;  %v6614_v44 = vpack.c.bf16 %v5384_v0, %v5383_v41  ;;  %v5408_v41 = vld [vmem:[%s10027_s9 + $0xa0] sm:$0xff]  ;;  %v5409_v0 = vld [vmem:[%s10027_s9 + $0xa8] sm:$0xff]  ;;  %v5410_v16 = vld [vmem:[%s10027_s9 + $0xb0] sm:$0xff] }
 0x365   :  { %6553 = vmatpush1.bf16.msra.mxu1 %v6552_v10  ;;  %v5388_v10 = vld [vmem:[%s10025_s7 + $0x138] sm:$0xff] }
 0x366   :  { %6555 = vmatprep.subr.bf16.mxu1 %v6554_v11  ;;  %v6620_v11 = vpack.c.bf16 %v5388_v10, %v5387_v6  ;;  %v5421_v6 = vld [vmem:[%s10027_s9 + $0x100] sm:$0xff]  ;;  %v5422_v10 = vld [vmem:[%s10027_s9 + $0x108] sm:$0xff] }
 0x369   :  { %6557 = vmatpush1.bf16.msra.mxu1 %v6556_v18  ;;  %v2058_v18 = vld [vmem:[%s10027_s9 + $0x18] sm:$0xff] }
 0x36a   :  { %6559 = vmatprep.subr.bf16.mxu1 %v6558_v20  ;;  %v6649_v20 = vpack.c.bf16 %v2058_v18, %v2057_v58  ;;  %v6679_v58 = vpack.c.bf16 %v5422_v10, %v5421_v6  ;;  %v5423_v18 = vld [vmem:[%s10027_s9 + $0x110] sm:$0xff]  ;;  %v62_v6 = vld [vmem:[%s10029_s11 + $0x40] sm:$0xff]  ;;  %v63_v10 = vld [vmem:[%s10029_s11 + $0x48] sm:$0xff] }
 0x36d   :  { %6561 = vmatpush1.bf16.msra.mxu1 %v6560_v23  ;;  %v6652_v23 = vpack.c.bf16 %v2060_v22, %v2059_v21  ;;  %v5412_v22 = vld [vmem:[%s10027_s9 + $0xc0] sm:$0xff] }
 0x36e   :  { %5363 = vmatprep.subr.msk.mxu1 %vm563_vm2, %v5362_v24  ;;  %v2061_v24 = vld [vmem:[%s10027_s9 + $0x30] sm:$0xff] }
 0x371   :  { %5364 = vmatpush1.msk.msra.mxu1 %vm563_vm2, %v5361_v25  ;;  %v2062_v25 = vld [vmem:[%s10027_s9 + $0x38] sm:$0xff] }
 0x372   :  { %5365 = vmatmul.mubr.msk.f32.vlgmr.msra.gmra.mrb[16].mxu1 %vm1156_vm9, %v8013_v8  ;;  %6645 = vmatprep.subr.bf16.mxu1 %v7281_v15  ;;  %v52_v8 = vld [vmem:[%s10024_s6] sm:$0x3]  ;;  %v6655_v26 = vpack.c.bf16 %v2062_v25, %v2061_v24 }
 0x373   :  { %1671 = vmatprep.mubr.f32.mxu1 %v7280_v7  ;;  %v8301_v51 = vrot.slane %v52_v8, %v679_v1  ;;  %6647 = vmatpush3.bf16.msra.mxu1 %v6646_v17  ;;  %v5411_v17 = vld [vmem:[%s10027_s9 + $0xb8] sm:$0xff]  ;;  %v5425_v25 = vld [vmem:[%s10027_s9 + $0x120] sm:$0xff] }
 0x374   :  { %6648 = vmatprep.subr.bf16.mxu1 %v7281_v15  ;;  %v6664_v21 = vpack.c.bf16 %v5411_v17, %v5410_v16  ;;  %v65_v16 = vld [vmem:[%s10029_s11 + $0x58] sm:$0xff] }
 0x376   :  { %5366 = vmatmul.mubr.msk.f32.gmra.mrb[18].mxu1 %vm1156_vm9, %v1589_v59  ;;  %v8305_v59 = vrot.slane %v52_v8, %v683_v3 }
 0x377   :  { %6003 = vmatprep.mubr.msk.f32.mxu1 %vm7283_vm10, %v7280_v7  ;;  %6650 = vmatpush3.bf16.msra.mxu1 %v6649_v20  ;;  %v5424_v20 = vld [vmem:[%s10027_s9 + $0x118] sm:$0xff] }
 0x378   :  { %6651 = vmatprep.subr.bf16.mxu1 %v7281_v15  ;;  %v6682_v24 = vpack.c.bf16 %v5424_v20, %v5423_v18  ;;  %v67_v18 = vld [vmem:[%s10029_s11 + $0x68] sm:$0xff] }
 0x37b   :  { %6653 = vmatpush3.bf16.msra.mxu1 %v6652_v23  ;;  %v5413_v23 = vld [vmem:[%s10027_s9 + $0xc8] sm:$0xff] }
 0x37c   :  { %6654 = vmatprep.subr.bf16.mxu1 %v7281_v15 }
 0x37f   :  { %6656 = vmatpush3.bf16.msra.mxu1 %v6655_v26  ;;  %v5426_v26 = vld [vmem:[%s10027_s9 + $0x128] sm:$0xff] }
 0x380   :  { %6657 = vmatprep.subr.bf16.mxu1 %v7281_v15 }
 0x445   :  { %v1667_v30 = vpop.f32.mrb[16].mxu1 }
 0x446   :  { %v8308_v31 = vadd.f32 %v8301_v51, %v1667_v30  ;;  %v1669_v32 = vpop.f32.mrb[17].mxu1 }
 0x447   :  { %v1694_v1 = vadd.f32 %v8305_v59, %v1669_v32 }
 0x448   :  { %v1697_v3 = vmax.f32 %v8308_v31, 0.0 }
 0x449   :  { %v1698_v34 = vmax.f32 %v1694_v1, 0.0  ;;  %v1673_v35 = vpop.f32.mrb[18].mxu1 }
 0x44a   :  { %v1695_v36 = vadd.f32 %v8301_v51, %v1673_v35  ;;  %v1675_v37 = vpop.f32.mrb[19].mxu1 }
 0x44b   :  { %v1696_v39 = vadd.f32 %v8305_v59, %v1675_v37  ;;  %5367 = vmatprep.mubr.msk.f32.mxu0 %vm115_vm1, %v1698_v34  ;;  %v5397_v37 = vld [vmem:[%s10027_s9 + $0x58] sm:$0xff] }
 0x44c   :  { %1792 = vmatmul.mubr.f32.vlgmr.msra.gmra.mrb[12].mxu0 %v1697_v3  ;;  %v1699_v46 = vmax.f32 %v1695_v36, 0.0  ;;  %v5396_v36 = vld [vmem:[%s10027_s9 + $0x50] sm:$0xff] }
 0x44d   :  { %v1700_v40 = vmax.f32 %v1696_v39, 0.0  ;;  %6594 = vmatpush1.bf16.msra.mxu0 %v6593_v42  ;;  %v6631_v57 = vpack.c.bf16 %v5397_v37, %v5396_v36  ;;  %v5398_v39 = vld [vmem:[%s10027_s9 + $0x60] sm:$0xff]  ;;  %v5431_v36 = vld [vmem:[%s10027_s9 + $0x148] sm:$0xff] }
 0x44e   :  { %6595 = vmatprep.subr.bf16.mxu0 %v7281_v15 }
 0x44f   :  { %5368 = vmatprep.mubr.msk.f32.mxu0 %vm115_vm1, %v1700_v40 }
 0x450   :  { %1797 = vmatmul.mubr.f32.gmra.mrb[14].mxu0 %v1699_v46 }
 0x451   :  { %6597 = vmatpush1.bf16.msra.mxu0 %v6596_v43  ;;  %5389 = vmatprep.mubr.msk.f32.mxu0 %vm115_vm1, %v1698_v34 }
 0x452   :  { %6598 = vmatprep.subr.bf16.mxu0 %v7281_v15 }
 0x455   :  { %6600 = vmatpush1.bf16.msra.mxu0 %v6599_v50  ;;  %v5402_v50 = vld [vmem:[%s10027_s9 + $0x80] sm:$0xff] }
 0x456   :  { %6601 = vmatprep.subr.bf16.mxu0 %v7281_v15  ;;  %v6640_v54 = vpack.c.bf16 %v5403_v52, %v5402_v50  ;;  %v5436_v50 = vld [vmem:[%s10027_s9 + $0x170] sm:$0xff]  ;;  %v5437_v52 = vld [vmem:[%s10027_s9 + $0x178] sm:$0xff] }
 0x459   :  { %6603 = vmatpush1.bf16.msra.mxu0 %v6602_v55  ;;  %v2063_v55 = vld [vmem:[%s10027_s9 + $0x40] sm:$0xff] }
 0x45a   :  { %6604 = vmatprep.subr.bf16.mxu0 %v7281_v15  ;;  %v6658_v12 = vpack.c.bf16 %v2064_v56, %v2063_v55  ;;  %v5438_v55 = vld [vmem:[%s10027_s9 + $0x180] sm:$0xff]  ;;  %v5439_v56 = vld [vmem:[%s10027_s9 + $0x188] sm:$0xff] }
 0x45c   :  { %6659 = vmatpush3.bf16.msra.mxu1 %v6658_v12  ;;  %v6703_v12 = vpack.c.bf16 %v5439_v56, %v5438_v55 }
 0x45d   :  { %6606 = vmatpush1.bf16.msra.mxu0 %v6605_v53  ;;  %v5404_v53 = vld [vmem:[%s10027_s9 + $0x90] sm:$0xff]  ;;  %6675 = vmatprep.subr.bf16.mxu1 %v7281_v15 }
 0x45e   :  { %6607 = vmatprep.subr.bf16.mxu0 %v7281_v15  ;;  %v6643_v60 = vpack.c.bf16 %v5405_v13, %v5404_v53  ;;  %v54_v13 = vld [vmem:[%s10029_s11] sm:$0xff] }
 0x461   :  { %6609 = vmatpush1.bf16.msra.mxu0 %v6608_v61 }
 0x462   :  { %6610 = vmatprep.subr.bf16.mxu0 %v7281_v15 }
 0x465   :  { %6612 = vmatpush1.bf16.msra.mxu0 %v6611_v63  ;;  %v5420_v63 = vld [vmem:[%s10027_s9 + $0xf8] sm:$0xff] }
 0x466   :  { %6613 = vmatprep.subr.bf16.mxu0 %v7281_v15  ;;  %v6676_v45 = vpack.c.bf16 %v5420_v63, %v5419_v19  ;;  %v57_v19 = vld [vmem:[%s10029_s11 + $0x18] sm:$0xff] }
 0x469   :  { %6615 = vmatpush1.bf16.msra.mxu0 %v6614_v44 }
 0x46a   :  { %6616 = vmatprep.subr.bf16.mxu0 %v7281_v15 }
 0x46d   :  { %6618 = vmatpush1.bf16.msra.mxu0 %v6617_v9 }
 0x46e   :  { %6619 = vmatprep.subr.bf16.mxu0 %v7281_v15 }
 0x471   :  { %6621 = vmatpush1.bf16.msra.mxu0 %v6620_v11  ;;  %v6661_v11 = vpack.c.bf16 %v5409_v0, %v5408_v41  ;;  %v58_v41 = vld [vmem:[%s10029_s11 + $0x20] sm:$0xff]  ;;  %v59_v0 = vld [vmem:[%s10029_s11 + $0x28] sm:$0xff] }
 0x472   :  { %6622 = vmatprep.subr.bf16.mxu0 %v7281_v15 }
 0x474   :  { %1888 = vmatmul.mubr.f32.vlgmr.msra.gmra.mrb[16].mxu0 %v1697_v3  ;;  %v1900_v3 = vld [vmem:[%s10026_s8] sm:$0x1f] }
 0x475   :  { %5390 = vmatprep.mubr.msk.f32.mxu0 %vm115_vm1, %v1700_v40  ;;  %v5399_v40 = vld [vmem:[%s10027_s9 + $0x68] sm:$0xff] }
 0x476   :  { %v6634_v43 = vpack.c.bf16 %v5399_v40, %v5398_v39  ;;  %v5432_v39 = vld [vmem:[%s10027_s9 + $0x150] sm:$0xff]  ;;  %v5433_v40 = vld [vmem:[%s10027_s9 + $0x158] sm:$0xff] }
 0x478   :  { %1893 = vmatmul.mubr.f32.gmra.mrb[18].mxu0 %v1699_v46  ;;  %v5400_v46 = vld [vmem:[%s10027_s9 + $0x70] sm:$0xff] }
 0x479   :  { %5950 = vmatprep.mubr.msk.f32.mxu0 %vm7283_vm10, %v7280_v7  ;;  %v6637_v49 = vpack.c.bf16 %v5401_v47, %v5400_v46  ;;  %v5434_v46 = vld [vmem:[%s10027_s9 + $0x160] sm:$0xff]  ;;  %v5435_v47 = vld [vmem:[%s10027_s9 + $0x168] sm:$0xff] }
 0x51f   :  { %v1793_v27 = vpop.f32.mrb[12].mxu0 }
 0x520   :  { %v1795_v28 = vpop.f32.mrb[13].mxu0 }
 0x521   :  { %v5414_v28 = vld [vmem:[%s10027_s9 + $0xd0] sm:$0xff] }
 0x523   :  { %v1798_v8 = vpop.f32.mrb[14].mxu0 }
 0x524   :  { %v1800_v30 = vpop.f32.mrb[15].mxu0 }
 0x525   :  { %v6685_v30 = vpack.c.bf16 %v5426_v26, %v5425_v25  ;;  %v8694_v25 = vld [vmem:[%s10018_s0 + $0x20] sm:$0xff]  ;;  %v8699_v26 = vld [vmem:[%s10018_s0 + $0x28] sm:$0xff] }
 0x547   :  { %v1889_v31 = vpop.f32.mrb[16].mxu0 }
 0x548   :  { %v1898_v32 = vmax.f32 %v1793_v27, %v1889_v31  ;;  %v1891_v33 = vpop.f32.mrb[17].mxu0  ;;  %v6667_v27 = vpack.c.bf16 %v5413_v23, %v5412_v22  ;;  %v5427_v31 = vld [vmem:[%s10027_s9 + $0x130] sm:$0xff]  ;;  %v5451_v22 = vld [vmem:[%s10019_s1 + $0x58] sm:$0xff] }
 0x549   :  { %v68_v23 = vld [vmem:[%s10029_s11 + $0x70] sm:$0xff] }
 0x54b   :  { %v1894_v2 = vpop.f32.mrb[18].mxu0 }
 0x54c   :  { %v1899_v1 = vmax.f32 %v1798_v8, %v1894_v2  ;;  %v1896_v34 = vpop.f32.mrb[19].mxu0  ;;  %v5415_v8 = vld [vmem:[%s10027_s9 + $0xd8] sm:$0xff]  ;;  %v5416_v2 = vld [vmem:[%s10027_s9 + $0xe0] sm:$0xff] }
 0x54d   :  { %v6670_v33 = vpack.c.bf16 %v5415_v8, %v5414_v28  ;;  %v3119_v28 = vrot.slane %v8699_v26, 4 }
 0x54e   :  { %v6623_v42 = vpack.c.bf16 %v1899_v1, %v1898_v32  ;;  %v5428_v32 = vld [vmem:[%s10027_s9 + $0x138] sm:$0xff]  ;;  %v5417_v1 = vld [vmem:[%s10027_s9 + $0xe8] sm:$0xff] }
 0x54f   :  { %v6688_v34 = vpack.c.bf16 %v5428_v32, %v5427_v31 }
 0x550   :  { %6625 = vmatpush3.bf16.msk.msra.mxu0 %vm8421_vm12, %v6623_v42 }
 0x551   :  { %6626 = vmatprep.subr.bf16.mxu0 %v7281_v15 }
 0x553   :  { %5951 = vmatmul.mubr.msk.f32.vlgmr.msra.gmra.mrb[20].mxu0 %vm1901_vm13, %v1900_v3  ;;  %v5430_v3 = vld [vmem:[%s10027_s9 + $0x140] sm:$0xff] }
 0x554   :  { %6629 = vmatpush3.bf16.msk.msra.mxu0 %vm8421_vm12, %v6623_v42  ;;  %5957 = vmatprep.mubr.msk.f32.mxu0 %vm7283_vm10, %v7280_v7  ;;  %v6673_v42 = vpack.c.bf16 %v5417_v1, %v5416_v2 }
 0x555   :  { %6630 = vmatprep.subr.bf16.mxu0 %v7281_v15 }
 0x557   :  { %5958 = vmatmul.mubr.msk.f32.vlgmr.msra.gmra.mrb[22].mxu0 %vm1901_vm13, %v5393_v38  ;;  %v6691_v38 = vpack.c.bf16 %v5431_v36, %v5430_v3 }
 0x558   :  { %6632 = vmatpush3.bf16.msra.mxu0 %v6631_v57  ;;  %5980 = vmatprep.mubr.msk.f32.mxu0 %vm7283_vm10, %v7280_v7 }
 0x559   :  { %6633 = vmatprep.subr.bf16.mxu0 %v7281_v15 }
 0x55c   :  { %6635 = vmatpush3.bf16.msra.mxu0 %v6634_v43  ;;  %v6694_v43 = vpack.c.bf16 %v5433_v40, %v5432_v39  ;;  %v72_v39 = vld [vmem:[%s10031_s13 + $0x10] sm:$0xff] }
 0x55d   :  { %6636 = vmatprep.subr.bf16.mxu0 %v7281_v15 }
 0x560   :  { %6638 = vmatpush3.bf16.msra.mxu0 %v6637_v49  ;;  %v6697_v49 = vpack.c.bf16 %v5435_v47, %v5434_v46  ;;  %v74_v47 = vld [vmem:[%s10031_s13 + $0x20] sm:$0xff] }
 0x561   :  { %6639 = vmatprep.subr.bf16.mxu0 %v7281_v15 }
 0x564   :  { %6641 = vmatpush3.bf16.msra.mxu0 %v6640_v54  ;;  %v6700_v54 = vpack.c.bf16 %v5437_v52, %v5436_v50  ;;  %v76_v52 = vld [vmem:[%s10031_s13 + $0x30] sm:$0xff] }
 0x565   :  { %6642 = vmatprep.subr.bf16.mxu0 %v7281_v15 }
 0x568   :  { %6644 = vmatpush3.bf16.msra.mxu0 %v6643_v60  ;;  %v55_v60 = vld [vmem:[%s10029_s11 + $0x8] sm:$0xff] }
 0x569   :  { %6660 = vmatprep.subr.bf16.mxu0 %v7281_v15 }
 0x626   :  { %v1975_v61 = vpop.f32.mrb[20].mxu0 }
 0x627   :  { %v5952_v62 = vpop.f32.mrb[21].mxu0 }
 0x628   :  { %v56_v62 = vld [vmem:[%s10029_s11 + $0x10] sm:$0xff] }
 0x629   :  { %v8628_v63 = vpack.c.bf16 %v57_v19, %v56_v62  ;;  %v53_v19 = vld [vmem:[%s10028_s10] sm:$0x1] }
 0x62a   :  { %v2050_v44 = vpop.f32.mrb[22].mxu0 }
 0x62b   :  { %v8497_v29 = vmax.f32 %v1975_v61, %v2050_v44  ;;  %v5959_v9 = vpop.f32.mrb[23].mxu0  ;;  %v8618_v61 = vpack.c.bf16 %v55_v60, %v54_v13  ;;  %v8638_v44 = vpack.c.bf16 %v59_v0, %v58_v41 }
 0x62d   :  { %6004 = vmatmul.mubr.msk.f32.vlgmr.msra.gmra.mrb[20].mxu1 %vm2078_vm14, %v8497_v29  ;;  %v2077_v14 = vrot.slane %v8497_v29, 1  ;;  %v2319_v37 = vrot.slane %v8497_v29, 3  ;;  %v2234_v57 = vrot.slane %v8497_v29, 2  ;;  %v2404_v53 = vrot.slane %v8497_v29, 4  ;;  %v61_v29 = vld [vmem:[%s10029_s11 + $0x38] sm:$0xff] }
 0x62e   :  { %6677 = vmatpush3.bf16.msra.mxu1 %v6676_v45  ;;  %6049 = vmatprep.mubr.msk.f32.mxu1 %vm7283_vm10, %v7280_v7  ;;  %v60_v45 = vld [vmem:[%s10029_s11 + $0x30] sm:$0xff] }
 0x62f   :  { %5981 = vmatmul.mubr.msk.f32.vlgmr.msra.gmra.mrb[24].mxu0 %vm2078_vm14, %v2077_v14  ;;  %6678 = vmatprep.subr.bf16.mxu1 %v7281_v15  ;;  %v8647_v9 = vpack.c.bf16 %v61_v29, %v60_v45  ;;  %v64_v14 = vld [vmem:[%s10029_s11 + $0x50] sm:$0xff]  ;;  %v5448_v29 = vld [vmem:[%s10019_s1 + $0x40] sm:$0xff] }
 0x630   :  { %6662 = vmatpush3.bf16.msra.mxu0 %v6661_v11  ;;  %6026 = vmatprep.mubr.msk.f32.mxu0 %vm7283_vm10, %v7280_v7  ;;  %v8657_v11 = vpack.c.bf16 %v63_v10, %v62_v6  ;;  %v8667_v17 = vpack.c.bf16 %v65_v16, %v64_v14  ;;  %v5450_v6 = vld [vmem:[%s10019_s1 + $0x50] sm:$0xff]  ;;  %v5453_v10 = vld [vmem:[%s10019_s1 + $0x68] sm:$0xff]  ;;  %v5455_v14 = vld [vmem:[%s10019_s1 + $0x78] sm:$0xff] }
 0x631   :  { %6663 = vmatprep.subr.bf16.mxu0 %v7281_v15 }
 0x632   :  { %6680 = vmatpush3.bf16.msra.mxu1 %v6679_v58  ;;  %v66_v58 = vld [vmem:[%s10029_s11 + $0x60] sm:$0xff] }
 0x633   :  { %6681 = vmatprep.subr.bf16.mxu1 %v7281_v15  ;;  %v8678_v20 = vpack.c.bf16 %v67_v18, %v66_v58  ;;  %v6743_v58 = vpack.c.bf16 %v5450_v6, %v5448_v29 }
 0x634   :  { %6665 = vmatpush3.bf16.msra.mxu0 %v6664_v21  ;;  %v5449_v21 = vld [vmem:[%s10019_s1 + $0x48] sm:$0xff] }
 0x635   :  { %6666 = vmatprep.subr.bf16.mxu0 %v7281_v15 }
 0x636   :  { %6683 = vmatpush3.bf16.msra.mxu1 %v6682_v24  ;;  %v6741_v24 = vpack.c.bf16 %v5451_v22, %v5449_v21  ;;  %v6745_v21 = vpack.c.bf16 %v5455_v14, %v5453_v10  ;;  %v5452_v22 = vld [vmem:[%s10019_s1 + $0x60] sm:$0xff]  ;;  %v5470_v14 = vld [vmem:[%s10019_s1 + $0xb0] sm:$0xff] }
 0x637   :  { %6684 = vmatprep.subr.bf16.mxu1 %v7281_v15  ;;  %v5468_v10 = vld [vmem:[%s10019_s1 + $0xa0] sm:$0xff] }
 0x638   :  { %6668 = vmatpush3.bf16.msra.mxu0 %v6667_v27  ;;  %v3118_v27 = vrot.slane %v8694_v25, 4 }
 0x639   :  { %6669 = vmatprep.subr.bf16.mxu0 %v7281_v15 }
 0x63a   :  { %6686 = vmatpush3.bf16.msra.mxu1 %v6685_v30  ;;  %v8704_v8 = vsel %vm563_vm2, %v3118_v27, %v3119_v28  ;;  %v8709_v30 = vld [vmem:[%s10018_s0 + $0x30] sm:$0xff]  ;;  %v2652_v27 = vld [vmem:[%s10019_s1 + $0x18] sm:$0xff] }
 0x63b   :  { %6687 = vmatprep.subr.bf16.mxu1 %v7281_v15  ;;  %v3121_v31 = vrot.slane %v8709_v30, 4 }
 0x63c   :  { %6671 = vmatpush3.bf16.msra.mxu0 %v6670_v33  ;;  %v8718_v33 = vld [vmem:[%s10018_s0 + $0x38] sm:$0xff] }
 0x63d   :  { %6672 = vmatprep.subr.bf16.mxu0 %v7281_v15  ;;  %v8713_v32 = vsel %vm563_vm2, %v3119_v28, %v3121_v31  ;;  %v3123_v2 = vrot.slane %v8718_v33, 4 }
 0x63e   :  { %6689 = vmatpush3.bf16.msra.mxu1 %v6688_v34 }
 0x63f   :  { %6705 = vmatprep.subr.bf16.mxu1 %v7281_v15  ;;  %v8724_v34 = vsel %vm563_vm2, %v3121_v31, %v3123_v2  ;;  %v2669_v31 = vrot.slane %v8694_v25, 1 }
 0x640   :  { %6674 = vmatpush3.bf16.msra.mxu0 %v6673_v42 }
 0x641   :  { %6050 = vmatmul.mubr.msk.f32.vlgmr.msra.gmra.mrb[22].mxu1 %vm2078_vm14, %v2319_v37  ;;  %6690 = vmatprep.subr.bf16.mxu0 %v7281_v15 }
 0x642   :  { %6105 = vmatprep.mubr.msk.f32.mxu1 %vm7283_vm10, %v7280_v7  ;;  %6707 = vmatpush3.bf16.msra.mxu1 %v8618_v61 }
 0x643   :  { %6027 = vmatmul.mubr.msk.f32.vlgmr.msra.gmra.mrb[26].mxu0 %vm2078_vm14, %v2234_v57  ;;  %6708 = vmatprep.subr.bf16.mxu1 %v7281_v15  ;;  %v71_v57 = vld [vmem:[%s10031_s13 + $0x8] sm:$0xff] }
 0x644   :  { %6692 = vmatpush3.bf16.msra.mxu0 %v6691_v38  ;;  %6072 = vmatprep.mubr.msk.f32.mxu0 %vm7283_vm10, %v7280_v7  ;;  %v70_v38 = vld [vmem:[%s10031_s13] sm:$0xff] }
 0x645   :  { %6693 = vmatprep.subr.bf16.mxu0 %v7281_v15  ;;  %v8735_v40 = vpack.c.bf16 %v71_v57, %v70_v38  ;;  %v2656_v38 = vld [vmem:[%s10019_s1 + $0x38] sm:$0xff] }
 0x646   :  { %6710 = vmatpush3.bf16.msra.mxu1 %v8628_v63 }
 0x647   :  { %6711 = vmatprep.subr.bf16.mxu1 %v7281_v15 }
 0x648   :  { %6695 = vmatpush3.bf16.msra.mxu0 %v6694_v43  ;;  %v73_v43 = vld [vmem:[%s10031_s13 + $0x18] sm:$0xff] }
 0x649   :  { %6696 = vmatprep.subr.bf16.mxu0 %v7281_v15  ;;  %v8741_v46 = vpack.c.bf16 %v73_v43, %v72_v39  ;;  %v2672_v39 = vrot.slane %v8709_v30, 1 }
 0x64a   :  { %6713 = vmatpush3.bf16.msra.mxu1 %v8638_v44 }
 0x64b   :  { %6714 = vmatprep.subr.bf16.mxu1 %v7281_v15 }
 0x64c   :  { %6698 = vmatpush3.bf16.msra.mxu0 %v6697_v49  ;;  %v75_v49 = vld [vmem:[%s10031_s13 + $0x28] sm:$0xff] }
 0x64d   :  { %6699 = vmatprep.subr.bf16.mxu0 %v7281_v15  ;;  %v8751_v50 = vpack.c.bf16 %v75_v49, %v74_v47  ;;  %v2653_v49 = vld [vmem:[%s10019_s1 + $0x20] sm:$0xff] }
 0x64e   :  { %6716 = vmatpush3.bf16.msra.mxu1 %v8647_v9 }
 0x64f   :  { %6717 = vmatprep.subr.bf16.mxu1 %v7281_v15 }
 0x650   :  { %6701 = vmatpush3.bf16.msra.mxu0 %v6700_v54  ;;  %v77_v54 = vld [vmem:[%s10031_s13 + $0x38] sm:$0xff] }
 0x651   :  { %6702 = vmatprep.subr.bf16.mxu0 %v7281_v15  ;;  %v8761_v55 = vpack.c.bf16 %v77_v54, %v76_v52  ;;  %v2655_v52 = vld [vmem:[%s10019_s1 + $0x30] sm:$0xff]  ;;  %v5465_v54 = vld [vmem:[%s10019_s1 + $0x88] sm:$0xff] }
 0x652   :  { %6719 = vmatpush3.bf16.msra.mxu1 %v8657_v11 }
 0x653   :  { %6720 = vmatprep.subr.bf16.mxu1 %v7281_v15 }
 0x654   :  { %6704 = vmatpush3.bf16.msra.mxu0 %v6703_v12 }
 0x655   :  { %6726 = vmatprep.subr.bf16.mxu0 %v7281_v15 }
 0x656   :  { %6722 = vmatpush3.bf16.msra.mxu1 %v8667_v17 }
 0x657   :  { %6073 = vmatmul.mubr.msk.f32.vlgmr.msra.gmra.mrb[28].mxu0 %vm2078_vm14, %v2404_v53  ;;  %6723 = vmatprep.subr.bf16.mxu1 %v7281_v15 }
 0x658   :  { %6130 = vmatprep.mubr.msk.f32.mxu0 %vm7283_vm10, %v7280_v7  ;;  %6728 = vmatpush3.bf16.msra.mxu0 %v8735_v40 }
 0x659   :  { %6729 = vmatprep.subr.bf16.mxu0 %v7281_v15 }
 0x65a   :  { %6725 = vmatpush3.bf16.msra.mxu1 %v8678_v20 }
 0x65b   :  { %6103 = vmatprep.subr.mxu1 %v7280_v7 }
 0x65c   :  { %6731 = vmatpush3.bf16.msra.mxu0 %v8741_v46 }
 0x65d   :  { %6732 = vmatprep.subr.bf16.mxu0 %v7281_v15 }
 0x65e   :  { %6104 = vmatpush3.msra.mxu1 %v68_v23  ;;  %v5454_v23 = vld [vmem:[%s10019_s1 + $0x70] sm:$0xff] }
 0x65f   :  { %6742 = vmatprep.subr.bf16.mxu1 %v6741_v24  ;;  %v2650_v24 = vld [vmem:[%s10019_s1 + $0x8] sm:$0xff]  ;;  %v6747_v28 = vpack.c.bf16 %v5454_v23, %v5452_v22  ;;  %v2878_v22 = vrot.slane %v8694_v25, 2  ;;  %v2879_v23 = vrot.slane %v8699_v26, 2 }
 0x660   :  { %6734 = vmatpush3.bf16.msra.mxu0 %v8751_v50 }
 0x661   :  { %6735 = vmatprep.subr.bf16.mxu0 %v7281_v15 }
 0x664   :  { %6737 = vmatpush3.bf16.msra.mxu0 %v8761_v55 }
 0x665   :  { %6738 = vmatprep.subr.bf16.mxu0 %v7281_v15 }
 0x700   :  { %v2219_v1 = vpop.f32.mrb[20].mxu1 }
 0x701   :  { %v6005_v42 = vpop.f32.mrb[21].mxu1 }
 0x702   :  { %v2147_v3 = vpop.f32.mrb[24].mxu0  ;;  %v6749_v42 = vpack.c.bf16 %v2652_v27, %v2650_v24  ;;  %v5476_v24 = vld [vmem:[%s10019_s1 + $0xc0] sm:$0xff]  ;;  %v5478_v27 = vld [vmem:[%s10019_s1 + $0xd0] sm:$0xff] }
 0x703   :  { %v2220_v36 = vadd.f32 %v2219_v1, %v2147_v3  ;;  %v5982_v37 = vpop.f32.mrb[25].mxu0  ;;  %v2670_v1 = vrot.slane %v8699_v26, 1  ;;  %v2649_v3 = vld [vmem:[%s10019_s1] sm:$0xff] }
 0x704   :  { %v2654_v37 = vld [vmem:[%s10019_s1 + $0x28] sm:$0xff] }
 0x705   :  { %v2671_v57 = vsel %vm107_vm0, %v2669_v31, %v2670_v1  ;;  %v6753_v47 = vpack.c.bf16 %v2656_v38, %v2654_v37  ;;  %v5483_v31 = vld [vmem:[%s10019_s1 + $0xf8] sm:$0xff]  ;;  %v5480_v37 = vld [vmem:[%s10019_s1 + $0xe0] sm:$0xff]  ;;  %v5482_v38 = vld [vmem:[%s10019_s1 + $0xf0] sm:$0xff] }
 0x714   :  { %v2388_v56 = vpop.f32.mrb[22].mxu1 }
 0x715   :  { %v6051_v12 = vpop.f32.mrb[23].mxu1 }
 0x716   :  { %v2303_v53 = vpop.f32.mrb[26].mxu0  ;;  %v2673_v12 = vsel %vm107_vm0, %v2670_v1, %v2672_v39  ;;  %v2880_v1 = vsel %vm319_vm3, %v2878_v22, %v2879_v23 }
 0x717   :  { %v2307_v13 = vadd.f32 %v2303_v53, %v2220_v36  ;;  %v6028_v60 = vpop.f32.mrb[27].mxu0  ;;  %v2651_v36 = vld [vmem:[%s10019_s1 + $0x10] sm:$0xff]  ;;  %v2674_v53 = vrot.slane %v8718_v33, 1 }
 0x718   :  { %v6751_v43 = vpack.c.bf16 %v2651_v36, %v2649_v3  ;;  %v6767_v3 = vpack.c.bf16 %v5478_v27, %v5476_v24  ;;  %v3248_v24 = vld [vmem:[%s10021_s3 + $0x10] sm:$0xff]  ;;  %v3249_v27 = vld [vmem:[%s10021_s3 + $0x18] sm:$0xff] }
 0x719   :  { %v2392_v62 = vadd.f32 %v2388_v56, %v2307_v13  ;;  %v5467_v56 = vld [vmem:[%s10019_s1 + $0x98] sm:$0xff]  ;;  %v6755_v13 = vpack.c.bf16 %v2655_v52, %v2653_v49  ;;  %v6771_v49 = vpack.c.bf16 %v5482_v38, %v5480_v37  ;;  %v3254_v38 = vld [vmem:[%s10021_s3 + $0x40] sm:$0xff] }
 0x71a   :  { %v6757_v60 = vpack.c.bf16 %v5467_v56, %v5465_v54  ;;  %v2998_v56 = vrot.slane %v8694_v25, 3 }
 0x72a   :  { %v2473_v41 = vpop.f32.mrb[28].mxu0 }
 0x72b   :  { %v2477_v0 = vadd.f32 %v2473_v41, %v2392_v62  ;;  %v6074_v45 = vpop.f32.mrb[29].mxu0  ;;  %v2675_v62 = vsel %vm107_vm0, %v2672_v39, %v2674_v53  ;;  %v5466_v41 = vld [vmem:[%s10019_s1 + $0x90] sm:$0xff]  ;;  %v5491_v39 = vld [vmem:[%s10019_s1 + $0x118] sm:$0xff] }
 0x72c   :  { %v5471_v45 = vld [vmem:[%s10019_s1 + $0xb8] sm:$0xff] }
 0x72d   :  { %v2478_v16 = vadd.f32 %v2477_v0, %v53_v19  ;;  %v5464_v19 = vld [vmem:[%s10019_s1 + $0x80] sm:$0xff]  ;;  %v5469_v0 = vld [vmem:[%s10019_s1 + $0xa8] sm:$0xff] }
 0x72e   :  { %v6759_v29 = vpack.c.bf16 %v5466_v41, %v5464_v19  ;;  %v6761_v6 = vpack.c.bf16 %v5471_v45, %v5469_v0  ;;  %v5492_v0 = vld [vmem:[%s10019_s1 + $0x120] sm:$0xff]  ;;  %v5494_v45 = vld [vmem:[%s10019_s1 + $0x130] sm:$0xff] }
 0x72f   :  { %v2479_v18 = vmax.f32 %v2478_v16, 0.0  ;;  %v5477_v16 = vld [vmem:[%s10019_s1 + $0xc8] sm:$0xff] }
 0x731   :  { %6106 = vmatmul.mubr.msk.f32.vlgmr.msra.gmra.mrb[24].mxu1 %vm2480_vm15, %v2479_v18  ;;  %v6763_v18 = vpack.c.bf16 %v5470_v14, %v5468_v10  ;;  %v78_v14 = vld [vmem:[%s10031_s13 + $0x40] sm:$0xff] }
 0x732   :  { %6744 = vmatpush1.bf16.msra.mxu1 %v6743_v58  ;;  %2748 = vmatprep.mubr.f32.mxu1 %v7280_v7  ;;  %v5479_v58 = vld [vmem:[%s10019_s1 + $0xd8] sm:$0xff] }
 0x733   :  { %6746 = vmatprep.subr.bf16.mxu1 %v6745_v21  ;;  %v6765_v21 = vpack.c.bf16 %v5479_v58, %v5477_v16 }
 0x736   :  { %6748 = vmatpush1.bf16.msra.mxu1 %v6747_v28  ;;  %v5481_v28 = vld [vmem:[%s10019_s1 + $0xe8] sm:$0xff] }
 0x737   :  { %6750 = vmatprep.subr.bf16.mxu1 %v6749_v42  ;;  %v2881_v42 = vrot.slane %v8709_v30, 2  ;;  %v6769_v36 = vpack.c.bf16 %v5483_v31, %v5481_v28  ;;  %v6785_v28 = vpack.c.bf16 %v3249_v27, %v3248_v24  ;;  %v3250_v31 = vld [vmem:[%s10021_s3 + $0x20] sm:$0xff] }
 0x739   :  { %5456 = vmatmul.mubr.msk.f32.vlgmr.msra.gmra.mrb[26].mxu1 %vm115_vm1, %v2671_v57  ;;  %v5489_v57 = vld [vmem:[%s10019_s1 + $0x108] sm:$0xff] }
 0x73a   :  { %2754 = vmatprep.mubr.f32.mxu1 %v7280_v7  ;;  %6752 = vmatpush1.bf16.msra.mxu1 %v6751_v43  ;;  %v2882_v43 = vsel %vm319_vm3, %v2879_v23, %v2881_v42  ;;  %v6773_v52 = vpack.c.bf16 %v5491_v39, %v5489_v57  ;;  %v3255_v57 = vld [vmem:[%s10021_s3 + $0x48] sm:$0xff] }
 0x73b   :  { %6754 = vmatprep.subr.bf16.mxu1 %v6753_v47  ;;  %v2883_v47 = vrot.slane %v8718_v33, 2  ;;  %v6794_v39 = vpack.c.bf16 %v3255_v57, %v3254_v38 }
 0x73d   :  { %5457 = vmatmul.mubr.msk.f32.gmra.mrb[28].mxu1 %vm115_vm1, %v2673_v12  ;;  %v2884_v54 = vsel %vm319_vm3, %v2881_v42, %v2883_v47  ;;  %v2999_v12 = vrot.slane %v8699_v26, 3 }
 0x73e   :  { %2760 = vmatprep.mubr.f32.mxu1 %v7280_v7  ;;  %6756 = vmatpush1.bf16.msra.mxu1 %v6755_v13  ;;  %v5490_v13 = vld [vmem:[%s10019_s1 + $0x110] sm:$0xff] }
 0x73f   :  { %6758 = vmatprep.subr.bf16.mxu1 %v6757_v60  ;;  %v5493_v60 = vld [vmem:[%s10019_s1 + $0x128] sm:$0xff] }
 0x741   :  { %5458 = vmatmul.mubr.msk.f32.gmra.mrb[30].mxu1 %vm115_vm1, %v2675_v62  ;;  %v5495_v62 = vld [vmem:[%s10019_s1 + $0x138] sm:$0xff] }
 0x742   :  { %2766 = vmatprep.mubr.f32.mxu1 %v7280_v7  ;;  %v6777_v41 = vpack.c.bf16 %v5495_v62, %v5493_v60  ;;  %v3262_v60 = vld [vmem:[%s10021_s3 + $0x80] sm:$0xff]  ;;  %v3263_v62 = vld [vmem:[%s10021_s3 + $0x88] sm:$0xff] }
 0x745   :  { %5459 = vmatmul.mubr.msk.f32.gmra.mrb[32].mxu1 %vm115_vm1, %v2674_v53  ;;  %v5488_v53 = vld [vmem:[%s10019_s1 + $0x100] sm:$0xff] }
 0x746   :  { %2845 = vmatprep.mubr.f32.mxu1 %v7280_v7  ;;  %v6775_v19 = vpack.c.bf16 %v5490_v13, %v5488_v53  ;;  %v3261_v53 = vld [vmem:[%s10021_s3 + $0x78] sm:$0xff] }
 0x749   :  { %5460 = vmatmul.mubr.msk.f32.vlgmr.msra.gmra.mrb[26].mxu1 %vm115_vm1, %v8694_v25  ;;  %v3000_v25 = vsel %vm441_vm4, %v2998_v56, %v2999_v12 }
 0x74a   :  { %2851 = vmatprep.mubr.f32.mxu1 %v7280_v7  ;;  %6760 = vmatpush1.bf16.msra.mxu1 %v6759_v29 }
 0x74b   :  { %6762 = vmatprep.subr.bf16.mxu1 %v6761_v6  ;;  %v3003_v6 = vrot.slane %v8718_v33, 3 }
 0x74d   :  { %5461 = vmatmul.mubr.msk.f32.gmra.mrb[28].mxu1 %vm115_vm1, %v8699_v26  ;;  %v3001_v26 = vrot.slane %v8709_v30, 3 }
 0x74e   :  { %2857 = vmatprep.mubr.f32.mxu1 %v7280_v7  ;;  %6764 = vmatpush1.bf16.msra.mxu1 %v6763_v18 }
 0x74f   :  { %6766 = vmatprep.subr.bf16.mxu1 %v6765_v21  ;;  %v3002_v29 = vsel %vm441_vm4, %v2999_v12, %v3001_v26  ;;  %v3004_v10 = vsel %vm441_vm4, %v3001_v26, %v3003_v6  ;;  %v3260_v12 = vld [vmem:[%s10021_s3 + $0x70] sm:$0xff] }
 0x750   :  { %v6803_v13 = vpack.c.bf16 %v3261_v53, %v3260_v12  ;;  %v3264_v26 = vld [vmem:[%s10021_s3 + $0x90] sm:$0xff]  ;;  %v5512_v53 = vld [vmem:[%s10021_s3 + $0xe8] sm:$0xff] }
 0x751   :  { %5462 = vmatmul.mubr.msk.f32.gmra.mrb[30].mxu1 %vm115_vm1, %v8709_v30  ;;  %v6779_v30 = vpack.c.bf16 %v5494_v45, %v5492_v0  ;;  %v3266_v0 = vld [vmem:[%s10021_s3 + $0xa0] sm:$0xff] }
 0x752   :  { %2863 = vmatprep.mubr.f32.mxu1 %v7280_v7 }
 0x755   :  { %5463 = vmatmul.mubr.msk.f32.gmra.mrb[32].mxu1 %vm115_vm1, %v8718_v33  ;;  %v3246_v33 = vld [vmem:[%s10021_s3] sm:$0xff] }
 0x756   :  { %2957 = vmatprep.mubr.f32.mxu1 %v7280_v7 }
 0x759   :  { %5472 = vmatmul.mubr.msk.f32.vlgmr.msra.gmra.mrb[26].mxu1 %vm115_vm1, %v2880_v1  ;;  %v3251_v1 = vld [vmem:[%s10021_s3 + $0x28] sm:$0xff] }
 0x75a   :  { %2963 = vmatprep.mubr.f32.mxu1 %v7280_v7  ;;  %6768 = vmatpush1.bf16.msra.mxu1 %v6767_v3  ;;  %v6788_v42 = vpack.c.bf16 %v3251_v1, %v3250_v31  ;;  %v3252_v3 = vld [vmem:[%s10021_s3 + $0x30] sm:$0xff] }
 0x75b   :  { %6770 = vmatprep.subr.bf16.mxu1 %v6769_v36  ;;  %v3253_v36 = vld [vmem:[%s10021_s3 + $0x38] sm:$0xff] }
 0x75c   :  { %v6791_v37 = vpack.c.bf16 %v3253_v36, %v3252_v3  ;;  %v5509_v3 = vld [vmem:[%s10021_s3 + $0xd0] sm:$0xff] }
 0x75d   :  { %5473 = vmatmul.mubr.msk.f32.gmra.mrb[28].mxu1 %vm115_vm1, %v2882_v43  ;;  %v3256_v43 = vld [vmem:[%s10021_s3 + $0x50] sm:$0xff] }
 0x75e   :  { %2969 = vmatprep.mubr.f32.mxu1 %v7280_v7  ;;  %6772 = vmatpush1.bf16.msra.mxu1 %v6771_v49 }
 0x75f   :  { %6774 = vmatprep.subr.bf16.mxu1 %v6773_v52  ;;  %v3258_v52 = vld [vmem:[%s10021_s3 + $0x60] sm:$0xff] }
 0x761   :  { %5474 = vmatmul.mubr.msk.f32.gmra.mrb[30].mxu1 %vm115_vm1, %v2884_v54  ;;  %v3259_v54 = vld [vmem:[%s10021_s3 + $0x68] sm:$0xff] }
 0x762   :  { %2975 = vmatprep.mubr.f32.mxu1 %v7280_v7  ;;  %v6800_v56 = vpack.c.bf16 %v3259_v54, %v3258_v52  ;;  %v5511_v52 = vld [vmem:[%s10021_s3 + $0xe0] sm:$0xff] }
 0x765   :  { %5475 = vmatmul.mubr.msk.f32.gmra.mrb[32].mxu1 %vm115_vm1, %v2883_v47  ;;  %v3257_v47 = vld [vmem:[%s10021_s3 + $0x58] sm:$0xff] }
 0x766   :  { %3077 = vmatprep.mubr.f32.mxu1 %v7280_v7  ;;  %v6797_v49 = vpack.c.bf16 %v3257_v47, %v3256_v43 }
 0x769   :  { %5484 = vmatmul.mubr.msk.f32.vlgmr.msra.gmra.mrb[26].mxu1 %vm115_vm1, %v3000_v25  ;;  %v6806_v25 = vpack.c.bf16 %v3263_v62, %v3262_v60  ;;  %v5514_v60 = vld [vmem:[%s10021_s3 + $0xf8] sm:$0xff]  ;;  %v5515_v62 = vld [vmem:[%s10021_s3 + $0x100] sm:$0xff] }
 0x76a   :  { %3083 = vmatprep.mubr.f32.mxu1 %v7280_v7  ;;  %6776 = vmatpush1.bf16.msra.mxu1 %v6775_v19  ;;  %v3265_v19 = vld [vmem:[%s10021_s3 + $0x98] sm:$0xff] }
 0x76b   :  { %6778 = vmatprep.subr.bf16.mxu1 %v6777_v41  ;;  %v6809_v41 = vpack.c.bf16 %v3265_v19, %v3264_v26  ;;  %v5516_v26 = vld [vmem:[%s10021_s3 + $0x108] sm:$0xff]  ;;  %v5517_v19 = vld [vmem:[%s10021_s3 + $0x110] sm:$0xff] }
 0x76d   :  { %5485 = vmatmul.mubr.msk.f32.gmra.mrb[28].mxu1 %vm115_vm1, %v3002_v29 }
 0x76e   :  { %3089 = vmatprep.mubr.f32.mxu1 %v7280_v7  ;;  %6780 = vmatpush1.bf16.msra.mxu1 %v6779_v30  ;;  %v5504_v30 = vld [vmem:[%s10021_s3 + $0xa8] sm:$0xff] }
 0x771   :  { %5486 = vmatmul.mubr.msk.f32.gmra.mrb[30].mxu1 %vm115_vm1, %v3004_v10  ;;  %v5505_v10 = vld [vmem:[%s10021_s3 + $0xb0] sm:$0xff] }
 0x772   :  { %3095 = vmatprep.mubr.f32.mxu1 %v7280_v7 }
 0x775   :  { %5487 = vmatmul.mubr.msk.f32.gmra.mrb[32].mxu1 %vm115_vm1, %v3003_v6 }
 0x776   :  { %3197 = vmatprep.mubr.f32.mxu1 %v7280_v7 }
 0x779   :  { %5496 = vmatmul.mubr.msk.f32.vlgmr.msra.gmra.mrb[26].mxu1 %vm115_vm1, %v8704_v8  ;;  %v79_v8 = vld [vmem:[%s10031_s13 + $0x48] sm:$0xff] }
 0x77a   :  { %3203 = vmatprep.mubr.f32.mxu1 %v7280_v7  ;;  %v8957_v16 = vpack.c.bf16 %v79_v8, %v78_v14 }
 0x77c   :  { %6740 = vmatpush3.bf16.msra.mxu0 %v8957_v16 }
 0x77d   :  { %5497 = vmatmul.mubr.msk.f32.gmra.mrb[28].mxu1 %vm115_vm1, %v8713_v32  ;;  %6128 = vmatprep.subr.mxu0 %v7280_v7  ;;  %v80_v32 = vld [vmem:[%s10031_s13 + $0x50] sm:$0xf] }
 0x77e   :  { %3209 = vmatprep.mubr.f32.mxu1 %v7280_v7 }
 0x780   :  { %6129 = vmatpush3.msk.msra.mxu0 %vm563_vm2, %v80_v32 }
 0x781   :  { %5498 = vmatmul.mubr.msk.f32.gmra.mrb[30].mxu1 %vm115_vm1, %v8724_v34  ;;  %6781 = vmatprep.subr.bf16.mxu0 %v7281_v15  ;;  %v69_v34 = vld [vmem:[%s10030_s12] sm:$0x1] }
 0x782   :  { %3215 = vmatprep.mubr.f32.mxu1 %v7280_v7 }
 0x785   :  { %5499 = vmatmul.mubr.msk.f32.gmra.mrb[32].mxu1 %vm115_vm1, %v3123_v2  ;;  %v3247_v2 = vld [vmem:[%s10021_s3 + $0x8] sm:$0xff] }
 0x786   :  { %v6782_v22 = vpack.c.bf16 %v3247_v2, %v3246_v33 }
 0x804   :  { %v2550_v58 = vpop.f32.mrb[24].mxu1 }
 0x805   :  { %v2551_v18 = vadd.f32 %v2550_v58, %v69_v34  ;;  %v6107_v21 = vpop.f32.mrb[25].mxu1  ;;  %v6812_v34 = vpack.c.bf16 %v5505_v10, %v5504_v30  ;;  %v5520_v30 = vld [vmem:[%s10021_s3 + $0x128] sm:$0xff]  ;;  %v5521_v10 = vld [vmem:[%s10021_s3 + $0x130] sm:$0xff] }
 0x806   :  { %v5507_v21 = vld [vmem:[%s10021_s3 + $0xc0] sm:$0xff] }
 0x807   :  { %v2554_v23 = vmax.f32 %v2551_v18, 0.0  ;;  %v5506_v18 = vld [vmem:[%s10021_s3 + $0xb8] sm:$0xff] }
 0x808   :  { %v6815_v27 = vpack.c.bf16 %v5507_v21, %v5506_v18 }
 0x809   :  { %6131 = vmatmul.mubr.msk.f32.vlgmr.msra.gmra.mrb[30].mxu0 %vm1156_vm9, %v2554_v23 }
 0x80a   :  { %6783 = vmatpush1.bf16.msra.mxu0 %v6782_v22 }
 0x80b   :  { %6784 = vmatprep.subr.bf16.mxu0 %v7281_v15 }
 0x80e   :  { %6786 = vmatpush1.bf16.msra.mxu0 %v6785_v28 }
 0x80f   :  { %6787 = vmatprep.subr.bf16.mxu0 %v7281_v15 }
 0x812   :  { %6789 = vmatpush1.bf16.msra.mxu0 %v6788_v42  ;;  %v5508_v42 = vld [vmem:[%s10021_s3 + $0xc8] sm:$0xff] }
 0x813   :  { %6790 = vmatprep.subr.bf16.mxu0 %v7281_v15  ;;  %v6818_v57 = vpack.c.bf16 %v5509_v3, %v5508_v42 }
 0x816   :  { %6792 = vmatpush1.bf16.msra.mxu0 %v6791_v37 }
 0x817   :  { %6793 = vmatprep.subr.bf16.mxu0 %v7281_v15 }
 0x81a   :  { %6795 = vmatpush1.bf16.msra.mxu0 %v6794_v39 }
 0x81b   :  { %6796 = vmatprep.subr.bf16.mxu0 %v7281_v15 }
 0x81e   :  { %6798 = vmatpush1.bf16.msra.mxu0 %v6797_v49  ;;  %v5510_v49 = vld [vmem:[%s10021_s3 + $0xd8] sm:$0xff] }
 0x81f   :  { %6799 = vmatprep.subr.bf16.mxu0 %v7281_v15  ;;  %v6821_v12 = vpack.c.bf16 %v5511_v52, %v5510_v49 }
 0x822   :  { %6801 = vmatpush1.bf16.msra.mxu0 %v6800_v56 }
 0x823   :  { %6802 = vmatprep.subr.bf16.mxu0 %v7281_v15 }
 0x826   :  { %6804 = vmatpush1.bf16.msra.mxu0 %v6803_v13  ;;  %v5513_v13 = vld [vmem:[%s10021_s3 + $0xf0] sm:$0xff] }
 0x827   :  { %6805 = vmatprep.subr.bf16.mxu0 %v7281_v15 }
 0x82a   :  { %6807 = vmatpush1.bf16.msra.mxu0 %v6806_v25  ;;  %v6827_v25 = vpack.c.bf16 %v5515_v62, %v5514_v60  ;;  %v5533_v60 = vld [vmem:[%s10022_s4 + $0x18] sm:$0x3f] }
 0x82b   :  { %6808 = vmatprep.subr.bf16.mxu0 %v7281_v15 }
 0x82e   :  { %6810 = vmatpush1.bf16.msra.mxu0 %v6809_v41  ;;  %v6830_v41 = vpack.c.bf16 %v5517_v19, %v5516_v26 }
 0x82f   :  { %3319 = vmatprep.subr.mxu0 %v7280_v7 }
 0x832   :  { %3320 = vmatpush1.msra.mxu0 %v3266_v0  ;;  %v5518_v0 = vld [vmem:[%s10021_s3 + $0x118] sm:$0xff] }
 0x833   :  { %6811 = vmatprep.subr.bf16.mxu0 %v7281_v15 }
 0x84c   :  { %v3199_v45 = vpop.f32.mrb[26].mxu1 }
 0x84d   :  { %v9048_v29 = vadd.f32 %v3199_v45, %v7676_v4  ;;  %v3201_v6 = vpop.f32.mrb[27].mxu1  ;;  %v5519_v45 = vld [vmem:[%s10021_s3 + $0x120] sm:$0xff] }
 0x84e   :  { %v3231_v14 = vadd.f32 %v3201_v6, %v7680_v5  ;;  %v6833_v6 = vpack.c.bf16 %v5519_v45, %v5518_v0  ;;  %v5540_v0 = vld [vmem:[%s10023_s5 + $0xc8] sm:$0xff]  ;;  %v5537_v45 = vld [vmem:[%s10023_s5 + $0xb0] sm:$0xff] }
 0x84f   :  { %v3238_v33 = vmax.f32 %v9048_v29, 0.0  ;;  %v81_v29 = vld [vmem:[%s10032_s14] sm:$0x1] }
 0x850   :  { %v3239_v8 = vmax.f32 %v3231_v14, 0.0  ;;  %v3205_v32 = vpop.f32.mrb[28].mxu1  ;;  %v6836_v14 = vpack.c.bf16 %v5521_v10, %v5520_v30  ;;  %v5539_v30 = vld [vmem:[%s10023_s5 + $0xc0] sm:$0xff]  ;;  %v5542_v10 = vld [vmem:[%s10023_s5 + $0xd8] sm:$0xff] }
 0x851   :  { %v9059_v2 = vadd.f32 %v3205_v32, %v7676_v4  ;;  %v3207_v58 = vpop.f32.mrb[29].mxu1  ;;  %v5523_v32 = vld [vmem:[%s10021_s3 + $0x140] sm:$0xff] }
 0x852   :  { %v9068_v22 = vadd.f32 %v3207_v58, %v7680_v5  ;;  %5500 = vmatprep.mubr.msk.f32.mxu0 %vm724_vm5, %v3239_v8  ;;  %v5524_v58 = vld [vmem:[%s10021_s3 + $0x148] sm:$0xff] }
 0x853   :  { %3344 = vmatmul.mubr.f32.vlgmr.msra.gmra.mrb[32].mxu0 %v3238_v33  ;;  %v3240_v28 = vmax.f32 %v9059_v2, 0.0  ;;  %v3474_v2 = vld [vmem:[%s10022_s4] sm:$0xff] }
 0x854   :  { %v3241_v23 = vmax.f32 %v9068_v22, 0.0  ;;  %6813 = vmatpush1.bf16.msra.mxu0 %v6812_v34  ;;  %v3211_v24 = vpop.f32.mrb[30].mxu1  ;;  %6141 = vmatprep.mubr.msk.f32.mxu1 %vm935_vm6, %v3474_v2  ;;  %v5547_v2 = vld [vmem:[%s10023_s5 + $0x100] sm:$0xff] }
 0x855   :  { %v9076_v31 = vadd.f32 %v3211_v24, %v7676_v4  ;;  %v3213_v1 = vpop.f32.mrb[31].mxu1  ;;  %6814 = vmatprep.subr.bf16.mxu0 %v7281_v15 }
 0x856   :  { %v3235_v36 = vadd.f32 %v3213_v1, %v7680_v5  ;;  %5501 = vmatprep.mubr.msk.f32.mxu0 %vm724_vm5, %v3241_v23 }
 0x857   :  { %3349 = vmatmul.mubr.f32.gmra.mrb[34].mxu0 %v3240_v28  ;;  %v3242_v39 = vmax.f32 %v9076_v31, 0.0 }
 0x858   :  { %v3243_v37 = vmax.f32 %v3235_v36, 0.0  ;;  %6816 = vmatpush1.bf16.msra.mxu0 %v6815_v27  ;;  %v3217_v38 = vpop.f32.mrb[32].mxu1 }
 0x859   :  { %v3236_v43 = vadd.f32 %v3217_v38, %v7676_v4  ;;  %v3219_v47 = vpop.f32.mrb[33].mxu1  ;;  %6817 = vmatprep.subr.bf16.mxu0 %v7281_v15 }
 0x85a   :  { %v3237_v54 = vadd.f32 %v3219_v47, %v7680_v5  ;;  %5502 = vmatprep.mubr.msk.f32.mxu0 %vm724_vm5, %v3243_v37  ;;  %v6824_v5 = vpack.c.bf16 %v5513_v13, %v5512_v53  ;;  %v3475_v13 = vld [vmem:[%s10022_s4 + $0x8] sm:$0x3f] }
 0x85b   :  { %3354 = vmatmul.mubr.f32.gmra.mrb[36].mxu0 %v3242_v39  ;;  %v3244_v4 = vmax.f32 %v3236_v43, 0.0 }
 0x85c   :  { %v3245_v56 = vmax.f32 %v3237_v54, 0.0  ;;  %6819 = vmatpush1.bf16.msra.mxu0 %v6818_v57 }
 0x85d   :  { %6820 = vmatprep.subr.bf16.mxu0 %v7281_v15 }
 0x85e   :  { %5503 = vmatprep.mubr.msk.f32.mxu0 %vm724_vm5, %v3245_v56 }
 0x85f   :  { %3359 = vmatmul.mubr.f32.gmra.mrb[38].mxu0 %v3244_v4 }
 0x860   :  { %6822 = vmatpush1.bf16.msra.mxu0 %v6821_v12  ;;  %5525 = vmatprep.mubr.msk.f32.mxu0 %vm724_vm5, %v3239_v8  ;;  %v5522_v8 = vld [vmem:[%s10021_s3 + $0x138] sm:$0xff] }
 0x861   :  { %6823 = vmatprep.subr.bf16.mxu0 %v7281_v15  ;;  %v6839_v34 = vpack.c.bf16 %v5523_v32, %v5522_v8  ;;  %v6863_v8 = vpack.c.bf16 %v5539_v30, %v5537_v45  ;;  %v4233_v30 = vld [vmem:[%s10025_s7 + $0x48] sm:$0xff] }
 0x864   :  { %6825 = vmatpush1.bf16.msra.mxu0 %v6824_v5  ;;  %v5532_v5 = vld [vmem:[%s10022_s4 + $0x10] sm:$0xff] }
 0x865   :  { %6826 = vmatprep.subr.bf16.mxu0 %v7281_v15 }
 0x868   :  { %6828 = vmatpush1.bf16.msra.mxu0 %v6827_v25 }
 0x869   :  { %6829 = vmatprep.subr.bf16.mxu0 %v7281_v15 }
 0x86c   :  { %6831 = vmatpush1.bf16.msra.mxu0 %v6830_v41 }
 0x86d   :  { %6832 = vmatprep.subr.bf16.mxu0 %v7281_v15 }
 0x870   :  { %6834 = vmatpush1.bf16.msra.mxu0 %v6833_v6  ;;  %v6861_v6 = vpack.c.bf16 %v5540_v0, %v5538_v48  ;;  %v4230_v48 = vld [vmem:[%s10025_s7 + $0x30] sm:$0xff]  ;;  %v4231_v0 = vld [vmem:[%s10025_s7 + $0x38] sm:$0xff] }
 0x871   :  { %6835 = vmatprep.subr.bf16.mxu0 %v7281_v15  ;;  %v6971_v45 = vpack.c.bf16 %v4231_v0, %v4230_v48  ;;  %v3653_v0 = vld [vmem:[%s10023_s5 + $0x40] sm:$0xff] }
 0x874   :  { %6837 = vmatpush1.bf16.msra.mxu0 %v6836_v14  ;;  %v5544_v14 = vld [vmem:[%s10023_s5 + $0xe8] sm:$0xff] }
 0x875   :  { %6838 = vmatprep.subr.bf16.mxu0 %v7281_v15  ;;  %v6865_v32 = vpack.c.bf16 %v5544_v14, %v5542_v10  ;;  %v4234_v14 = vld [vmem:[%s10025_s7 + $0x50] sm:$0xff] }
 0x878   :  { %6840 = vmatpush1.bf16.msra.mxu0 %v6839_v34  ;;  %v5541_v34 = vld [vmem:[%s10023_s5 + $0xd0] sm:$0xff] }
 0x879   :  { %3425 = vmatprep.subr.mxu0 %v7280_v7 }
 0x87c   :  { %3426 = vmatpush1.msra.mxu0 %v5524_v58  ;;  %v5543_v58 = vld [vmem:[%s10023_s5 + $0xe0] sm:$0xff] }
 0x87d   :  { %3450 = vmatmul.mubr.f32.vlgmr.msra.gmra.mrb[40].mxu0 %v3238_v33  ;;  %6862 = vmatprep.subr.bf16.mxu0 %v6861_v6  ;;  %v4232_v6 = vld [vmem:[%s10025_s7 + $0x40] sm:$0xff] }
 0x87e   :  { %5526 = vmatprep.mubr.msk.f32.mxu0 %vm724_vm5, %v3241_v23  ;;  %6864 = vmatpush1.bf16.msra.mxu0 %v6863_v8  ;;  %v6974_v10 = vpack.c.bf16 %v4233_v30, %v4232_v6  ;;  %v4235_v8 = vld [vmem:[%s10025_s7 + $0x58] sm:$0xff]  ;;  %v3658_v6 = vld [vmem:[%s10023_s5 + $0x68] sm:$0xff] }
 0x87f   :  { %6866 = vmatprep.subr.bf16.mxu0 %v6865_v32  ;;  %v6977_v32 = vpack.c.bf16 %v4235_v8, %v4234_v14  ;;  %v3660_v30 = vld [vmem:[%s10023_s5 + $0x78] sm:$0xff]  ;;  %v3657_v8 = vld [vmem:[%s10023_s5 + $0x60] sm:$0xff] }
 0x880   :  { %v6893_v14 = vpack.c.bf16 %v3660_v30, %v3658_v6 }
 0x881   :  { %3455 = vmatmul.mubr.f32.gmra.mrb[42].mxu0 %v3240_v28 }
 0x882   :  { %5527 = vmatprep.mubr.msk.f32.mxu0 %vm724_vm5, %v3243_v37 }
 0x885   :  { %3460 = vmatmul.mubr.f32.gmra.mrb[44].mxu0 %v3242_v39 }
 0x886   :  { %5528 = vmatprep.mubr.msk.f32.mxu0 %vm724_vm5, %v3245_v56 }
 0x889   :  { %3465 = vmatmul.mubr.f32.gmra.mrb[46].mxu0 %v3244_v4 }
 0x88a   :  { %3768 = vmatprep.mubr.f32.mxu0 %v7280_v7 }
 0x8dc   :  { %v2627_v33 = vpop.f32.mrb[30].mxu0 }
 0x8dd   :  { %v2628_v18 = vadd.f32 %v2627_v33, %v81_v29  ;;  %v6132_v21 = vpop.f32.mrb[31].mxu0  ;;  %v6867_v29 = vpack.c.bf16 %v5543_v58, %v5541_v34  ;;  %v5546_v33 = vld [vmem:[%s10023_s5 + $0xf8] sm:$0xff]  ;;  %v4236_v34 = vld [vmem:[%s10025_s7 + $0x60] sm:$0xff]  ;;  %v4237_v58 = vld [vmem:[%s10025_s7 + $0x68] sm:$0xff] }
 0x8df   :  { %v2632_v22 = vsel %vm2631_vm7, %v2628_v18, -inf  ;;  %6868 = vmatpush1.bf16.msra.mxu0 %v6867_v29 }
 0x8e0   :  { %2633 = vmax.xlane.f32.xlu0 %v2632_v22  ;;  %v5545_v22 = vld [vmem:[%s10023_s5 + $0xf0] sm:$0xff] }
 0x926   :  { %v3345_v23 = vpop.f32.mrb[32].mxu0 }
 0x927   :  { %v3347_v24 = vpop.f32.mrb[33].mxu0 }
 0x928   :  { %v5550_v24 = vld [vmem:[%s10023_s5 + $0x118] sm:$0xff] }
 0x92a   :  { %v3350_v27 = vpop.f32.mrb[34].mxu0 }
 0x92b   :  { %v3352_v28 = vpop.f32.mrb[35].mxu0 }
 0x92c   :  { %v5549_v28 = vld [vmem:[%s10023_s5 + $0x110] sm:$0xff] }
 0x92e   :  { %v3355_v31 = vpop.f32.mrb[36].mxu0 }
 0x92f   :  { %v3357_v1 = vpop.f32.mrb[37].mxu0 }
 0x930   :  { %v5551_v1 = vld [vmem:[%s10023_s5 + $0x120] sm:$0xff] }
 0x932   :  { %v3360_v42 = vpop.f32.mrb[38].mxu0 }
 0x933   :  { %v3362_v3 = vpop.f32.mrb[39].mxu0 }
 0x934   :  { %v5554_v3 = vld [vmem:[%s10023_s5 + $0x138] sm:$0xff] }
 0x950   :  { %v3451_v36 = vpop.f32.mrb[40].mxu0 }
 0x951   :  { %v3470_v37 = vmax.f32 %v3345_v23, %v3451_v36  ;;  %v3453_v38 = vpop.f32.mrb[41].mxu0  ;;  %v6871_v23 = vpack.c.bf16 %v5547_v2, %v5545_v22  ;;  %v5556_v36 = vld [vmem:[%s10023_s5 + $0x148] sm:$0xff]  ;;  %v4239_v22 = vld [vmem:[%s10025_s7 + $0x78] sm:$0xff]  ;;  %v3645_v2 = vld [vmem:[%s10023_s5] sm:$0xff] }
 0x952   :  { %v5553_v38 = vld [vmem:[%s10023_s5 + $0x130] sm:$0xff] }
 0x954   :  { %v3456_v57 = vpop.f32.mrb[42].mxu0 }
 0x955   :  { %v3471_v39 = vmax.f32 %v3350_v27, %v3456_v57  ;;  %v3458_v43 = vpop.f32.mrb[43].mxu0  ;;  %v5552_v27 = vld [vmem:[%s10023_s5 + $0x128] sm:$0xff]  ;;  %v5555_v57 = vld [vmem:[%s10023_s5 + $0x140] sm:$0xff] }
 0x956   :  { %v5558_v43 = vld [vmem:[%s10023_s5 + $0x158] sm:$0xf] }
 0x957   :  { %v6841_v47 = vpack.c.bf16 %v3471_v39, %v3470_v37  ;;  %v6877_v37 = vpack.c.bf16 %v5556_v36, %v5554_v3  ;;  %v6879_v39 = vpack.c.bf16 %v5555_v57, %v5553_v38  ;;  %v3652_v38 = vld [vmem:[%s10023_s5 + $0x38] sm:$0xff] }
 0x958   :  { %v3461_v49 = vpop.f32.mrb[44].mxu0 }
 0x959   :  { %v3472_v52 = vmax.f32 %v3355_v31, %v3461_v49  ;;  %v3463_v54 = vpop.f32.mrb[45].mxu0  ;;  %6842 = vmatprep.subr.bf16.mxu1 %v6841_v47  ;;  %v6873_v31 = vpack.c.bf16 %v5552_v27, %v5550_v24  ;;  %v3646_v49 = vld [vmem:[%s10023_s5 + $0x8] sm:$0xff]  ;;  %v3647_v24 = vld [vmem:[%s10023_s5 + $0x10] sm:$0xff]  ;;  %v4240_v27 = vld [vmem:[%s10025_s7 + $0x80] sm:$0xff] }
 0x95a   :  { %6844 = vmatpush3.bf16.msra.mxu1 %v6841_v47  ;;  %v6883_v36 = vpack.c.bf16 %v3647_v24, %v3645_v2  ;;  %v3666_v2 = vld [vmem:[%s10023_s5 + $0xa8] sm:$0xf]  ;;  %v5570_v24 = vld [vmem:[%s10023_s5 + $0x178] sm:$0xff] }
 0x95c   :  { %v3466_v56 = vpop.f32.mrb[46].mxu0 }
 0x95d   :  { %v3473_v12 = vmax.f32 %v3360_v42, %v3466_v56  ;;  %v3468_v4 = vpop.f32.mrb[47].mxu0  ;;  %v6875_v42 = vpack.c.bf16 %v5551_v1, %v5549_v28  ;;  %v4241_v28 = vld [vmem:[%s10025_s7 + $0x88] sm:$0xff] }
 0x95e   :  { %v6986_v57 = vpack.c.bf16 %v4241_v28, %v4240_v27  ;;  %v5567_v27 = vld [vmem:[%s10023_s5 + $0x160] sm:$0xff]  ;;  %v5569_v28 = vld [vmem:[%s10023_s5 + $0x170] sm:$0xff] }
 0x95f   :  { %v6845_v53 = vpack.c.bf16 %v3473_v12, %v3472_v52  ;;  %v3648_v52 = vld [vmem:[%s10023_s5 + $0x18] sm:$0xff] }
 0x960   :  { %v6881_v54 = vpack.c.bf16 %v3648_v52, %v3646_v49 }
 0x961   :  { %6847 = vmatprep.subr.msk.bf16.mxu1 %vm7826_vm8, %v6845_v53 }
 0x962   :  { %6850 = vmatpush3.bf16.msk.msra.mxu1 %vm7826_vm8, %v6845_v53 }
 0x963   :  { %6852 = vmatprep.subr.bf16.mxu1 %v6841_v47 }
 0x965   :  { %6142 = vmatmul.mubr.msk.f32.vlgmr.msra.gmra.mrb[34].mxu1 %vm935_vm6, %v3475_v13  ;;  %v4225_v13 = vld [vmem:[%s10025_s7 + $0x8] sm:$0xff] }
 0x966   :  { %6854 = vmatpush3.bf16.msra.mxu1 %v6841_v47  ;;  %6152 = vmatprep.mubr.msk.f32.mxu1 %vm935_vm6, %v5532_v5  ;;  %v5557_v47 = vld [vmem:[%s10023_s5 + $0x150] sm:$0xf] }
 0x967   :  { %6857 = vmatprep.subr.msk.bf16.mxu1 %vm7826_vm8, %v6845_v53  ;;  %v4226_v5 = vld [vmem:[%s10025_s7 + $0x10] sm:$0xff] }
 0x96a   :  { %6860 = vmatpush3.bf16.msk.msra.mxu1 %vm7826_vm8, %v6845_v53  ;;  %v4224_v53 = vld [vmem:[%s10025_s7] sm:$0xff] }
 0x96b   :  { %6961 = vmatprep.subr.bf16.mxu1 %v7281_v15 }
 0x96d   :  { %6153 = vmatmul.mubr.msk.f32.vlgmr.msra.gmra.mrb[36].mxu1 %vm935_vm6, %v5533_v60  ;;  %v2634_v62 = vpop.xlane.xlu0 %2633  ;;  %v6962_v60 = vpack.c.bf16 %v4225_v13, %v4224_v53  ;;  %v3649_v53 = vld [vmem:[%s10023_s5 + $0x20] sm:$0xff]  ;;  %v3651_v13 = vld [vmem:[%s10023_s5 + $0x30] sm:$0xff] }
 0x96e   :  { %v2635_v25 = vsub.f32 %v2628_v18, %v2634_v62  ;;  %v5548_v18 = vld [vmem:[%s10023_s5 + $0x108] sm:$0xff]  ;;  %v4227_v62 = vld [vmem:[%s10025_s7 + $0x18] sm:$0xff] }
 0x96f   :  { %v6869_v21 = vpack.c.bf16 %v5548_v18, %v5546_v33  ;;  %6963 = vmatpush1.bf16.msra.mxu1 %v6962_v60  ;;  %v6980_v18 = vpack.c.bf16 %v4237_v58, %v4236_v34  ;;  %v3654_v60 = vld [vmem:[%s10023_s5 + $0x48] sm:$0xff]  ;;  %v3664_v58 = vld [vmem:[%s10023_s5 + $0x98] sm:$0xff] }
 0x970   :  { %v2636_v26 = vmul.f32 1.442695, %v2635_v25  ;;  %v6965_v25 = vpack.c.bf16 %v4227_v62, %v4226_v5  ;;  %6964 = vmatprep.subr.bf16.mxu1 %v7281_v15  ;;  %v3656_v62 = vld [vmem:[%s10023_s5 + $0x58] sm:$0xff]  ;;  %v3662_v34 = vld [vmem:[%s10023_s5 + $0x88] sm:$0xff] }
 0x971   :  { %6870 = vmatprep.subr.bf16.mxu0 %v6869_v21  ;;  %v4238_v21 = vld [vmem:[%s10025_s7 + $0x70] sm:$0xff]  ;;  %v6889_v48 = vpack.c.bf16 %v3656_v62, %v3654_v60 }
 0x972   :  { %7243 = vpow2.f32 %v2636_v26  ;;  %6872 = vmatpush1.bf16.msra.mxu0 %v6871_v23  ;;  %v4228_v26 = vld [vmem:[%s10025_s7 + $0x20] sm:$0xff]  ;;  %v6983_v23 = vpack.c.bf16 %v4239_v22, %v4238_v21  ;;  %v3663_v21 = vld [vmem:[%s10023_s5 + $0x90] sm:$0xff] }
 0x973   :  { %6874 = vmatprep.subr.bf16.mxu0 %v6873_v31  ;;  %6966 = vmatpush1.bf16.msra.mxu1 %v6965_v25 }
 0x974   :  { %6967 = vmatprep.subr.bf16.mxu1 %v7281_v15 }
 0x976   :  { %6876 = vmatpush1.bf16.msra.mxu0 %v6875_v42 }
 0x977   :  { %6878 = vmatprep.subr.bf16.mxu0 %v6877_v37  ;;  %v3650_v37 = vld [vmem:[%s10023_s5 + $0x28] sm:$0xff] }
 0x97a   :  { %6880 = vmatpush1.bf16.msra.mxu0 %v6879_v39 }
 0x97b   :  { %5559 = vmatprep.subr.msk.mxu0 %vm563_vm2, %v5558_v43 }
 0x97c   :  { %v7244_v19 = vpop.eup %7243 }
 0x97d   :  { %v2638_v41 = vsel %vm2631_vm7, %v7244_v19, 0.0 }
 0x97e   :  { %2639 = vadd.xlane.f32.xlu1 %v2638_v41  ;;  %5560 = vmatpush1.msk.msra.mxu0 %vm563_vm2, %v5557_v47 }
 0x97f   :  { %6882 = vmatprep.subr.bf16.mxu0 %v6881_v54 }
 0xa0b   :  { %v2640_v56 = vpop.xlane.xlu1 %2639 }
 0xa0c   :  { %7245 = vrcp.f32 %v2640_v56 }
 0xa16   :  { %v7246_v12 = vpop.eup %7245 }
 0xa17   :  { %v2642_v4 = vmul.f32 %v7246_v12, %v7244_v19  ;;  %v4229_v19 = vld [vmem:[%s10025_s7 + $0x28] sm:$0xff] }
 0xa18   :  { %v6968_v41 = vpack.c.bf16 %v4229_v19, %v4228_v26 }
 0xa19   :  { %2643 = vst.msk [vmem:[#allocation2] sm:$0x1] %vm2631_vm7, %v2642_v4  ;;  %v6885_v4 = vpack.c.bf16 %v3652_v38, %v3650_v37  ;;  %v6903_v38 = vpack.c.bf16 %v5569_v28, %v5567_v27  ;;  %v5597_v27 = vld [vmem:[%s10023_s5 + $0x230] sm:$0xff]  ;;  %v5599_v28 = vld [vmem:[%s10023_s5 + $0x240] sm:$0xff] }
 0xa1a   :  { %6969 = vmatpush1.bf16.msra.mxu1 %v6968_v41  ;;  %v6887_v41 = vpack.c.bf16 %v3651_v13, %v3649_v53  ;;  %v5575_v53 = vld [vmem:[%s10023_s5 + $0x1a0] sm:$0xff]  ;;  %v5577_v13 = vld [vmem:[%s10023_s5 + $0x1b0] sm:$0xff] }
 0xa1b   :  { %6970 = vmatprep.subr.bf16.mxu1 %v7281_v15  ;;  %v6911_v60 = vpack.c.bf16 %v5577_v13, %v5575_v53 }
 0xa1e   :  { %6972 = vmatpush1.bf16.msra.mxu1 %v6971_v45  ;;  %v3655_v45 = vld [vmem:[%s10023_s5 + $0x50] sm:$0xff] }
 0xa1f   :  { %6973 = vmatprep.subr.bf16.mxu1 %v7281_v15 }
 0xa22   :  { %6975 = vmatpush1.bf16.msra.mxu1 %v6974_v10  ;;  %v6891_v10 = vpack.c.bf16 %v3655_v45, %v3653_v0  ;;  %v5584_v0 = vld [vmem:[%s10023_s5 + $0x1e8] sm:$0xff]  ;;  %v5586_v45 = vld [vmem:[%s10023_s5 + $0x1f8] sm:$0xff] }
 0xa23   :  { %6976 = vmatprep.subr.bf16.mxu1 %v7281_v15  ;;  %v6917_v30 = vpack.c.bf16 %v5586_v45, %v5584_v0  ;;  %v5619_v0 = vld [vmem:[%s10023_s5 + $0x2c0] sm:$0xff]  ;;  %v5621_v45 = vld [vmem:[%s10023_s5 + $0x2d0] sm:$0xff] }
 0xa26   :  { %6978 = vmatpush1.bf16.msra.mxu1 %v6977_v32  ;;  %v3659_v32 = vld [vmem:[%s10023_s5 + $0x70] sm:$0xff] }
 0xa27   :  { %6979 = vmatprep.subr.bf16.mxu1 %v7281_v15 }
 0xa2a   :  { %6981 = vmatpush1.bf16.msra.mxu1 %v6980_v18  ;;  %v3661_v18 = vld [vmem:[%s10023_s5 + $0x80] sm:$0xff] }
 0xa2b   :  { %6982 = vmatprep.subr.bf16.mxu1 %v7281_v15  ;;  %v6899_v22 = vpack.c.bf16 %v3663_v21, %v3661_v18  ;;  %v5598_v18 = vld [vmem:[%s10023_s5 + $0x238] sm:$0xff]  ;;  %v5600_v21 = vld [vmem:[%s10023_s5 + $0x248] sm:$0xff] }
 0xa2e   :  { %6984 = vmatpush1.bf16.msra.mxu1 %v6983_v23  ;;  %v5568_v23 = vld [vmem:[%s10023_s5 + $0x168] sm:$0xff] }
 0xa2f   :  { %6985 = vmatprep.subr.bf16.mxu1 %v7281_v15  ;;  %v6901_v37 = vpack.c.bf16 %v5570_v24, %v5568_v23  ;;  %v6925_v24 = vpack.c.bf16 %v5600_v21, %v5598_v18 }
 0xa32   :  { %6987 = vmatpush1.bf16.msra.mxu1 %v6986_v57 }
 0xa33   :  { %6988 = vmatprep.subr.bf16.mxu1 %v7281_v15 }
 0xa38   :  { %v6143_v29 = vpop.f32.mrb[34].mxu1 }
 0xa39   :  { %v3551_v33 = vpop.f32.mrb[35].mxu1 }
 0xa40   :  { %v6154_v31 = vpop.f32.mrb[36].mxu1 }
 0xa41   :  { %v9333_v1 = vmax.f32 %v6143_v29, %v6154_v31  ;;  %v3634_v42 = vpop.f32.mrb[37].mxu1  ;;  %v6895_v29 = vpack.c.bf16 %v3659_v32, %v3657_v8  ;;  %v5572_v31 = vld [vmem:[%s10023_s5 + $0x188] sm:$0xff] }
 0xa42   :  { %v9335_v3 = vmax.f32 %v3551_v33, %v3634_v42  ;;  %v6897_v33 = vpack.c.bf16 %v3664_v58, %v3662_v34  ;;  %v5574_v42 = vld [vmem:[%s10023_s5 + $0x198] sm:$0xff]  ;;  %v5588_v32 = vld [vmem:[%s10023_s5 + $0x208] sm:$0xf] }
 0xa43   :  { %v3692_v39 = vrot.slane %v9333_v1, 1  ;;  %v3891_v43 = vrot.slane %v9333_v1, 2  ;;  %v4007_v47 = vrot.slane %v9333_v1, 3  ;;  %v4123_v49 = vrot.slane %v9333_v1, 4  ;;  %v5594_v34 = vld [vmem:[%s10023_s5 + $0x218] sm:$0xff]  ;;  %v5596_v58 = vld [vmem:[%s10023_s5 + $0x228] sm:$0xff] }
 0xa44   :  { %v3691_v52 = vrot.slane %v9335_v3, 1  ;;  %v3890_v54 = vrot.slane %v9335_v3, 2  ;;  %v4006_v56 = vrot.slane %v9335_v3, 3  ;;  %v4122_v12 = vrot.slane %v9335_v3, 4 }
 0xa45   :  { %v6905_v57 = vpack.c.bf16 %v5574_v42, %v5572_v31  ;;  %v5602_v31 = vld [vmem:[%s10023_s5 + $0x258] sm:$0xff]  ;;  %v5604_v42 = vld [vmem:[%s10023_s5 + $0x268] sm:$0xff] }
 0xa46   :  { %v3693_v5 = vsel %vm107_vm0, %v3691_v52, %v3692_v39  ;;  %v9368_v25 = vsel %vm319_vm3, %v3890_v54, %v3891_v43  ;;  %v9373_v26 = vsel %vm441_vm4, %v4006_v56, %v4007_v47  ;;  %v9378_v19 = vsel %vm563_vm2, %v4122_v12, %v4123_v49  ;;  %v5573_v52 = vld [vmem:[%s10023_s5 + $0x190] sm:$0xff]  ;;  %v5576_v54 = vld [vmem:[%s10023_s5 + $0x1a8] sm:$0xff]  ;;  %v5578_v56 = vld [vmem:[%s10023_s5 + $0x1b8] sm:$0xff] }
 0xa47   :  { %5561 = vmatmul.mubr.msk.f32.vlgmr.msra.gmra.mrb[48].mxu0 %vm1156_vm9, %v3693_v5  ;;  %v5580_v5 = vld [vmem:[%s10023_s5 + $0x1c8] sm:$0xff] }
 0xa48   :  { %6884 = vmatpush1.bf16.msra.mxu0 %v6883_v36  ;;  %3774 = vmatprep.mubr.f32.mxu0 %v7280_v7  ;;  %v3665_v36 = vld [vmem:[%s10023_s5 + $0xa0] sm:$0xf] }
 0xa49   :  { %6886 = vmatprep.subr.bf16.mxu0 %v6885_v4  ;;  %v6909_v4 = vpack.c.bf16 %v5578_v56, %v5576_v54  ;;  %v5605_v56 = vld [vmem:[%s10023_s5 + $0x270] sm:$0xff] }
 0xa4b   :  { %5562 = vmatmul.mubr.msk.f32.gmra.mrb[50].mxu0 %vm1156_vm9, %v3692_v39  ;;  %v5571_v39 = vld [vmem:[%s10023_s5 + $0x180] sm:$0xff] }
 0xa4c   :  { %6888 = vmatpush1.bf16.msra.mxu0 %v6887_v41  ;;  %3855 = vmatprep.mubr.f32.mxu0 %v7280_v7  ;;  %v6907_v12 = vpack.c.bf16 %v5573_v52, %v5571_v39  ;;  %v5579_v41 = vld [vmem:[%s10023_s5 + $0x1c0] sm:$0xff]  ;;  %v5606_v39 = vld [vmem:[%s10023_s5 + $0x278] sm:$0xff] }
 0xa4d   :  { %6890 = vmatprep.subr.bf16.mxu0 %v6889_v48  ;;  %v5581_v48 = vld [vmem:[%s10023_s5 + $0x1d0] sm:$0xff] }
 0xa4e   :  { %v6915_v6 = vpack.c.bf16 %v5581_v48, %v5579_v41  ;;  %v5620_v41 = vld [vmem:[%s10023_s5 + $0x2c8] sm:$0xff]  ;;  %v5622_v48 = vld [vmem:[%s10023_s5 + $0x2d8] sm:$0xff] }
 0xa50   :  { %6892 = vmatpush1.bf16.msra.mxu0 %v6891_v10  ;;  %v5583_v10 = vld [vmem:[%s10023_s5 + $0x1e0] sm:$0xff] }
 0xa51   :  { %6894 = vmatprep.subr.bf16.mxu0 %v6893_v14  ;;  %v5585_v14 = vld [vmem:[%s10023_s5 + $0x1f0] sm:$0xff] }
 0xa52   :  { %v6919_v8 = vpack.c.bf16 %v5585_v14, %v5583_v10  ;;  %v5613_v10 = vld [vmem:[%s10023_s5 + $0x2b0] sm:$0xf]  ;;  %v6941_v14 = vpack.c.bf16 %v5622_v48, %v5620_v41 }
 0xa53   :  { %v5649_v48 = vld [vmem:[%s10025_s7 + $0xb0] sm:$0xff] }
 0xa54   :  { %6896 = vmatpush1.bf16.msra.mxu0 %v6895_v29  ;;  %v5593_v29 = vld [vmem:[%s10023_s5 + $0x210] sm:$0xff] }
 0xa55   :  { %6898 = vmatprep.subr.bf16.mxu0 %v6897_v33  ;;  %v5595_v33 = vld [vmem:[%s10023_s5 + $0x220] sm:$0xff] }
 0xa56   :  { %v6923_v23 = vpack.c.bf16 %v5595_v33, %v5593_v29  ;;  %v5628_v29 = vld [vmem:[%s10023_s5 + $0x308] sm:$0xff]  ;;  %v5630_v33 = vld [vmem:[%s10023_s5 + $0x318] sm:$0xff] }
 0xa57   :  { %v6949_v21 = vpack.c.bf16 %v5630_v33, %v5628_v29  ;;  %v5656_v29 = vld [vmem:[%s10025_s7 + $0xe8] sm:$0xff] }
 0xa58   :  { %6900 = vmatpush1.bf16.msra.mxu0 %v6899_v22  ;;  %v5587_v22 = vld [vmem:[%s10023_s5 + $0x200] sm:$0xf] }
 0xa59   :  { %5563 = vmatprep.subr.msk.mxu0 %vm563_vm2, %v3666_v2  ;;  %v6921_v2 = vpack.c.bf16 %v5596_v58, %v5594_v34  ;;  %v5623_v34 = vld [vmem:[%s10023_s5 + $0x2e0] sm:$0xff]  ;;  %v5625_v58 = vld [vmem:[%s10023_s5 + $0x2f0] sm:$0xff] }
 0xa5a   :  { %v6947_v18 = vpack.c.bf16 %v5625_v58, %v5623_v34  ;;  %v5655_v58 = vld [vmem:[%s10025_s7 + $0xe0] sm:$0xff] }
 0xa5b   :  { %v7004_v33 = vpack.c.bf16 %v5656_v29, %v5655_v58  ;;  %v5679_v58 = vld [vmem:[%s10027_s9 + $0x78] sm:$0xff] }
 0xa5c   :  { %5564 = vmatpush1.msk.msra.mxu0 %vm563_vm2, %v3665_v36  ;;  %v6927_v36 = vpack.c.bf16 %v5599_v28, %v5597_v27  ;;  %v5631_v28 = vld [vmem:[%s10023_s5 + $0x320] sm:$0xff] }
 0xa5d   :  { %5565 = vmatmul.mubr.msk.f32.vlgmr.msra.gmra.mrb[48].mxu0 %vm1156_vm9, %v9335_v3  ;;  %6902 = vmatprep.subr.bf16.mxu0 %v6901_v37  ;;  %v5582_v3 = vld [vmem:[%s10023_s5 + $0x1d8] sm:$0xff]  ;;  %v6929_v37 = vpack.c.bf16 %v5604_v42, %v5602_v31  ;;  %v5633_v31 = vld [vmem:[%s10023_s5 + $0x330] sm:$0xff]  ;;  %v5636_v42 = vld [vmem:[%s10023_s5 + $0x348] sm:$0xff] }
 0xa5e   :  { %6904 = vmatpush1.bf16.msra.mxu0 %v6903_v38  ;;  %3861 = vmatprep.mubr.f32.mxu0 %v7280_v7  ;;  %v6913_v62 = vpack.c.bf16 %v5582_v3, %v5580_v5  ;;  %v5601_v38 = vld [vmem:[%s10023_s5 + $0x250] sm:$0xff]  ;;  %v5611_v3 = vld [vmem:[%s10023_s5 + $0x2a0] sm:$0xff] }
 0xa5f   :  { %6906 = vmatprep.subr.bf16.mxu0 %v6905_v57  ;;  %v5603_v57 = vld [vmem:[%s10023_s5 + $0x260] sm:$0xff]  ;;  %v5609_v5 = vld [vmem:[%s10023_s5 + $0x290] sm:$0xff] }
 0xa60   :  { %v6931_v52 = vpack.c.bf16 %v5603_v57, %v5601_v38  ;;  %v5635_v38 = vld [vmem:[%s10023_s5 + $0x340] sm:$0xff]  ;;  %v5637_v57 = vld [vmem:[%s10023_s5 + $0x350] sm:$0xff] }
 0xa61   :  { %5566 = vmatmul.mubr.msk.f32.gmra.mrb[50].mxu0 %vm1156_vm9, %v9333_v1 }
 0xa62   :  { %6908 = vmatpush1.bf16.msra.mxu0 %v6907_v12  ;;  %3967 = vmatprep.mubr.f32.mxu0 %v7280_v7  ;;  %v5607_v12 = vld [vmem:[%s10023_s5 + $0x280] sm:$0xff] }
 0xa63   :  { %6910 = vmatprep.subr.bf16.mxu0 %v6909_v4  ;;  %v5610_v4 = vld [vmem:[%s10023_s5 + $0x298] sm:$0xff]  ;;  %v6935_v53 = vpack.c.bf16 %v5607_v12, %v5605_v56 }
 0xa64   :  { %v4243_v56 = vld [vmem:[%s10025_s7 + $0x98] sm:$0xff] }
 0xa66   :  { %6912 = vmatpush1.bf16.msra.mxu0 %v6911_v60  ;;  %v6939_v60 = vpack.c.bf16 %v5611_v3, %v5609_v5 }
 0xa67   :  { %6914 = vmatprep.subr.bf16.mxu0 %v6913_v62  ;;  %v5614_v62 = vld [vmem:[%s10023_s5 + $0x2b8] sm:$0xf] }
 0xa6a   :  { %6916 = vmatpush1.bf16.msra.mxu0 %v6915_v6  ;;  %v5624_v6 = vld [vmem:[%s10023_s5 + $0x2e8] sm:$0xff] }
 0xa6b   :  { %6918 = vmatprep.subr.bf16.mxu0 %v6917_v30  ;;  %v5626_v30 = vld [vmem:[%s10023_s5 + $0x2f8] sm:$0xff] }
 0xa6e   :  { %6920 = vmatpush1.bf16.msra.mxu0 %v6919_v8  ;;  %v6943_v8 = vpack.c.bf16 %v5621_v45, %v5619_v0  ;;  %v5650_v0 = vld [vmem:[%s10025_s7 + $0xb8] sm:$0xff] }
 0xa6f   :  { %5589 = vmatprep.subr.msk.mxu0 %vm563_vm2, %v5588_v32  ;;  %v6945_v32 = vpack.c.bf16 %v5626_v30, %v5624_v6  ;;  %v6995_v30 = vpack.c.bf16 %v5650_v0, %v5649_v48 }
 0xa72   :  { %5590 = vmatpush1.msk.msra.mxu0 %vm563_vm2, %v5587_v22  ;;  %v5627_v22 = vld [vmem:[%s10023_s5 + $0x300] sm:$0xff] }
 0xa73   :  { %5591 = vmatmul.mubr.msk.f32.vlgmr.msra.gmra.mrb[48].mxu0 %vm1156_vm9, %v9368_v25  ;;  %6922 = vmatprep.subr.bf16.mxu0 %v6921_v2  ;;  %v5608_v25 = vld [vmem:[%s10023_s5 + $0x288] sm:$0xff]  ;;  %v5629_v2 = vld [vmem:[%s10023_s5 + $0x310] sm:$0xff] }
 0xa74   :  { %6924 = vmatpush1.bf16.msra.mxu0 %v6923_v23  ;;  %3973 = vmatprep.mubr.f32.mxu0 %v7280_v7  ;;  %v6933_v54 = vpack.c.bf16 %v5608_v25, %v5606_v39  ;;  %v5632_v23 = vld [vmem:[%s10023_s5 + $0x328] sm:$0xff]  ;;  %v6959_v39 = vpack.c.bf16 %v5637_v57, %v5635_v38  ;;  %v4574_v57 = vld [vmem:[%s10027_s9] sm:$0xff] }
 0xa75   :  { %6926 = vmatprep.subr.bf16.mxu0 %v6925_v24  ;;  %v6951_v24 = vpack.c.bf16 %v5629_v2, %v5627_v22  ;;  %v5640_v25 = vld [vmem:[%s10023_s5 + $0x368] sm:$0xf]  ;;  %v5659_v2 = vld [vmem:[%s10025_s7 + $0x100] sm:$0xff] }
 0xa77   :  { %5592 = vmatmul.mubr.msk.f32.gmra.mrb[50].mxu0 %vm1156_vm9, %v3891_v43  ;;  %v5612_v43 = vld [vmem:[%s10023_s5 + $0x2a8] sm:$0xff] }
 0xa78   :  { %6928 = vmatpush1.bf16.msra.mxu0 %v6927_v36  ;;  %4083 = vmatprep.mubr.f32.mxu0 %v7280_v7  ;;  %v6937_v13 = vpack.c.bf16 %v5612_v43, %v5610_v4  ;;  %v6955_v36 = vpack.c.bf16 %v5633_v31, %v5631_v28  ;;  %v5647_v4 = vld [vmem:[%s10025_s7 + $0xa0] sm:$0xff]  ;;  %v5648_v43 = vld [vmem:[%s10025_s7 + $0xa8] sm:$0xff] }
 0xa79   :  { %6930 = vmatprep.subr.bf16.mxu0 %v6929_v37  ;;  %v6992_v3 = vpack.c.bf16 %v5648_v43, %v5647_v4  ;;  %v5663_v31 = vld [vmem:[%s10025_s7 + $0x120] sm:$0xff]  ;;  %v4581_v4 = vld [vmem:[%s10027_s9 + $0x38] sm:$0xff] }
 0xa7c   :  { %6932 = vmatpush1.bf16.msra.mxu0 %v6931_v52  ;;  %v5639_v52 = vld [vmem:[%s10023_s5 + $0x360] sm:$0xf] }
 0xa7d   :  { %6934 = vmatprep.subr.bf16.mxu0 %v6933_v54  ;;  %v4242_v54 = vld [vmem:[%s10025_s7 + $0x90] sm:$0xff] }
 0xa80   :  { %6936 = vmatpush1.bf16.msra.mxu0 %v6935_v53 }
 0xa81   :  { %6938 = vmatprep.subr.bf16.mxu0 %v6937_v13 }
 0xa84   :  { %6940 = vmatpush1.bf16.msra.mxu0 %v6939_v60 }
 0xa85   :  { %5615 = vmatprep.subr.msk.mxu0 %vm563_vm2, %v5614_v62 }
 0xa88   :  { %5616 = vmatpush1.msk.msra.mxu0 %vm563_vm2, %v5613_v10 }
 0xa89   :  { %5617 = vmatmul.mubr.msk.f32.vlgmr.msra.gmra.mrb[48].mxu0 %vm1156_vm9, %v9373_v26  ;;  %6942 = vmatprep.subr.bf16.mxu0 %v6941_v14  ;;  %v5634_v26 = vld [vmem:[%s10023_s5 + $0x338] sm:$0xff]  ;;  %v5652_v14 = vld [vmem:[%s10025_s7 + $0xc8] sm:$0xff] }
 0xa8a   :  { %6944 = vmatpush1.bf16.msra.mxu0 %v6943_v8  ;;  %4089 = vmatprep.mubr.f32.mxu0 %v7280_v7  ;;  %v6953_v27 = vpack.c.bf16 %v5634_v26, %v5632_v23  ;;  %v5653_v8 = vld [vmem:[%s10025_s7 + $0xd0] sm:$0xff]  ;;  %v5660_v23 = vld [vmem:[%s10025_s7 + $0x108] sm:$0xff] }
 0xa8b   :  { %6946 = vmatprep.subr.bf16.mxu0 %v6945_v32  ;;  %v5654_v32 = vld [vmem:[%s10025_s7 + $0xd8] sm:$0xff]  ;;  %v7010_v26 = vpack.c.bf16 %v5660_v23, %v5659_v2  ;;  %v4583_v2 = vld [vmem:[%s10027_s9 + $0x48] sm:$0xff] }
 0xa8c   :  { %v7001_v34 = vpack.c.bf16 %v5654_v32, %v5653_v8  ;;  %v5676_v8 = vld [vmem:[%s10027_s9 + $0x60] sm:$0xff]  ;;  %v5677_v32 = vld [vmem:[%s10027_s9 + $0x68] sm:$0xff] }
 0xa8d   :  { %5618 = vmatmul.mubr.msk.f32.gmra.mrb[50].mxu0 %vm1156_vm9, %v4007_v47  ;;  %v5638_v47 = vld [vmem:[%s10023_s5 + $0x358] sm:$0xff]  ;;  %v7033_v35 = vpack.c.bf16 %v5677_v32, %v5676_v8  ;;  %v5708_v32 = vld [vmem:[%s10027_s9 + $0x140] sm:$0xff] }
 0xa8e   :  { %6948 = vmatpush1.bf16.msra.mxu0 %v6947_v18  ;;  %4199 = vmatprep.mubr.f32.mxu0 %v7280_v7  ;;  %v6957_v37 = vpack.c.bf16 %v5638_v47, %v5636_v42  ;;  %v5657_v18 = vld [vmem:[%s10025_s7 + $0xf0] sm:$0xff]  ;;  %v5664_v42 = vld [vmem:[%s10025_s7 + $0x128] sm:$0xff] }
 0xa8f   :  { %6950 = vmatprep.subr.bf16.mxu0 %v6949_v21  ;;  %v5658_v21 = vld [vmem:[%s10025_s7 + $0xf8] sm:$0xff]  ;;  %v7016_v47 = vpack.c.bf16 %v5664_v42, %v5663_v31  ;;  %v5697_v42 = vld [vmem:[%s10027_s9 + $0xf0] sm:$0xff] }
 0xa90   :  { %v7007_v22 = vpack.c.bf16 %v5658_v21, %v5657_v18  ;;  %v5681_v18 = vld [vmem:[%s10027_s9 + $0x88] sm:$0xff] }
 0xa92   :  { %6952 = vmatpush1.bf16.msra.mxu0 %v6951_v24  ;;  %v5661_v24 = vld [vmem:[%s10025_s7 + $0x110] sm:$0xff] }
 0xa93   :  { %6954 = vmatprep.subr.bf16.mxu0 %v6953_v27  ;;  %v5662_v27 = vld [vmem:[%s10025_s7 + $0x118] sm:$0xff] }
 0xa94   :  { %v7013_v28 = vpack.c.bf16 %v5662_v27, %v5661_v24  ;;  %v5683_v24 = vld [vmem:[%s10027_s9 + $0x98] sm:$0xff] }
 0xa96   :  { %6956 = vmatpush1.bf16.msra.mxu0 %v6955_v36  ;;  %v5665_v36 = vld [vmem:[%s10025_s7 + $0x130] sm:$0xff] }
 0xa97   :  { %6958 = vmatprep.subr.bf16.mxu0 %v6957_v37  ;;  %v5666_v37 = vld [vmem:[%s10025_s7 + $0x138] sm:$0xff] }
 0xa98   :  { %v7019_v38 = vpack.c.bf16 %v5666_v37, %v5665_v36  ;;  %v5686_v36 = vld [vmem:[%s10027_s9 + $0xa0] sm:$0xff]  ;;  %v5687_v37 = vld [vmem:[%s10027_s9 + $0xa8] sm:$0xff] }
 0xa9a   :  { %6960 = vmatpush1.bf16.msra.mxu0 %v6959_v39  ;;  %v4575_v39 = vld [vmem:[%s10027_s9 + $0x8] sm:$0xff] }
 0xa9b   :  { %5641 = vmatprep.subr.msk.mxu0 %vm563_vm2, %v5640_v25  ;;  %v7045_v25 = vpack.c.bf16 %v4575_v39, %v4574_v57 }
 0xa9e   :  { %5642 = vmatpush1.msk.msra.mxu0 %vm563_vm2, %v5639_v52  ;;  %v4576_v52 = vld [vmem:[%s10027_s9 + $0x10] sm:$0xff] }
 0xa9f   :  { %5643 = vmatmul.mubr.msk.f32.vlgmr.msra.gmra.mrb[48].mxu0 %vm1156_vm9, %v9378_v19  ;;  %7044 = vmatprep.subr.bf16.mxu0 %v7281_v15  ;;  %v6989_v19 = vpack.c.bf16 %v4243_v56, %v4242_v54  ;;  %v4577_v54 = vld [vmem:[%s10027_s9 + $0x18] sm:$0xff] }
 0xaa0   :  { %4205 = vmatprep.mubr.f32.mxu0 %v7280_v7  ;;  %7046 = vmatpush3.bf16.msra.mxu0 %v7045_v25  ;;  %v7048_v56 = vpack.c.bf16 %v4577_v54, %v4576_v52  ;;  %v5699_v52 = vld [vmem:[%s10027_s9 + $0x100] sm:$0xff]  ;;  %v5700_v54 = vld [vmem:[%s10027_s9 + $0x108] sm:$0xff] }
 0xaa1   :  { %6990 = vmatpush1.bf16.msra.mxu1 %v6989_v19  ;;  %7047 = vmatprep.subr.bf16.mxu0 %v7281_v15  ;;  %v4578_v19 = vld [vmem:[%s10027_s9 + $0x20] sm:$0xff] }
 0xaa2   :  { %6991 = vmatprep.subr.bf16.mxu1 %v7281_v15 }
 0xaa3   :  { %5644 = vmatmul.mubr.msk.f32.gmra.mrb[50].mxu0 %vm1156_vm9, %v4123_v49 }
 0xaa4   :  { %6212 = vmatprep.mubr.msk.f32.mxu0 %vm7283_vm10, %v7280_v7  ;;  %7049 = vmatpush3.bf16.msra.mxu0 %v7048_v56  ;;  %v7060_v56 = vpack.c.bf16 %v5687_v37, %v5686_v36 }
 0xaa5   :  { %7050 = vmatprep.subr.bf16.mxu0 %v7281_v15 }
 0xb72   :  { %v4201_v12 = vpop.f32.mrb[48].mxu0 }
 0xb73   :  { %v9664_v1 = vadd.f32 %v4201_v12, %v8301_v51  ;;  %v4203_v49 = vpop.f32.mrb[49].mxu0  ;;  %v4579_v12 = vld [vmem:[%s10027_s9 + $0x28] sm:$0xff] }
 0xb74   :  { %v4217_v53 = vadd.f32 %v4203_v49, %v8305_v59  ;;  %v4580_v49 = vld [vmem:[%s10027_s9 + $0x30] sm:$0xff] }
 0xb75   :  { %v4220_v60 = vmax.f32 %v9664_v1, 0.0  ;;  %v7051_v1 = vpack.c.bf16 %v4579_v12, %v4578_v19  ;;  %v7054_v43 = vpack.c.bf16 %v4581_v4, %v4580_v49  ;;  %v5688_v12 = vld [vmem:[%s10027_s9 + $0xb0] sm:$0xff]  ;;  %v7078_v49 = vpack.c.bf16 %v5700_v54, %v5699_v52  ;;  %v7254_v52 = vld [vmem:[%s10030_s12] sm:$0x1] }
 0xb76   :  { %v4221_v13 = vmax.f32 %v4217_v53, 0.0  ;;  %v4207_v5 = vpop.f32.mrb[50].mxu0  ;;  %v5701_v4 = vld [vmem:[%s10027_s9 + $0x110] sm:$0xff] }
 0xb77   :  { %v4218_v62 = vadd.f32 %v4207_v5, %v8301_v51  ;;  %v4209_v41 = vpop.f32.mrb[51].mxu0  ;;  %v5651_v51 = vld [vmem:[%s10025_s7 + $0xc0] sm:$0xff]  ;;  %7052 = vmatpush3.bf16.msra.mxu0 %v7051_v1  ;;  %v5689_v1 = vld [vmem:[%s10027_s9 + $0xb8] sm:$0xff] }
 0xb78   :  { %v4219_v45 = vadd.f32 %v4209_v41, %v8305_v59  ;;  %5645 = vmatprep.mubr.msk.f32.mxu1 %vm115_vm1, %v4221_v13  ;;  %v6998_v59 = vpack.c.bf16 %v5652_v14, %v5651_v51  ;;  %7053 = vmatprep.subr.bf16.mxu0 %v7281_v15  ;;  %v5675_v51 = vld [vmem:[%s10027_s9 + $0x58] sm:$0xff]  ;;  %v5671_v14 = vld [vmem:[%s10026_s8 + $0x8] sm:$0x1f] }
 0xb79   :  { %4315 = vmatmul.mubr.f32.vlgmr.msra.gmra.mrb[38].mxu1 %v4220_v60  ;;  %v4222_v10 = vmax.f32 %v4218_v62, 0.0 }
 0xb7a   :  { %v4223_v6 = vmax.f32 %v4219_v45, 0.0  ;;  %6993 = vmatpush1.bf16.msra.mxu1 %v6992_v3 }
 0xb7b   :  { %6994 = vmatprep.subr.bf16.mxu1 %v7281_v15  ;;  %7055 = vmatpush3.bf16.msra.mxu0 %v7054_v43  ;;  %v5702_v43 = vld [vmem:[%s10027_s9 + $0x118] sm:$0xff] }
 0xb7c   :  { %5646 = vmatprep.mubr.msk.f32.mxu1 %vm115_vm1, %v4223_v6  ;;  %7056 = vmatprep.subr.bf16.mxu0 %v7281_v15 }
 0xb7d   :  { %4320 = vmatmul.mubr.f32.gmra.mrb[40].mxu1 %v4222_v10 }
 0xb7e   :  { %6996 = vmatpush1.bf16.msra.mxu1 %v6995_v30  ;;  %5667 = vmatprep.mubr.msk.f32.mxu1 %vm115_vm1, %v4221_v13  ;;  %v4422_v30 = vld [vmem:[%s10026_s8] sm:$0x1f] }
 0xb7f   :  { %6997 = vmatprep.subr.bf16.mxu1 %v7281_v15 }
 0xb82   :  { %6999 = vmatpush1.bf16.msra.mxu1 %v6998_v59 }
 0xb83   :  { %7000 = vmatprep.subr.bf16.mxu1 %v7281_v15 }
 0xb86   :  { %7002 = vmatpush1.bf16.msra.mxu1 %v7001_v34  ;;  %v5678_v34 = vld [vmem:[%s10027_s9 + $0x70] sm:$0xff] }
 0xb87   :  { %7003 = vmatprep.subr.bf16.mxu1 %v7281_v15  ;;  %v7036_v29 = vpack.c.bf16 %v5679_v58, %v5678_v34 }
 0xb8a   :  { %7005 = vmatpush1.bf16.msra.mxu1 %v7004_v33  ;;  %v5680_v33 = vld [vmem:[%s10027_s9 + $0x80] sm:$0xff] }
 0xb8b   :  { %7006 = vmatprep.subr.bf16.mxu1 %v7281_v15  ;;  %v7039_v21 = vpack.c.bf16 %v5681_v18, %v5680_v33  ;;  %v5710_v33 = vld [vmem:[%s10027_s9 + $0x150] sm:$0xff]  ;;  %v5711_v18 = vld [vmem:[%s10027_s9 + $0x158] sm:$0xff] }
 0xb8e   :  { %7008 = vmatpush1.bf16.msra.mxu1 %v7007_v22  ;;  %v4582_v22 = vld [vmem:[%s10027_s9 + $0x40] sm:$0xff] }
 0xb8f   :  { %7009 = vmatprep.subr.bf16.mxu1 %v7281_v15  ;;  %v7057_v23 = vpack.c.bf16 %v4583_v2, %v4582_v22  ;;  %v5712_v22 = vld [vmem:[%s10027_s9 + $0x160] sm:$0xff] }
 0xb91   :  { %7058 = vmatpush3.bf16.msra.mxu0 %v7057_v23  ;;  %v5714_v23 = vld [vmem:[%s10027_s9 + $0x170] sm:$0xff] }
 0xb92   :  { %7011 = vmatpush1.bf16.msra.mxu1 %v7010_v26  ;;  %v5682_v26 = vld [vmem:[%s10027_s9 + $0x90] sm:$0xff]  ;;  %7074 = vmatprep.subr.bf16.mxu0 %v7281_v15 }
 0xb93   :  { %7012 = vmatprep.subr.bf16.mxu1 %v7281_v15  ;;  %v7042_v27 = vpack.c.bf16 %v5683_v24, %v5682_v26  ;;  %v5715_v26 = vld [vmem:[%s10027_s9 + $0x178] sm:$0xff]  ;;  %v5716_v24 = vld [vmem:[%s10027_s9 + $0x180] sm:$0xff] }
 0xb96   :  { %7014 = vmatpush1.bf16.msra.mxu1 %v7013_v28 }
 0xb97   :  { %7015 = vmatprep.subr.bf16.mxu1 %v7281_v15 }
 0xb9a   :  { %7017 = vmatpush1.bf16.msra.mxu1 %v7016_v47  ;;  %v5698_v47 = vld [vmem:[%s10027_s9 + $0xf8] sm:$0xff] }
 0xb9b   :  { %7018 = vmatprep.subr.bf16.mxu1 %v7281_v15  ;;  %v7075_v57 = vpack.c.bf16 %v5698_v47, %v5697_v42 }
 0xb9e   :  { %7020 = vmatpush1.bf16.msra.mxu1 %v7019_v38 }
 0xb9f   :  { %7021 = vmatprep.subr.bf16.mxu1 %v7281_v15 }
 0xba1   :  { %4410 = vmatmul.mubr.f32.vlgmr.msra.gmra.mrb[42].mxu1 %v4220_v60 }
 0xba2   :  { %5668 = vmatprep.mubr.msk.f32.mxu1 %vm115_vm1, %v4223_v6 }
 0xba5   :  { %4415 = vmatmul.mubr.f32.gmra.mrb[44].mxu1 %v4222_v10  ;;  %v5674_v10 = vld [vmem:[%s10027_s9 + $0x50] sm:$0xff] }
 0xba6   :  { %6159 = vmatprep.mubr.msk.f32.mxu1 %vm7283_vm10, %v7280_v7  ;;  %v7030_v59 = vpack.c.bf16 %v5675_v51, %v5674_v10  ;;  %v5694_v51 = vld [vmem:[%s10027_s9 + $0xe0] sm:$0xff] }
 0xc4c   :  { %v4316_v53 = vpop.f32.mrb[38].mxu1 }
 0xc4d   :  { %v4318_v13 = vpop.f32.mrb[39].mxu1 }
 0xc4e   :  { %v5690_v13 = vld [vmem:[%s10027_s9 + $0xc0] sm:$0xff] }
 0xc50   :  { %v4321_v5 = vpop.f32.mrb[40].mxu1 }
 0xc51   :  { %v4323_v3 = vpop.f32.mrb[41].mxu1 }
 0xc52   :  { %v7081_v3 = vpack.c.bf16 %v5702_v43, %v5701_v4 }
 0xc74   :  { %v4411_v60 = vpop.f32.mrb[42].mxu1 }
 0xc75   :  { %v4420_v62 = vmax.f32 %v4316_v53, %v4411_v60  ;;  %v4413_v41 = vpop.f32.mrb[43].mxu1  ;;  %v7063_v53 = vpack.c.bf16 %v5689_v1, %v5688_v12  ;;  %v5703_v60 = vld [vmem:[%s10027_s9 + $0x120] sm:$0xff] }
 0xc76   :  { %v7255_v1 = vld [vmem:[%s10032_s14] sm:$0x1] }
 0xc78   :  { %v4416_v48 = vpop.f32.mrb[44].mxu1 }
 0xc79   :  { %v4421_v0 = vmax.f32 %v4321_v5, %v4416_v48  ;;  %v4418_v45 = vpop.f32.mrb[45].mxu1  ;;  %v5691_v5 = vld [vmem:[%s10027_s9 + $0xc8] sm:$0xff]  ;;  %v5692_v48 = vld [vmem:[%s10027_s9 + $0xd0] sm:$0xff] }
 0xc7a   :  { %v7066_v41 = vpack.c.bf16 %v5691_v5, %v5690_v13 }
 0xc7b   :  { %v7022_v6 = vpack.c.bf16 %v4421_v0, %v4420_v62  ;;  %v5704_v62 = vld [vmem:[%s10027_s9 + $0x128] sm:$0xff]  ;;  %v5693_v0 = vld [vmem:[%s10027_s9 + $0xd8] sm:$0xff] }
 0xc7c   :  { %v7084_v45 = vpack.c.bf16 %v5704_v62, %v5703_v60  ;;  %v7069_v10 = vpack.c.bf16 %v5693_v0, %v5692_v48 }
 0xc7d   :  { %7024 = vmatpush3.bf16.msk.msra.mxu1 %vm8421_vm12, %v7022_v6 }
 0xc7e   :  { %7025 = vmatprep.subr.bf16.mxu1 %v7281_v15 }
 0xc80   :  { %6160 = vmatmul.mubr.msk.f32.vlgmr.msra.gmra.mrb[46].mxu1 %vm1901_vm13, %v4422_v30  ;;  %v5706_v30 = vld [vmem:[%s10027_s9 + $0x138] sm:$0xff] }
 0xc81   :  { %7028 = vmatpush3.bf16.msk.msra.mxu1 %vm8421_vm12, %v7022_v6  ;;  %6166 = vmatprep.mubr.msk.f32.mxu1 %vm7283_vm10, %v7280_v7  ;;  %v5705_v6 = vld [vmem:[%s10027_s9 + $0x130] sm:$0xff] }
 0xc82   :  { %7029 = vmatprep.subr.bf16.mxu1 %v7281_v15 }
 0xc84   :  { %6167 = vmatmul.mubr.msk.f32.vlgmr.msra.gmra.mrb[48].mxu1 %vm1901_vm13, %v5671_v14  ;;  %v5695_v14 = vld [vmem:[%s10027_s9 + $0xe8] sm:$0xff] }
 0xc85   :  { %7031 = vmatpush3.bf16.msra.mxu1 %v7030_v59  ;;  %6189 = vmatprep.mubr.msk.f32.mxu1 %vm7283_vm10, %v7280_v7  ;;  %v7087_v59 = vpack.c.bf16 %v5706_v30, %v5705_v6  ;;  %v7072_v8 = vpack.c.bf16 %v5695_v14, %v5694_v51 }
 0xc86   :  { %7032 = vmatprep.subr.bf16.mxu1 %v7281_v15 }
 0xc89   :  { %7034 = vmatpush3.bf16.msra.mxu1 %v7033_v35  ;;  %v5709_v35 = vld [vmem:[%s10027_s9 + $0x148] sm:$0xff] }
 0xc8a   :  { %7035 = vmatprep.subr.bf16.mxu1 %v7281_v15  ;;  %v7090_v58 = vpack.c.bf16 %v5709_v35, %v5708_v32 }
 0xc8d   :  { %7037 = vmatpush3.bf16.msra.mxu1 %v7036_v29 }
 0xc8e   :  { %7038 = vmatprep.subr.bf16.mxu1 %v7281_v15 }
 0xc91   :  { %7040 = vmatpush3.bf16.msra.mxu1 %v7039_v21  ;;  %v7093_v21 = vpack.c.bf16 %v5711_v18, %v5710_v33 }
 0xc92   :  { %7041 = vmatprep.subr.bf16.mxu1 %v7281_v15 }
 0xc95   :  { %7043 = vmatpush3.bf16.msra.mxu1 %v7042_v27  ;;  %v5717_v27 = vld [vmem:[%s10027_s9 + $0x188] sm:$0xff] }
 0xc96   :  { %7059 = vmatprep.subr.bf16.mxu1 %v7281_v15 }
 0xd53   :  { %v4495_v28 = vpop.f32.mrb[46].mxu1 }
 0xd54   :  { %v6161_v31 = vpop.f32.mrb[47].mxu1 }
 0xd57   :  { %v4569_v38 = vpop.f32.mrb[48].mxu1 }
 0xd58   :  { %v9846_v39 = vmax.f32 %v4495_v28, %v4569_v38  ;;  %v6168_v25 = vpop.f32.mrb[49].mxu1  ;;  %v7253_v38 = vld [vmem:[%s10028_s10] sm:$0x1]  ;;  %s7284_s10 = smov [#allocation2]  }
 0xd59   :  { %s5159_s12 = sshll.u32 %s7284_s10, 4  ;;  %s5160_s12 = int_to_ptr.vmem [resolvable:$true] %s5159_s12 }
 0xd5a   :  { %6213 = vmatmul.mubr.msk.f32.vlgmr.msra.gmra.mrb[52].mxu0 %vm2078_vm14, %v9846_v39  ;;  %v4595_v19 = vrot.slane %v9846_v39, 1  ;;  %v4834_v34 = vrot.slane %v9846_v39, 3  ;;  %v4750_v29 = vrot.slane %v9846_v39, 2  ;;  %v4918_v28 = vrot.slane %v9846_v39, 4  ;;  %s7256_s14 = scalar_lea.vmem %s5160_s12, 32  ;;  %p7261_p1 = scmp.lt.s32.totalorder %s5160_s12, %s5160_s12 }
 0xd5b   :  { %7076 = vmatpush3.bf16.msra.mxu0 %v7075_v57  ;;  %6258 = vmatprep.mubr.msk.f32.mxu0 %vm7283_vm10, %v7280_v7  ;;  %p7257_p0 = scmp.ne.s32.totalorder %s5160_s12, %s7256_s14  ;;  %p7262_p2 = scmp.lt.s32.totalorder %s7256_s14, %s7256_s14 }
 0xd5c   :  { %6190 = vmatmul.mubr.msk.f32.vlgmr.msra.gmra.mrb[50].mxu1 %vm2078_vm14, %v4595_v19  ;;  %7077 = vmatprep.subr.bf16.mxu0 %v7281_v15 }
 0xd5d   :  { %7061 = vmatpush3.bf16.msra.mxu1 %v7060_v56  ;;  %6235 = vmatprep.mubr.msk.f32.mxu1 %vm7283_vm10, %v7280_v7  ;;  %p7263_p3 = por %p7262_p2, %p7261_p1 }
 0xd5e   :  { %7062 = vmatprep.subr.bf16.mxu1 %v7281_v15 }
 0xd5f   :  { %7079 = vmatpush3.bf16.msra.mxu0 %v7078_v49  ;;  %p7264_p4 = pnand %p7263_p3, %p7257_p0 }
 0xd60   :  { %7080 = vmatprep.subr.bf16.mxu0 %v7281_v15 }
 0xd61   :  { %7064 = vmatpush3.bf16.msra.mxu1 %v7063_v53 }
 0xd62   :  { %7065 = vmatprep.subr.bf16.mxu1 %v7281_v15 }
 0xd63   :  { %7082 = vmatpush3.bf16.msra.mxu0 %v7081_v3 }
 0xd64   :  { %7083 = vmatprep.subr.bf16.mxu0 %v7281_v15 }
 0xd65   :  { %7067 = vmatpush3.bf16.msra.mxu1 %v7066_v41 }
 0xd66   :  { %7068 = vmatprep.subr.bf16.mxu1 %v7281_v15 }
 0xd67   :  { %7085 = vmatpush3.bf16.msra.mxu0 %v7084_v45 }
 0xd68   :  { %7086 = vmatprep.subr.bf16.mxu0 %v7281_v15 }
 0xd69   :  { %7070 = vmatpush3.bf16.msra.mxu1 %v7069_v10 }
 0xd6a   :  { %7071 = vmatprep.subr.bf16.mxu1 %v7281_v15 }
 0xd6b   :  { %7088 = vmatpush3.bf16.msra.mxu0 %v7087_v59 }
 0xd6c   :  { %7104 = vmatprep.subr.bf16.mxu0 %v7281_v15 }
 0xd6d   :  { %7073 = vmatpush3.bf16.msra.mxu1 %v7072_v8 }
 0xd6e   :  { %6259 = vmatmul.mubr.msk.f32.vlgmr.msra.gmra.mrb[54].mxu0 %vm2078_vm14, %v4834_v34  ;;  %7089 = vmatprep.subr.bf16.mxu1 %v7281_v15 }
 0xd6f   :  { %7106 = vmatpush3.bf16.msra.mxu0 %v8618_v61  ;;  %6314 = vmatprep.mubr.msk.f32.mxu0 %vm7283_vm10, %v7280_v7  ;;  %v5713_v61 = vld [vmem:[%s10027_s9 + $0x168] sm:$0xff] }
 0xd70   :  { %6236 = vmatmul.mubr.msk.f32.vlgmr.msra.gmra.mrb[52].mxu1 %vm2078_vm14, %v4750_v29  ;;  %7107 = vmatprep.subr.bf16.mxu0 %v7281_v15  ;;  %v7096_v2 = vpack.c.bf16 %v5713_v61, %v5712_v22 }
 0xd71   :  { %7091 = vmatpush3.bf16.msra.mxu1 %v7090_v58  ;;  %6281 = vmatprep.mubr.msk.f32.mxu1 %vm7283_vm10, %v7280_v7 }
 0xd72   :  { %7092 = vmatprep.subr.bf16.mxu1 %v7281_v15 }
 0xd73   :  { %7109 = vmatpush3.bf16.msra.mxu0 %v8628_v63  ;;  %v7099_v63 = vpack.c.bf16 %v5715_v26, %v5714_v23 }
 0xd74   :  { %7110 = vmatprep.subr.bf16.mxu0 %v7281_v15 }
 0xd75   :  { %7094 = vmatpush3.bf16.msra.mxu1 %v7093_v21 }
 0xd76   :  { %7095 = vmatprep.subr.bf16.mxu1 %v7281_v15 }
 0xd77   :  { %7112 = vmatpush3.bf16.msra.mxu0 %v8638_v44  ;;  %v7102_v44 = vpack.c.bf16 %v5717_v27, %v5716_v24 }
 0xd78   :  { %7113 = vmatprep.subr.bf16.mxu0 %v7281_v15 }
 0xd79   :  { %7097 = vmatpush3.bf16.msra.mxu1 %v7096_v2 }
 0xd7a   :  { %7098 = vmatprep.subr.bf16.mxu1 %v7281_v15 }
 0xd7b   :  { %7115 = vmatpush3.bf16.msra.mxu0 %v8647_v9  ;;  %v7251_v9 = vld [vmem:[%s10029_s11 + $0x70] sm:$0xff] }
 0xd7c   :  { %7116 = vmatprep.subr.bf16.mxu0 %v7281_v15 }
 0xd7d   :  { %7100 = vmatpush3.bf16.msra.mxu1 %v7099_v63 }
 0xd7e   :  { %7101 = vmatprep.subr.bf16.mxu1 %v7281_v15 }
 0xd7f   :  { %7118 = vmatpush3.bf16.msra.mxu0 %v8657_v11  ;;  %v7252_v11 = vld [vmem:[%s10031_s13 + $0x50] sm:$0xf] }
 0xd80   :  { %7119 = vmatprep.subr.bf16.mxu0 %v7281_v15 }
 0xd81   :  { %7103 = vmatpush3.bf16.msra.mxu1 %v7102_v44 }
 0xd82   :  { %7125 = vmatprep.subr.bf16.mxu1 %v7281_v15 }
 0xd83   :  { %7121 = vmatpush3.bf16.msra.mxu0 %v8667_v17 }
 0xd84   :  { %6282 = vmatmul.mubr.msk.f32.vlgmr.msra.gmra.mrb[54].mxu1 %vm2078_vm14, %v4918_v28  ;;  %7122 = vmatprep.subr.bf16.mxu0 %v7281_v15 }
 0xd85   :  { %7127 = vmatpush3.bf16.msra.mxu1 %v8735_v40  ;;  %6339 = vmatprep.mubr.msk.f32.mxu1 %vm7283_vm10, %v7280_v7 }
 0xd86   :  { %7128 = vmatprep.subr.bf16.mxu1 %v7281_v15 }
 0xd87   :  { %7124 = vmatpush3.bf16.msra.mxu0 %v8678_v20 }
 0xd88   :  { %6312 = vmatprep.subr.mxu0 %v7280_v7 }
 0xd89   :  { %7130 = vmatpush3.bf16.msra.mxu1 %v8741_v46 }
 0xd8a   :  { %7131 = vmatprep.subr.bf16.mxu1 %v7281_v15 }
 0xd8b   :  { %6313 = vmatpush3.msra.mxu0 %v7251_v9 }
 0xd8d   :  { %7133 = vmatpush3.bf16.msra.mxu1 %v8751_v50 }
 0xd8e   :  { %7134 = vmatprep.subr.bf16.mxu1 %v7281_v15 }
 0xd91   :  { %7136 = vmatpush3.bf16.msra.mxu1 %v8761_v55 }
 0xd92   :  { %7137 = vmatprep.subr.bf16.mxu1 %v7281_v15 }
 0xd95   :  { %7139 = vmatpush3.bf16.msra.mxu1 %v8957_v16 }
 0xd96   :  { %6337 = vmatprep.subr.mxu1 %v7280_v7 }
 0xd99   :  { %6338 = vmatpush3.msk.msra.mxu1 %vm563_vm2, %v7252_v11 }
 0xe2d   :  { %v4736_v17 = vpop.f32.mrb[52].mxu0 }
 0xe2e   :  { %v6214_v20 = vpop.f32.mrb[53].mxu0 }
 0xe2f   :  { %v4664_v40 = vpop.f32.mrb[50].mxu1 }
 0xe30   :  { %v4737_v46 = vadd.f32 %v4736_v17, %v4664_v40  ;;  %v6191_v50 = vpop.f32.mrb[51].mxu1 }
 0xe41   :  { %v4903_v31 = vpop.f32.mrb[54].mxu0 }
 0xe42   :  { %v6260_v42 = vpop.f32.mrb[55].mxu0 }
 0xe43   :  { %v4819_v55 = vpop.f32.mrb[52].mxu1 }
 0xe44   :  { %v4823_v47 = vadd.f32 %v4819_v55, %v4737_v46  ;;  %v6237_v15 = vpop.f32.mrb[53].mxu1 }
 0xe46   :  { %v4907_v36 = vadd.f32 %v4903_v31, %v4823_v47 }
 0xe57   :  { %v4987_v16 = vpop.f32.mrb[54].mxu1 }
 0xe58   :  { %v4991_v37 = vadd.f32 %v4987_v16, %v4907_v36  ;;  %v6283_v7 = vpop.f32.mrb[55].mxu1 }
 0xe5a   :  { %v4992_v57 = vadd.f32 %v7253_v38, %v4991_v37 }
 0xe5c   :  { %v4993_v39 = vmax.f32 %v4992_v57, 0.0 }
 0xe5e   :  { %6315 = vmatmul.mubr.msk.f32.vlgmr.msra.gmra.mrb[56].mxu0 %vm2480_vm15, %v4993_v39 }
 0xf31   :  { %v5063_v25 = vpop.f32.mrb[56].mxu0 }
 0xf32   :  { %v5064_v54 = vadd.f32 %v7254_v52, %v5063_v25  ;;  %v6316_v56 = vpop.f32.mrb[57].mxu0 }
 0xf34   :  { %v5067_v19 = vmax.f32 %v5064_v54, 0.0 }
 0xf36   :  { %6340 = vmatmul.mubr.msk.f32.vlgmr.msra.gmra.mrb[56].mxu1 %vm1156_vm9, %v5067_v19 }
0x1009   :  { %v5137_v12 = vpop.f32.mrb[56].mxu1 }
0x100a   :  { %v5138_v49 = vadd.f32 %v7255_v1, %v5137_v12  ;;  %v6341_v4 = vpop.f32.mrb[57].mxu1 }
0x100c   :  { %v5141_v43 = vsel %vm2631_vm7, %v5138_v49, -inf }
0x100d   :  { %5142 = vmax.xlane.f32.xlu0 %v5141_v43 }
0x109a   :  { %v5143_v53 = vpop.xlane.xlu0 %5142 }
0x109b   :  { %v5144_v13 = vsub.f32 %v5138_v49, %v5143_v53 }
0x109d   :  { %v5145_v5 = vmul.f32 1.442695, %v5144_v13 }
0x109f   :  { %7247 = vpow2.f32 %v5145_v5 }
0x10a9   :  { %v7248_v3 = vpop.eup %7247 }
0x10aa   :  { %v5147_v60 = vsel %vm2631_vm7, %v7248_v3, 0.0 }
0x10ab   :  { %5148 = vadd.xlane.f32.xlu1 %v5147_v60 }
0x1138   :  { %v5149_v62 = vpop.xlane.xlu1 %5148 }
0x1139   :  { %7249 = vrcp.f32 %v5149_v62 }
0x1143   :  { %v7250_v41 = vpop.eup %7249 }
0x1144   :  { %v5151_v48 = vmul.f32 %v7250_v41, %v7248_v3 }
0x1146   :  { %5153 = vst.msk [vmem:[#allocation2 + $0x1] sm:$0x1] %vm2631_vm7, %v5151_v48 }
0x1147   :  { %7267 = shalt.err (!%p7264_p4)
}
0x1148   :  { %s7268_s26 = scalar_lea.hbm %s10033_s15, 32 }
0x1149   :  { %p7269_p5 = scmp.ne.s32.totalorder %s10033_s15, %s7268_s26  ;;  %p7272_p6 = scmp.lt.u32.totalorder %s7268_s26, %s10033_s15 }
0x114b   :  { %p7274_p7 = pnand %p7272_p6, %p7269_p5 }
0x114d   :  { %7277 = shalt.err (!%p7274_p7)
}
0x114e   :  { %s7285_s16 = smov 16   ;;  %s7286_s4 = smov 1  }
0x114f   :  { %5165 = dma.vmem_to_hbm [thread:$0]  %s5160_s12, 32, %s10033_s15, [#allocation3], %s7285_s16, %s7285_s16, %s7286_s4  }
0x1150   :  { %7278 = dma.done.wait [#allocation3], 32  }
0x1151   :  { %7279 = vsyncadd [#allocation3], 4294967264 }
0x1152   :  { %5169 = vsyncpa [#allocation3], 1 }

</bundles_post_ra>
